<compile_context>
chip_gen: v7x
topology: tpu7x:2x2x1
jax: 0.10.0
libtpu: 0.0.40
codegen_flags: <defaults>
</compile_context>

<pallas_src>
import functools
import numpy as np
import jax
import jax.numpy as jnp
from jax import lax
from jax.experimental import pallas as pl
from jax.experimental.pallas import tpu as pltpu


def _round_up(v, m):
    return ((v + m - 1) // m) * m


# ----------------------------------------------------------------------------
# Fused kernel: one grid step == `bt` samples' entire forward pass.
# Row convention for all "image-like" intermediates: row = spatial_row*bt + s.
# ----------------------------------------------------------------------------

def _lenet_fused_kernel(x0_ref, x1_ref, w1c_ref, b1_ref, m2_ref, b2_ref,
                        w1p_ref, bf1_ref, w2p_ref, bf2_ref, o_ref, *, bt):
    f32 = jnp.float32
    bf16 = jnp.bfloat16

    def dot(a, w):                       # bf16 MXU operands, f32 accumulation
        return jnp.dot(a, w, preferred_element_type=f32)

    # ---- conv1 (5x5, 1->20) + 2x2 max-pool ---------------------------------
    # x0/x1 hold the 5 stacked input-row bands (K=140) for even/odd conv rows.
    # Output lanes: par*256 + ox*20 + co (lanes 240..255 / 496..511 are zero).
    w1c = w1c_ref[...]
    r0 = dot(x0_ref[...], w1c)                                   # (12*bt, 512)
    r1 = dot(x1_ref[...], w1c)                                   # (12*bt, 512)
    wp0 = jnp.maximum(r0[:, 0:256], r0[:, 256:512])              # width pool
    wp1 = jnp.maximum(r1[:, 0:256], r1[:, 256:512])
    # pool commutes with (+bias, relu): bias is per-channel, relu/max monotone.
    p1 = jnp.maximum(jnp.maximum(wp0, wp1) + b1_ref[...], 0.0)   # (12*bt, 256)
    p1b = p1.astype(bf16)                                        # cast once

    # ---- conv2 (5x5, 20->50) + 2x2 max-pool ---------------------------------
    # Band kh needs pooled rows kh..kh+7 of each sample: with row = i*bt + s
    # that is the contiguous, 8-aligned slice [kh*bt : (kh+8)*bt).
    pre2 = dot(p1b[0:8 * bt, :], m2_ref[0])
    for kh in range(1, 5):
        pre2 = pre2 + dot(p1b[kh * bt:(kh + 8) * bt, :], m2_ref[kh])  # (8*bt,512)
    h2 = jnp.maximum(pre2[:, 0:256], pre2[:, 256:512])                # (8*bt,256)

    # ---- height pool + bias + relu, fc1 accumulated over the 4 row groups ---
    acc = None
    b2 = b2_ref[...]
    for oy in range(4):
        hp = jnp.maximum(h2[2 * oy * bt:(2 * oy + 1) * bt, :],
                         h2[(2 * oy + 1) * bt:(2 * oy + 2) * bt, :])  # (bt, 256)
        feat = jnp.maximum(hp + b2, 0.0).astype(bf16)
        d = dot(feat, w1p_ref[oy])                                    # (bt, 512)
        acc = d if acc is None else acc + d
    h = jnp.maximum(acc + bf1_ref[...], 0.0).astype(bf16)             # (bt, 512)

    # ---- fc2 + masked softmax (lanes >= 11 are padding) ----------------------
    logits = dot(h, w2p_ref[...]) + bf2_ref[...]                      # (bt, 128)
    col = lax.broadcasted_iota(jnp.int32, logits.shape, 1)
    logits = jnp.where(col < 11, logits, -1e30)
    m = jnp.max(logits, axis=-1, keepdims=True)
    e = jnp.exp(logits - m)
    o_ref[...] = (e / jnp.sum(e, axis=-1, keepdims=True)).astype(o_ref.dtype)


# ----------------------------------------------------------------------------
# One-time host-side weight re-layout (banded, 256-lane aligned, zero padded).
# ----------------------------------------------------------------------------

def prepare_params(p):
    w1 = np.asarray(p["conv1_w"], np.float32)   # (20, 1, 5, 5)
    b1 = np.asarray(p["conv1_b"], np.float32)   # (20,)
    w2 = np.asarray(p["conv2_w"], np.float32)   # (50, 20, 5, 5)
    b2 = np.asarray(p["conv2_b"], np.float32)   # (50,)
    fw1 = np.asarray(p["fc1_w"], np.float32)    # (500, 800)
    fb1 = np.asarray(p["fc1_b"], np.float32)    # (500,)
    fw2 = np.asarray(p["fc2_w"], np.float32)    # (11, 500)
    fb2 = np.asarray(p["fc2_b"], np.float32)    # (11,)

    # conv1: five kh-bands merged along K -> (140, 512).
    # Row = kh*28 + xw, column = par*256 + ox*20 + co, conv out-x = 2*ox + par,
    # input column xw = out_x + kw.  Padded rows/lanes stay zero.
    w1cat = np.zeros((140, 512), np.float32)
    for kh in range(5):
        for kw in range(5):
            for par in range(2):
                for ox in range(12):
                    xw = 2 * ox + par + kw
                    base = par * 256 + ox * 20
                    w1cat[kh * 28 + xw, base:base + 20] = w1[:, 0, kh, kw]

    b1t = np.zeros((1, 256), np.float32)
    for ox in range(12):
        b1t[0, ox * 20:(ox + 1) * 20] = b1

    # conv2 banded matrices: (5, 256, 512).  K row = xw*20 + ci (channel-last
    # pooled-1 map, rows 240..255 zero); column = par*256 + ox*50 + co.
    m2 = np.zeros((5, 256, 512), np.float32)
    for kh in range(5):
        for kw in range(5):
            for par in range(2):
                for ox in range(4):
                    xw = 2 * ox + par + kw
                    base = par * 256 + ox * 50
                    m2[kh, xw * 20:(xw + 1) * 20, base:base + 50] = w2[:, :, kh, kw].T

    b2t = np.zeros((1, 256), np.float32)
    for ox in range(4):
        b2t[0, ox * 50:(ox + 1) * 50] = b2

    # fc1 split per pooled output row oy: (4, 256, 512).
    # feat_oy lane = ox*50 + co maps to PyTorch NCHW flat index co*16 + oy*4 + ox.
    w1p3 = np.zeros((4, 256, 512), np.float32)
    tmp = fw1.reshape(500, 50, 4, 4).transpose(2, 3, 1, 0)   # (oy, ox, co, j)
    w1p3[:, :200, :500] = tmp.reshape(4, 200, 500)
    bf1p = np.zeros((1, 512), np.float32)
    bf1p[0, :500] = fb1

    # fc2: (512, 128), lane-dense padded output.
    w2p = np.zeros((512, 128), np.float32)
    w2p[:500, :11] = fw2.T
    bf2p = np.zeros((1, 128), np.float32)
    bf2p[0, :11] = fb2

    bf16 = jnp.bfloat16
    return dict(
        w1cat=jnp.asarray(w1cat, bf16),
        b1t=jnp.asarray(b1t, jnp.float32),
        m2=jnp.asarray(m2, bf16),
        b2t=jnp.asarray(b2t, jnp.float32),
        w1p3=jnp.asarray(w1p3, bf16),
        bf1=jnp.asarray(bf1p, jnp.float32),
        w2p=jnp.asarray(w2p, bf16),
        bf2=jnp.asarray(bf2p, jnp.float32),
    )


# ----------------------------------------------------------------------------
# Forward wrapper: one pallas_call, grid over batch tiles of `bt` samples.
# ----------------------------------------------------------------------------

def lenet_forward(x, prep, block_n=64):
    n = x.shape[0]
    bt = min(block_n, _round_up(n, 8))       # multiple of 8; <=64 fits v7x VMEM
    n_pad = _round_up(n, bt)
    nb = n_pad // bt

    img = x.reshape(n, 28, 28).astype(jnp.bfloat16)          # cast hoisted here
    if n_pad != n:
        img = jnp.concatenate(
            [img, jnp.zeros((n_pad - n, 28, 28), img.dtype)], axis=0)
    imgb = img.reshape(nb, bt, 28, 28)

    def build(shift):
        # xcat[row = b*12*bt + i*bt + s, kh*28 + c] = img[b*bt+s, 2*i+kh+shift, c]
        sl = [imgb[:, :, shift + kh:shift + kh + 24:2, :] for kh in range(5)]
        st = jnp.stack(sl, axis=3)                 # (nb, bt, 12, 5, 28)
        st = st.transpose(0, 2, 1, 3, 4)           # (nb, 12, bt, 5, 28)
        return st.reshape(nb * 12 * bt, 5 * 28)    # (12*n_pad, 140)

    xcat0 = build(0)   # even conv1 output rows
    xcat1 = build(1)   # odd conv1 output rows

    kernel = functools.partial(_lenet_fused_kernel, bt=bt)
    out = pl.pallas_call(
        kernel,
        out_shape=jax.ShapeDtypeStruct((n_pad, 128), jnp.float32),
        grid=(nb,),
        in_specs=[
            pl.BlockSpec((12 * bt, 140), lambda b: (b, 0)),      # conv1 even bands
            pl.BlockSpec((12 * bt, 140), lambda b: (b, 0)),      # conv1 odd bands
            pl.BlockSpec((140, 512), lambda b: (0, 0)),          # conv1 weights
            pl.BlockSpec((1, 256), lambda b: (0, 0)),            # conv1 bias (tiled)
            pl.BlockSpec((5, 256, 512), lambda b: (0, 0, 0)),    # conv2 bands
            pl.BlockSpec((1, 256), lambda b: (0, 0)),            # conv2 bias (tiled)
            pl.BlockSpec((4, 256, 512), lambda b: (0, 0, 0)),    # fc1 (row-group split)
            pl.BlockSpec((1, 512), lambda b: (0, 0)),            # fc1 bias
            pl.BlockSpec((512, 128), lambda b: (0, 0)),          # fc2
            pl.BlockSpec((1, 128), lambda b: (0, 0)),            # fc2 bias
        ],
        out_specs=pl.BlockSpec((bt, 128), lambda b: (b, 0)),     # lane-dense output
        compiler_params=pltpu.CompilerParams(
            dimension_semantics=("parallel",),
            vmem_limit_bytes=48 * 1024 * 1024),
    )(xcat0, xcat1, prep["w1cat"], prep["b1t"], prep["m2"], prep["b2t"],
      prep["w1p3"], prep["bf1"], prep["w2p"], prep["bf2"])
    return out[:n, :11]


# ----------------------------------------------------------------------------
# Pure-JAX reference (independent implementation, for the correctness check)
# ----------------------------------------------------------------------------

def lenet_reference(x, p):
    dn = ("NCHW", "OIHW", "NCHW")
    hi = lax.Precision.HIGHEST
    y = lax.conv_general_dilated(x, p["conv1_w"], (1, 1), "VALID",
                                 dimension_numbers=dn, precision=hi)
    y = jnp.maximum(y + p["conv1_b"][None, :, None, None], 0.0)
    y = lax.reduce_window(y, -jnp.inf, lax.max, (1, 1, 2, 2), (1, 1, 2, 2), "VALID")
    y = lax.conv_general_dilated(y, p["conv2_w"], (1, 1), "VALID",
                                 dimension_numbers=dn, precision=hi)
    y = jnp.maximum(y + p["conv2_b"][None, :, None, None], 0.0)
    y = lax.reduce_window(y, -jnp.inf, lax.max, (1, 1, 2, 2), (1, 1, 2, 2), "VALID")
    flat = y.reshape(y.shape[0], -1)
    h = jnp.maximum(jnp.dot(flat, p["fc1_w"].T, precision=hi) + p["fc1_b"], 0.0)
    logits = jnp.dot(h, p["fc2_w"].T, precision=hi) + p["fc2_b"]
    return jax.nn.softmax(logits, axis=1)


# ----------------------------------------------------------------------------

if __name__ == "__main__":
    key = jax.random.PRNGKey(0)
    ks = jax.random.split(key, 9)
    # fc1 expects 800 = 50*4*4 features => the module implies a 28x28 input.
    x = jax.random.normal(ks[0], (2, 1, 28, 28), jnp.float32)
    params = {
        "conv1_w": jax.random.normal(ks[1], (20, 1, 5, 5), jnp.float32) * 0.10,
        "conv1_b": jax.random.normal(ks[2], (20,), jnp.float32) * 0.10,
        "conv2_w": jax.random.normal(ks[3], (50, 20, 5, 5), jnp.float32) * 0.05,
        "conv2_b": jax.random.normal(ks[4], (50,), jnp.float32) * 0.05,
        "fc1_w": jax.random.normal(ks[5], (500, 800), jnp.float32) * 0.02,
        "fc1_b": jax.random.normal(ks[6], (500,), jnp.float32) * 0.02,
        "fc2_w": jax.random.normal(ks[7], (11, 500), jnp.float32) * 0.05,
        "fc2_b": jax.random.normal(ks[8], (11,), jnp.float32) * 0.05,
    }

    prep = prepare_params(params)
    fwd = jax.jit(lenet_forward)
    out = jax.block_until_ready(fwd(x, prep))

    ref = lenet_reference(x, params)
    assert out.shape == (2, 11), out.shape
    assert jnp.allclose(jnp.sum(out, axis=1), 1.0, atol=1e-5)
    # bf16 MXU operands (f32 accumulate) => looser tolerance than pure f32.
    max_err = jnp.max(jnp.abs(out - ref))
    assert jnp.allclose(out, ref, atol=2e-2), max_err
    print("KERNEL_OK")
</pallas_src>

<mosaic_0001>
module attributes {stable_mosaic.version = 11 : i64} {
  func.func @_lenet_fused_kernel(%arg0: i32, %arg1: memref<96x140xbf16, #tpu.memory_space<vmem>>, %arg2: memref<96x140xbf16, #tpu.memory_space<vmem>>, %arg3: memref<140x512xbf16, #tpu.memory_space<vmem>>, %arg4: memref<1x256xf32, #tpu.memory_space<vmem>>, %arg5: memref<5x256x512xbf16, #tpu.memory_space<vmem>>, %arg6: memref<1x256xf32, #tpu.memory_space<vmem>>, %arg7: memref<4x256x512xbf16, #tpu.memory_space<vmem>>, %arg8: memref<1x512xf32, #tpu.memory_space<vmem>>, %arg9: memref<512x128xbf16, #tpu.memory_space<vmem>>, %arg10: memref<1x128xf32, #tpu.memory_space<vmem>>, %arg11: memref<8x128xf32, #tpu.memory_space<vmem>>) attributes {dimension_semantics = [#tpu.dimension_semantics<parallel>], iteration_bounds = array<i64: 1>, scalar_prefetch = 0 : i64, scratch_operands = 0 : i64, tpu.core_type = #tpu.core_type<tc>, window_params = [{transform_indices = @transform_0, window_bounds = array<i64: 96, 140>}, {transform_indices = @transform_1, window_bounds = array<i64: 96, 140>}, {pipeline_mode = #tpu.pipeline_mode<synchronous>, transform_indices = @transform_2, window_bounds = array<i64: 140, 512>}, {pipeline_mode = #tpu.pipeline_mode<synchronous>, transform_indices = @transform_3, window_bounds = array<i64: 1, 256>}, {pipeline_mode = #tpu.pipeline_mode<synchronous>, transform_indices = @transform_4, window_bounds = array<i64: 5, 256, 512>}, {pipeline_mode = #tpu.pipeline_mode<synchronous>, transform_indices = @transform_5, window_bounds = array<i64: 1, 256>}, {pipeline_mode = #tpu.pipeline_mode<synchronous>, transform_indices = @transform_6, window_bounds = array<i64: 4, 256, 512>}, {pipeline_mode = #tpu.pipeline_mode<synchronous>, transform_indices = @transform_7, window_bounds = array<i64: 1, 512>}, {pipeline_mode = #tpu.pipeline_mode<synchronous>, transform_indices = @transform_8, window_bounds = array<i64: 512, 128>}, {pipeline_mode = #tpu.pipeline_mode<synchronous>, transform_indices = @transform_9, window_bounds = array<i64: 1, 128>}, {transform_indices = @transform_10, window_bounds = array<i64: 8, 128>}]} {
    %c0 = arith.constant 0 : index
    %c0_0 = arith.constant 0 : index
    %0 = vector.load %arg3[%c0, %c0_0] : memref<140x512xbf16, #tpu.memory_space<vmem>>, vector<140x512xbf16>
    %c0_1 = arith.constant 0 : index
    %c0_2 = arith.constant 0 : index
    %1 = vector.load %arg1[%c0_1, %c0_2] : memref<96x140xbf16, #tpu.memory_space<vmem>>, vector<96x140xbf16>
    %cst = arith.constant dense<0.000000e+00> : vector<96x512xf32>
    %2 = tpu.matmul %1, %0, %cst {dimension_numbers = #tpu.dot_dimension_numbers<[1], [0], [0], [1], [0, 0, 1, 1], [], []>} : vector<96x140xbf16>, vector<140x512xbf16>, vector<96x512xf32> -> vector<96x512xf32>
    %c0_3 = arith.constant 0 : index
    %c0_4 = arith.constant 0 : index
    %3 = vector.load %arg2[%c0_3, %c0_4] : memref<96x140xbf16, #tpu.memory_space<vmem>>, vector<96x140xbf16>
    %cst_5 = arith.constant dense<0.000000e+00> : vector<96x512xf32>
    %4 = tpu.matmul %3, %0, %cst_5 {dimension_numbers = #tpu.dot_dimension_numbers<[1], [0], [0], [1], [0, 0, 1, 1], [], []>} : vector<96x140xbf16>, vector<140x512xbf16>, vector<96x512xf32> -> vector<96x512xf32>
    %5 = vector.extract_strided_slice %2 {offsets = [0, 0], sizes = [96, 256], strides = [1, 1]} : vector<96x512xf32> to vector<96x256xf32>
    %6 = vector.extract_strided_slice %2 {offsets = [0, 256], sizes = [96, 256], strides = [1, 1]} : vector<96x512xf32> to vector<96x256xf32>
    %7 = arith.maximumf %5, %6 : vector<96x256xf32>
    %8 = vector.extract_strided_slice %4 {offsets = [0, 0], sizes = [96, 256], strides = [1, 1]} : vector<96x512xf32> to vector<96x256xf32>
    %9 = vector.extract_strided_slice %4 {offsets = [0, 256], sizes = [96, 256], strides = [1, 1]} : vector<96x512xf32> to vector<96x256xf32>
    %10 = arith.maximumf %8, %9 : vector<96x256xf32>
    %11 = arith.maximumf %7, %10 : vector<96x256xf32>
    %c0_6 = arith.constant 0 : index
    %c0_7 = arith.constant 0 : index
    %12 = vector.load %arg4[%c0_6, %c0_7] : memref<1x256xf32, #tpu.memory_space<vmem>>, vector<1x256xf32>
    %13 = vector.broadcast %12 : vector<1x256xf32> to vector<96x256xf32>
    %14 = arith.addf %11, %13 : vector<96x256xf32>
    %cst_8 = arith.constant 0.000000e+00 : f32
    %15 = vector.broadcast %cst_8 : f32 to vector<96x256xf32>
    %16 = arith.maximumf %14, %15 : vector<96x256xf32>
    %17 = arith.truncf %16 : vector<96x256xf32> to vector<96x256xbf16>
    %18 = vector.extract_strided_slice %17 {offsets = [0, 0], sizes = [64, 256], strides = [1, 1]} : vector<96x256xbf16> to vector<64x256xbf16>
    %c0_9 = arith.constant 0 : index
    %c0_10 = arith.constant 0 : index
    %c0_11 = arith.constant 0 : index
    %19 = vector.load %arg5[%c0_9, %c0_10, %c0_11] : memref<5x256x512xbf16, #tpu.memory_space<vmem>>, vector<1x256x512xbf16>
    %20 = vector.shape_cast %19 : vector<1x256x512xbf16> to vector<256x512xbf16>
    %cst_12 = arith.constant dense<0.000000e+00> : vector<64x512xf32>
    %21 = tpu.matmul %18, %20, %cst_12 {dimension_numbers = #tpu.dot_dimension_numbers<[1], [0], [0], [1], [0, 0, 1, 1], [], []>} : vector<64x256xbf16>, vector<256x512xbf16>, vector<64x512xf32> -> vector<64x512xf32>
    %22 = vector.extract_strided_slice %17 {offsets = [8, 0], sizes = [64, 256], strides = [1, 1]} : vector<96x256xbf16> to vector<64x256xbf16>
    %c1 = arith.constant 1 : index
    %c0_13 = arith.constant 0 : index
    %c0_14 = arith.constant 0 : index
    %23 = vector.load %arg5[%c1, %c0_13, %c0_14] : memref<5x256x512xbf16, #tpu.memory_space<vmem>>, vector<1x256x512xbf16>
    %24 = vector.shape_cast %23 : vector<1x256x512xbf16> to vector<256x512xbf16>
    %cst_15 = arith.constant dense<0.000000e+00> : vector<64x512xf32>
    %25 = tpu.matmul %22, %24, %cst_15 {dimension_numbers = #tpu.dot_dimension_numbers<[1], [0], [0], [1], [0, 0, 1, 1], [], []>} : vector<64x256xbf16>, vector<256x512xbf16>, vector<64x512xf32> -> vector<64x512xf32>
    %26 = arith.addf %21, %25 : vector<64x512xf32>
    %27 = vector.extract_strided_slice %17 {offsets = [16, 0], sizes = [64, 256], strides = [1, 1]} : vector<96x256xbf16> to vector<64x256xbf16>
    %c2 = arith.constant 2 : index
    %c0_16 = arith.constant 0 : index
    %c0_17 = arith.constant 0 : index
    %28 = vector.load %arg5[%c2, %c0_16, %c0_17] : memref<5x256x512xbf16, #tpu.memory_space<vmem>>, vector<1x256x512xbf16>
    %29 = vector.shape_cast %28 : vector<1x256x512xbf16> to vector<256x512xbf16>
    %cst_18 = arith.constant dense<0.000000e+00> : vector<64x512xf32>
    %30 = tpu.matmul %27, %29, %cst_18 {dimension_numbers = #tpu.dot_dimension_numbers<[1], [0], [0], [1], [0, 0, 1, 1], [], []>} : vector<64x256xbf16>, vector<256x512xbf16>, vector<64x512xf32> -> vector<64x512xf32>
    %31 = arith.addf %26, %30 : vector<64x512xf32>
    %32 = vector.extract_strided_slice %17 {offsets = [24, 0], sizes = [64, 256], strides = [1, 1]} : vector<96x256xbf16> to vector<64x256xbf16>
    %c3 = arith.constant 3 : index
    %c0_19 = arith.constant 0 : index
    %c0_20 = arith.constant 0 : index
    %33 = vector.load %arg5[%c3, %c0_19, %c0_20] : memref<5x256x512xbf16, #tpu.memory_space<vmem>>, vector<1x256x512xbf16>
    %34 = vector.shape_cast %33 : vector<1x256x512xbf16> to vector<256x512xbf16>
    %cst_21 = arith.constant dense<0.000000e+00> : vector<64x512xf32>
    %35 = tpu.matmul %32, %34, %cst_21 {dimension_numbers = #tpu.dot_dimension_numbers<[1], [0], [0], [1], [0, 0, 1, 1], [], []>} : vector<64x256xbf16>, vector<256x512xbf16>, vector<64x512xf32> -> vector<64x512xf32>
    %36 = arith.addf %31, %35 : vector<64x512xf32>
    %37 = vector.extract_strided_slice %17 {offsets = [32, 0], sizes = [64, 256], strides = [1, 1]} : vector<96x256xbf16> to vector<64x256xbf16>
    %c4 = arith.constant 4 : index
    %c0_22 = arith.constant 0 : index
    %c0_23 = arith.constant 0 : index
    %38 = vector.load %arg5[%c4, %c0_22, %c0_23] : memref<5x256x512xbf16, #tpu.memory_space<vmem>>, vector<1x256x512xbf16>
    %39 = vector.shape_cast %38 : vector<1x256x512xbf16> to vector<256x512xbf16>
    %cst_24 = arith.constant dense<0.000000e+00> : vector<64x512xf32>
    %40 = tpu.matmul %37, %39, %cst_24 {dimension_numbers = #tpu.dot_dimension_numbers<[1], [0], [0], [1], [0, 0, 1, 1], [], []>} : vector<64x256xbf16>, vector<256x512xbf16>, vector<64x512xf32> -> vector<64x512xf32>
    %41 = arith.addf %36, %40 : vector<64x512xf32>
    %42 = vector.extract_strided_slice %41 {offsets = [0, 0], sizes = [64, 256], strides = [1, 1]} : vector<64x512xf32> to vector<64x256xf32>
    %43 = vector.extract_strided_slice %41 {offsets = [0, 256], sizes = [64, 256], strides = [1, 1]} : vector<64x512xf32> to vector<64x256xf32>
    %44 = arith.maximumf %42, %43 : vector<64x256xf32>
    %c0_25 = arith.constant 0 : index
    %c0_26 = arith.constant 0 : index
    %45 = vector.load %arg6[%c0_25, %c0_26] : memref<1x256xf32, #tpu.memory_space<vmem>>, vector<1x256xf32>
    %46 = vector.extract_strided_slice %44 {offsets = [0, 0], sizes = [8, 256], strides = [1, 1]} : vector<64x256xf32> to vector<8x256xf32>
    %47 = vector.extract_strided_slice %44 {offsets = [8, 0], sizes = [8, 256], strides = [1, 1]} : vector<64x256xf32> to vector<8x256xf32>
    %48 = arith.maximumf %46, %47 : vector<8x256xf32>
    %49 = vector.broadcast %45 : vector<1x256xf32> to vector<8x256xf32>
    %50 = arith.addf %48, %49 : vector<8x256xf32>
    %cst_27 = arith.constant 0.000000e+00 : f32
    %51 = vector.broadcast %cst_27 : f32 to vector<8x256xf32>
    %52 = arith.maximumf %50, %51 : vector<8x256xf32>
    %53 = arith.truncf %52 : vector<8x256xf32> to vector<8x256xbf16>
    %c0_28 = arith.constant 0 : index
    %c0_29 = arith.constant 0 : index
    %c0_30 = arith.constant 0 : index
    %54 = vector.load %arg7[%c0_28, %c0_29, %c0_30] : memref<4x256x512xbf16, #tpu.memory_space<vmem>>, vector<1x256x512xbf16>
    %55 = vector.shape_cast %54 : vector<1x256x512xbf16> to vector<256x512xbf16>
    %cst_31 = arith.constant dense<0.000000e+00> : vector<8x512xf32>
    %56 = tpu.matmul %53, %55, %cst_31 {dimension_numbers = #tpu.dot_dimension_numbers<[1], [0], [0], [1], [0, 0, 1, 1], [], []>} : vector<8x256xbf16>, vector<256x512xbf16>, vector<8x512xf32> -> vector<8x512xf32>
    %57 = vector.extract_strided_slice %44 {offsets = [16, 0], sizes = [8, 256], strides = [1, 1]} : vector<64x256xf32> to vector<8x256xf32>
    %58 = vector.extract_strided_slice %44 {offsets = [24, 0], sizes = [8, 256], strides = [1, 1]} : vector<64x256xf32> to vector<8x256xf32>
    %59 = arith.maximumf %57, %58 : vector<8x256xf32>
    %60 = vector.broadcast %45 : vector<1x256xf32> to vector<8x256xf32>
    %61 = arith.addf %59, %60 : vector<8x256xf32>
    %cst_32 = arith.constant 0.000000e+00 : f32
    %62 = vector.broadcast %cst_32 : f32 to vector<8x256xf32>
    %63 = arith.maximumf %61, %62 : vector<8x256xf32>
    %64 = arith.truncf %63 : vector<8x256xf32> to vector<8x256xbf16>
    %c1_33 = arith.constant 1 : index
    %c0_34 = arith.constant 0 : index
    %c0_35 = arith.constant 0 : index
    %65 = vector.load %arg7[%c1_33, %c0_34, %c0_35] : memref<4x256x512xbf16, #tpu.memory_space<vmem>>, vector<1x256x512xbf16>
    %66 = vector.shape_cast %65 : vector<1x256x512xbf16> to vector<256x512xbf16>
    %cst_36 = arith.constant dense<0.000000e+00> : vector<8x512xf32>
    %67 = tpu.matmul %64, %66, %cst_36 {dimension_numbers = #tpu.dot_dimension_numbers<[1], [0], [0], [1], [0, 0, 1, 1], [], []>} : vector<8x256xbf16>, vector<256x512xbf16>, vector<8x512xf32> -> vector<8x512xf32>
    %68 = arith.addf %56, %67 : vector<8x512xf32>
    %69 = vector.extract_strided_slice %44 {offsets = [32, 0], sizes = [8, 256], strides = [1, 1]} : vector<64x256xf32> to vector<8x256xf32>
    %70 = vector.extract_strided_slice %44 {offsets = [40, 0], sizes = [8, 256], strides = [1, 1]} : vector<64x256xf32> to vector<8x256xf32>
    %71 = arith.maximumf %69, %70 : vector<8x256xf32>
    %72 = vector.broadcast %45 : vector<1x256xf32> to vector<8x256xf32>
    %73 = arith.addf %71, %72 : vector<8x256xf32>
    %cst_37 = arith.constant 0.000000e+00 : f32
    %74 = vector.broadcast %cst_37 : f32 to vector<8x256xf32>
    %75 = arith.maximumf %73, %74 : vector<8x256xf32>
    %76 = arith.truncf %75 : vector<8x256xf32> to vector<8x256xbf16>
    %c2_38 = arith.constant 2 : index
    %c0_39 = arith.constant 0 : index
    %c0_40 = arith.constant 0 : index
    %77 = vector.load %arg7[%c2_38, %c0_39, %c0_40] : memref<4x256x512xbf16, #tpu.memory_space<vmem>>, vector<1x256x512xbf16>
    %78 = vector.shape_cast %77 : vector<1x256x512xbf16> to vector<256x512xbf16>
    %cst_41 = arith.constant dense<0.000000e+00> : vector<8x512xf32>
    %79 = tpu.matmul %76, %78, %cst_41 {dimension_numbers = #tpu.dot_dimension_numbers<[1], [0], [0], [1], [0, 0, 1, 1], [], []>} : vector<8x256xbf16>, vector<256x512xbf16>, vector<8x512xf32> -> vector<8x512xf32>
    %80 = arith.addf %68, %79 : vector<8x512xf32>
    %81 = vector.extract_strided_slice %44 {offsets = [48, 0], sizes = [8, 256], strides = [1, 1]} : vector<64x256xf32> to vector<8x256xf32>
    %82 = vector.extract_strided_slice %44 {offsets = [56, 0], sizes = [8, 256], strides = [1, 1]} : vector<64x256xf32> to vector<8x256xf32>
    %83 = arith.maximumf %81, %82 : vector<8x256xf32>
    %84 = vector.broadcast %45 : vector<1x256xf32> to vector<8x256xf32>
    %85 = arith.addf %83, %84 : vector<8x256xf32>
    %cst_42 = arith.constant 0.000000e+00 : f32
    %86 = vector.broadcast %cst_42 : f32 to vector<8x256xf32>
    %87 = arith.maximumf %85, %86 : vector<8x256xf32>
    %88 = arith.truncf %87 : vector<8x256xf32> to vector<8x256xbf16>
    %c3_43 = arith.constant 3 : index
    %c0_44 = arith.constant 0 : index
    %c0_45 = arith.constant 0 : index
    %89 = vector.load %arg7[%c3_43, %c0_44, %c0_45] : memref<4x256x512xbf16, #tpu.memory_space<vmem>>, vector<1x256x512xbf16>
    %90 = vector.shape_cast %89 : vector<1x256x512xbf16> to vector<256x512xbf16>
    %cst_46 = arith.constant dense<0.000000e+00> : vector<8x512xf32>
    %91 = tpu.matmul %88, %90, %cst_46 {dimension_numbers = #tpu.dot_dimension_numbers<[1], [0], [0], [1], [0, 0, 1, 1], [], []>} : vector<8x256xbf16>, vector<256x512xbf16>, vector<8x512xf32> -> vector<8x512xf32>
    %92 = arith.addf %80, %91 : vector<8x512xf32>
    %c0_47 = arith.constant 0 : index
    %c0_48 = arith.constant 0 : index
    %93 = vector.load %arg8[%c0_47, %c0_48] : memref<1x512xf32, #tpu.memory_space<vmem>>, vector<1x512xf32>
    %94 = vector.broadcast %93 : vector<1x512xf32> to vector<8x512xf32>
    %95 = arith.addf %92, %94 : vector<8x512xf32>
    %cst_49 = arith.constant 0.000000e+00 : f32
    %96 = vector.broadcast %cst_49 : f32 to vector<8x512xf32>
    %97 = arith.maximumf %95, %96 : vector<8x512xf32>
    %98 = arith.truncf %97 : vector<8x512xf32> to vector<8x512xbf16>
    %c0_50 = arith.constant 0 : index
    %c0_51 = arith.constant 0 : index
    %99 = vector.load %arg9[%c0_50, %c0_51] : memref<512x128xbf16, #tpu.memory_space<vmem>>, vector<512x128xbf16>
    %cst_52 = arith.constant dense<0.000000e+00> : vector<8x128xf32>
    %100 = tpu.matmul %98, %99, %cst_52 {dimension_numbers = #tpu.dot_dimension_numbers<[1], [0], [0], [1], [0, 0, 1, 1], [], []>} : vector<8x512xbf16>, vector<512x128xbf16>, vector<8x128xf32> -> vector<8x128xf32>
    %c0_53 = arith.constant 0 : index
    %c0_54 = arith.constant 0 : index
    %101 = vector.load %arg10[%c0_53, %c0_54] : memref<1x128xf32, #tpu.memory_space<vmem>>, vector<1x128xf32>
    %102 = vector.broadcast %101 : vector<1x128xf32> to vector<8x128xf32>
    %103 = arith.addf %100, %102 : vector<8x128xf32>
    %104 = tpu.iota {dimensions = array<i32: 1>} : vector<8x128xi32>
    %c11_i32 = arith.constant 11 : i32
    %105 = vector.broadcast %c11_i32 : i32 to vector<8x128xi32>
    %106 = arith.cmpi slt, %104, %105 : vector<8x128xi32>
    %cst_55 = arith.constant -1.000000e+30 : f32
    %107 = vector.broadcast %cst_55 : f32 to vector<8x128xf32>
    %108 = arith.select %106, %103, %107 : vector<8x128xi1>, vector<8x128xf32>
    %cst_56 = arith.constant dense<0xFF800000> : vector<8xf32>
    %109 = vector.multi_reduction <maximumf>, %108, %cst_56 [1] : vector<8x128xf32> to vector<8xf32>
    %110 = vector.shape_cast %109 : vector<8xf32> to vector<8x1xf32>
    %111 = vector.broadcast %110 : vector<8x1xf32> to vector<8x128xf32>
    %112 = arith.subf %108, %111 : vector<8x128xf32>
    %113 = math.exp %112 : vector<8x128xf32>
    %cst_57 = arith.constant dense<0.000000e+00> : vector<8xf32>
    %114 = vector.multi_reduction <add>, %113, %cst_57 [1] : vector<8x128xf32> to vector<8xf32>
    %115 = vector.shape_cast %114 : vector<8xf32> to vector<8x1xf32>
    %116 = vector.broadcast %115 : vector<8x1xf32> to vector<8x128xf32>
    %117 = arith.divf %113, %116 : vector<8x128xf32>
    %c0_58 = arith.constant 0 : index
    %c0_59 = arith.constant 0 : index
    %118 = vector.load %arg11[%c0_58, %c0_59] : memref<8x128xf32, #tpu.memory_space<vmem>>, vector<8x128xf32>
    tpu.vector_store %arg11[%c0_58, %c0_59], %117 {strides = array<i32>} : memref<8x128xf32, #tpu.memory_space<vmem>>, vector<8x128xf32>,
    return
  }
  func.func @transform_0(%arg0: i32) -> (i32, i32) {
    %c0_i32 = arith.constant 0 : i32
    %c0_i32_0 = arith.constant 0 : i32
    return %arg0, %c0_i32 : i32, i32
  }
  func.func @transform_1(%arg0: i32) -> (i32, i32) {
    %c0_i32 = arith.constant 0 : i32
    %c0_i32_0 = arith.constant 0 : i32
    return %arg0, %c0_i32 : i32, i32
  }
  func.func @transform_2(%arg0: i32) -> (i32, i32) {
    %c0_i32 = arith.constant 0 : i32
    %c0_i32_0 = arith.constant 0 : i32
    %c0_i32_1 = arith.constant 0 : i32
    return %c0_i32, %c0_i32_0 : i32, i32
  }
  func.func @transform_3(%arg0: i32) -> (i32, i32) {
    %c0_i32 = arith.constant 0 : i32
    %c0_i32_0 = arith.constant 0 : i32
    %c0_i32_1 = arith.constant 0 : i32
    return %c0_i32, %c0_i32_0 : i32, i32
  }
  func.func @transform_4(%arg0: i32) -> (i32, i32, i32) {
    %c0_i32 = arith.constant 0 : i32
    %c0_i32_0 = arith.constant 0 : i32
    %c0_i32_1 = arith.constant 0 : i32
    %c0_i32_2 = arith.constant 0 : i32
    return %c0_i32, %c0_i32_0, %c0_i32_1 : i32, i32, i32
  }
  func.func @transform_5(%arg0: i32) -> (i32, i32) {
    %c0_i32 = arith.constant 0 : i32
    %c0_i32_0 = arith.constant 0 : i32
    %c0_i32_1 = arith.constant 0 : i32
    return %c0_i32, %c0_i32_0 : i32, i32
  }
  func.func @transform_6(%arg0: i32) -> (i32, i32, i32) {
    %c0_i32 = arith.constant 0 : i32
    %c0_i32_0 = arith.constant 0 : i32
    %c0_i32_1 = arith.constant 0 : i32
    %c0_i32_2 = arith.constant 0 : i32
    return %c0_i32, %c0_i32_0, %c0_i32_1 : i32, i32, i32
  }
  func.func @transform_7(%arg0: i32) -> (i32, i32) {
    %c0_i32 = arith.constant 0 : i32
    %c0_i32_0 = arith.constant 0 : i32
    %c0_i32_1 = arith.constant 0 : i32
    return %c0_i32, %c0_i32_0 : i32, i32
  }
  func.func @transform_8(%arg0: i32) -> (i32, i32) {
    %c0_i32 = arith.constant 0 : i32
    %c0_i32_0 = arith.constant 0 : i32
    %c0_i32_1 = arith.constant 0 : i32
    return %c0_i32, %c0_i32_0 : i32, i32
  }
  func.func @transform_9(%arg0: i32) -> (i32, i32) {
    %c0_i32 = arith.constant 0 : i32
    %c0_i32_0 = arith.constant 0 : i32
    %c0_i32_1 = arith.constant 0 : i32
    return %c0_i32, %c0_i32_0 : i32, i32
  }
  func.func @transform_10(%arg0: i32) -> (i32, i32) {
    %c0_i32 = arith.constant 0 : i32
    %c0_i32_0 = arith.constant 0 : i32
    return %arg0, %c0_i32 : i32, i32
  }
}

</mosaic_0001>

<bundles_post_ra>
// kernel: lenet_forward.1
= control target key start
LH: loop header
LB: loop body
LE: loop exit
PB: predicated region body
PF: predicated region fallthrough
CT: control target
= control target key end

     0   :  { %15 = vsyncpa [#allocation3], 0  ;;  %s8228_s13 = smov [#allocation2]   ;;  %s10162_s0 = inlined_call_operand.vmem [shape: bf16[96,140], index: 0, kind: input, shape index: {}]   ;;  %s10163_s1 = inlined_call_operand.vmem [shape: bf16[96,140], index: 1, kind: input, shape index: {}]   ;;  %s10164_s2 = inlined_call_operand.vmem [shape: bf16[140,512], index: 2, kind: input, shape index: {}]   ;;  %s10165_s3 = inlined_call_operand.vmem [shape: f32[1,256], index: 3, kind: input, shape index: {}]   ;;  %s10166_s4 = inlined_call_operand.vmem [shape: bf16[5,256,512], index: 4, kind: input, shape index: {}]   ;;  %s10167_s5 = inlined_call_operand.vmem [shape: f32[1,256], index: 5, kind: input, shape index: {}]   ;;  %s10168_s6 = inlined_call_operand.hbm [shape: bf16[4,256,512], index: 6, kind: input, shape index: {}]   ;;  %s10169_s7 = inlined_call_operand.vmem [shape: f32[1,512], index: 7, kind: input, shape index: {}]   ;;  %s10170_s8 = inlined_call_operand.vmem [shape: bf16[512,128], index: 8, kind: input, shape index: {}]   ;;  %s10171_s9 = inlined_call_operand.vmem [shape: f32[1,128], index: 9, kind: input, shape index: {}]   ;;  %s10172_s10 = inlined_call_operand.vmem [shape: f32[8,128], index: 10, kind: output, shape index: {}]  }
   0x1   :  { %s33_s14 = sshll.u32 %s8228_s13, 4  ;;  %s8204_s17 = scalar_lea.hbm %s10168_s6, 32768  ;;  %s34_s14 = int_to_ptr.vmem [resolvable:$true] %s33_s14 }
   0x2   :  { %p8205_p0 = scmp.ne.s32.totalorder %s10168_s6, %s8204_s17  ;;  %p8208_p1 = scmp.lt.u32.totalorder %s8204_s17, %s10168_s6 }
   0x4   :  { %p8210_p2 = pnand %p8208_p1, %p8205_p0 }
   0x6   :  { %8213 = shalt.err (!%p8210_p2)
}
   0x7   :  { %s8214_s22 = scalar_lea.vmem %s34_s14, 32768  ;;  %p8219_p4 = scmp.lt.s32.totalorder %s34_s14, %s34_s14 }
   0x8   :  { %p8215_p3 = scmp.ne.s32.totalorder %s34_s14, %s8214_s22  ;;  %p8220_p5 = scmp.lt.s32.totalorder %s8214_s22, %s8214_s22 }
   0xa   :  { %p8221_p6 = por %p8220_p5, %p8219_p4 }
   0xc   :  { %p8222_p7 = pnand %p8221_p6, %p8215_p3 }
   0xe   :  { %8225 = shalt.err (!%p8222_p7)
}
   0xf   :  { %s8229_s23 = smov 256   ;;  %s8230_s24 = smov 16  }
  0x10   :  { %39 = dma.hbm_to_vmem [thread:$0]  %s10168_s6, 32768, %s34_s14, [#allocation3], %s8229_s23, %s8229_s23, %s8230_s24  }
  0x11   :  { %8226 = dma.done.wait [#allocation3], 32768  }
  0x12   :  { %8227 = vsyncadd [#allocation3], 4294934528  ;;  %v8301_v0 = vld [vmem:[%s10164_s2 + $0x4] ss:$16 sps:$4 sm:$0xff]   ;;  %v8306_v1 = vld [vmem:[%s10164_s2 + $0xc] ss:$16 sps:$4 sm:$0xff]  }
  0x13   :  { %360 = vmatprep.subr.bf16.mxu0 %v8301_v0  ;;  %v8312_v2 = vld [vmem:[%s10164_s2] ss:$16 sps:$4 sm:$0xff]   ;;  %v8317_v3 = vld [vmem:[%s10164_s2 + $0x8] ss:$16 sps:$4 sm:$0xff]   ;;  %453 = vmatprep.subr.bf16.mxu1 %v8306_v1  ;;  %v8323_v4 = vld [vmem:[%s10164_s2 + $0x24] ss:$16 sps:$4 sm:$0xff]  }
  0x14   :  { %361 = vmatpush1.bf16.msra.mxu0 %v8312_v2  ;;  %454 = vmatpush1.bf16.msra.mxu1 %v8317_v3  ;;  %v8330_v5 = vld [vmem:[%s10164_s2 + $0x2c] ss:$16 sps:$4 sm:$0xff]   ;;  %v8335_v6 = vld [vmem:[%s10164_s2 + $0x20] ss:$16 sps:$4 sm:$0xff]   ;;  %v8341_v7 = vld [vmem:[%s10164_s2 + $0x28] ss:$16 sps:$4 sm:$0xff]  }
  0x15   :  { %362 = vmatprep.subr.bf16.mxu0 %v8323_v4  ;;  %455 = vmatprep.subr.bf16.mxu1 %v8330_v5  ;;  %v8347_v8 = vld [vmem:[%s10164_s2 + $0x44] ss:$16 sps:$4 sm:$0xff]   ;;  %v8352_v9 = vld [vmem:[%s10164_s2 + $0x4c] ss:$16 sps:$4 sm:$0xff]   ;;  %v8357_v10 = vld [vmem:[%s10164_s2 + $0x40] ss:$16 sps:$4 sm:$0xff]  }
  0x16   :  { %v8362_v11 = vld [vmem:[%s10164_s2 + $0x48] ss:$16 sps:$4 sm:$0xff]   ;;  %v8369_v12 = vld [vmem:[%s10164_s2 + $0x64] ss:$16 sps:$4 sm:$0xff]   ;;  %v8376_v13 = vld [vmem:[%s10164_s2 + $0x6c] ss:$16 sps:$4 sm:$0xff]  }
  0x17   :  { %v8381_v14 = vld [vmem:[%s10164_s2 + $0x60] ss:$16 sps:$4 sm:$0xff]   ;;  %v8388_v15 = vld [vmem:[%s10164_s2 + $0x68] ss:$16 sps:$4 sm:$0xff]   ;;  %v8393_v16 = vld [vmem:[%s10164_s2 + $0x84] ss:$16 sps:$4 sm:$0xff]  }
  0x18   :  { %363 = vmatpush1.bf16.msra.mxu0 %v8335_v6  ;;  %456 = vmatpush1.bf16.msra.mxu1 %v8341_v7  ;;  %v8400_v17 = vld [vmem:[%s10164_s2 + $0x8c] ss:$16 sps:$4 sm:$0xff]   ;;  %v8405_v18 = vld [vmem:[%s10164_s2 + $0x80] ss:$16 sps:$4 sm:$0xff]   ;;  %v8410_v19 = vld [vmem:[%s10164_s2 + $0x88] ss:$16 sps:$4 sm:$0xff]  }
  0x19   :  { %364 = vmatprep.subr.bf16.mxu0 %v8347_v8  ;;  %457 = vmatprep.subr.bf16.mxu1 %v8352_v9  ;;  %v8417_v20 = vld [vmem:[%s10164_s2 + $0xa4] ss:$16 sps:$4 sm:$0xff]   ;;  %v8424_v21 = vld [vmem:[%s10164_s2 + $0xac] ss:$16 sps:$4 sm:$0xff]   ;;  %v8429_v22 = vld [vmem:[%s10164_s2 + $0xa0] ss:$16 sps:$4 sm:$0xff]  }
  0x1a   :  { %v8436_v23 = vld [vmem:[%s10164_s2 + $0xa8] ss:$16 sps:$4 sm:$0xff]   ;;  %v8441_v24 = vld [vmem:[%s10164_s2 + $0xc4] ss:$16 sps:$4 sm:$0xff]   ;;  %v8448_v25 = vld [vmem:[%s10164_s2 + $0xcc] ss:$16 sps:$4 sm:$0xff]  }
  0x1b   :  { %v8453_v26 = vld [vmem:[%s10164_s2 + $0xc0] ss:$16 sps:$4 sm:$0xff]   ;;  %v8458_v27 = vld [vmem:[%s10164_s2 + $0xc8] ss:$16 sps:$4 sm:$0xff]   ;;  %v8465_v28 = vld [vmem:[%s10164_s2 + $0xe4] ss:$16 sps:$4 sm:$0xff]  }
  0x1c   :  { %365 = vmatpush1.bf16.msra.mxu0 %v8357_v10  ;;  %458 = vmatpush1.bf16.msra.mxu1 %v8362_v11  ;;  %vm328_vm0 = vcmask 97280   ;;  %v8472_v29 = vld [vmem:[%s10164_s2 + $0xec] ss:$16 sps:$4 sm:$0xff]   ;;  %v8480_v31 = vld [vmem:[%s10164_s2 + $0xe0] ss:$16 sps:$4 sm:$0xff]   ;;  %vm347_vm1 = vcmask 1045504  }
  0x1d   :  { %366 = vmatprep.subr.bf16.mxu0 %v8369_v12  ;;  %459 = vmatprep.subr.bf16.mxu1 %v8376_v13  ;;  %v7270_v30 = vld [vmem:[%s10162_s0 + $0x4] ss:$8 sps:$4 sm:$0xff]   ;;  %v8485_v32 = vld [vmem:[%s10164_s2 + $0xe8] ss:$16 sps:$4 sm:$0xff]   ;;  %v7271_v40 = vld [vmem:[%s10162_s0 + $0x14] ss:$8 sps:$4 sm:$0xff]  }
  0x1e   :  { %v8490_v33 = vld [vmem:[%s10164_s2 + $0x104] ss:$16 sps:$4 sm:$0x3f]   ;;  %v8495_v34 = vld [vmem:[%s10164_s2 + $0x10c] ss:$16 sps:$4 sm:$0x3f]   ;;  %6135 = vmatprep.mubr.msk.bf16.mxu0 %vm328_vm0, %v7270_v30  ;;  %6142 = vmatprep.mubr.msk.bf16.mxu1 %vm328_vm0, %v7270_v30 }
  0x1f   :  { %v7266_v35 = vld [vmem:[%s10164_s2 + $0x100] ss:$16 sps:$4 sm:$0x3f]   ;;  %v7267_v36 = vld [vmem:[%s10164_s2 + $0x108] ss:$16 sps:$4 sm:$0x3f]  }
  0x20   :  { %367 = vmatpush1.bf16.msra.mxu0 %v8381_v14  ;;  %460 = vmatpush1.bf16.msra.mxu1 %v8388_v15  ;;  %v8516_v37 = vsel %vm347_vm1, %v7266_v35, 0  ;;  %v8519_v38 = vsel %vm347_vm1, %v7267_v36, 0  ;;  %v7268_v39 = vld [vmem:[%s10162_s0] ss:$8 sps:$4 sm:$0xff]   ;;  %v7273_v41 = vld [vmem:[%s10162_s0 + $0x10] ss:$8 sps:$4 sm:$0xff]  }
  0x21   :  { %368 = vmatprep.subr.bf16.mxu0 %v8393_v16  ;;  %461 = vmatprep.subr.bf16.mxu1 %v8400_v17  ;;  %v7274_v42 = vld [vmem:[%s10162_s0 + $0x24] ss:$8 sps:$4 sm:$0xff]   ;;  %v7276_v43 = vld [vmem:[%s10162_s0 + $0x20] ss:$8 sps:$4 sm:$0xff]   ;;  %v7277_v44 = vld [vmem:[%s10162_s0 + $0x34] ss:$8 sps:$4 sm:$0xff]  }
  0x22   :  { %v7279_v45 = vld [vmem:[%s10162_s0 + $0x30] ss:$8 sps:$4 sm:$0xff]   ;;  %v7280_v46 = vld [vmem:[%s10162_s0 + $0x44] ss:$8 sps:$4 sm:$0xff]   ;;  %v7282_v47 = vld [vmem:[%s10162_s0 + $0x40] ss:$8 sps:$4 sm:$0xff]  }
  0x23   :  { %v7283_v48 = vld [vmem:[%s10162_s0 + $0x54] ss:$8 sps:$4 sm:$0xff]   ;;  %v7285_v49 = vld [vmem:[%s10162_s0 + $0x50] ss:$8 sps:$4 sm:$0xff]   ;;  %v7288_v50 = vld [vmem:[%s10163_s1 + $0x4] ss:$8 sps:$4 sm:$0xff]  }
  0x24   :  { %369 = vmatpush1.bf16.msra.mxu0 %v8405_v18  ;;  %462 = vmatpush1.bf16.msra.mxu1 %v8410_v19  ;;  %v7286_v51 = vld [vmem:[%s10163_s1] ss:$8 sps:$4 sm:$0xff]   ;;  %v7289_v52 = vld [vmem:[%s10163_s1 + $0x14] ss:$8 sps:$4 sm:$0xff]   ;;  %v7291_v53 = vld [vmem:[%s10163_s1 + $0x10] ss:$8 sps:$4 sm:$0xff]  }
  0x25   :  { %370 = vmatprep.subr.bf16.mxu0 %v8417_v20  ;;  %463 = vmatprep.subr.bf16.mxu1 %v8424_v21  ;;  %v7292_v54 = vld [vmem:[%s10163_s1 + $0x24] ss:$8 sps:$4 sm:$0xff]   ;;  %v7294_v55 = vld [vmem:[%s10163_s1 + $0x20] ss:$8 sps:$4 sm:$0xff]   ;;  %v7295_v56 = vld [vmem:[%s10163_s1 + $0x34] ss:$8 sps:$4 sm:$0xff]  }
  0x26   :  { %v7297_v57 = vld [vmem:[%s10163_s1 + $0x30] ss:$8 sps:$4 sm:$0xff]   ;;  %v7298_v58 = vld [vmem:[%s10163_s1 + $0x44] ss:$8 sps:$4 sm:$0xff]   ;;  %v7300_v59 = vld [vmem:[%s10163_s1 + $0x40] ss:$8 sps:$4 sm:$0xff]  }
  0x27   :  { %v7301_v60 = vld [vmem:[%s10163_s1 + $0x54] ss:$8 sps:$4 sm:$0xff]   ;;  %v7303_v61 = vld [vmem:[%s10163_s1 + $0x50] ss:$8 sps:$4 sm:$0xff]   ;;  %vm1099_vm2 = vcmask 1043456  }
  0x28   :  { %371 = vmatpush1.bf16.msra.mxu0 %v8429_v22  ;;  %464 = vmatpush1.bf16.msra.mxu1 %v8436_v23  ;;  %v7306_v62 = vld [vmem:[%s10166_s4 + $0x204] ss:$16 sps:$4 sm:$0xff]   ;;  %v7309_v63 = vld [vmem:[%s10166_s4 + $0x20c] ss:$16 sps:$4 sm:$0xff]   ;;  %v7358_v36 = vld [vmem:[%s10166_s4 + $0x320] ss:$16 sps:$4 sm:$0xff]  }
  0x29   :  { %372 = vmatprep.subr.bf16.mxu0 %v8441_v24  ;;  %465 = vmatprep.subr.bf16.mxu1 %v8448_v25  ;;  %v7354_v30 = vld [vmem:[%s10166_s4 + $0x304] ss:$16 sps:$4 sm:$0xff]   ;;  %v7363_v35 = vld [vmem:[%s10166_s4 + $0x32c] ss:$16 sps:$4 sm:$0xff]  }
  0x2c   :  { %373 = vmatpush1.bf16.msra.mxu0 %v8453_v26  ;;  %466 = vmatpush1.bf16.msra.mxu1 %v8458_v27 }
  0x2d   :  { %374 = vmatprep.subr.bf16.mxu0 %v8465_v28  ;;  %467 = vmatprep.subr.bf16.mxu1 %v8472_v29 }
  0x30   :  { %375 = vmatpush1.bf16.msra.mxu0 %v8480_v31  ;;  %468 = vmatpush1.bf16.msra.mxu1 %v8485_v32 }
  0x31   :  { %6134 = vmatprep.subr.msk.bf16.mxu0 %vm347_vm1, %v8490_v33  ;;  %6141 = vmatprep.subr.msk.bf16.mxu1 %vm347_vm1, %v8495_v34 }
  0x34   :  { %377 = vmatpush1.bf16.msra.mxu0 %v8516_v37  ;;  %470 = vmatpush1.bf16.msra.mxu1 %v8519_v38 }
  0x35   :  { %630 = vmatprep.subr.bf16.mxu0 %v8301_v0  ;;  %723 = vmatprep.subr.bf16.mxu1 %v8306_v1  ;;  %v7304_v0 = vld [vmem:[%s10166_s4 + $0x200] ss:$16 sps:$4 sm:$0xff]   ;;  %v7307_v1 = vld [vmem:[%s10166_s4 + $0x208] ss:$16 sps:$4 sm:$0xff]  }
  0x37   :  { %393 = vmatmul.mubr.bf16.vlgmr.msra.gmra.mrb[0].mxu0 %v7268_v39  ;;  %486 = vmatmul.mubr.bf16.vlgmr.msra.gmra.mrb[0].mxu1 %v7268_v39  ;;  %v7369_v39 = vld [vmem:[%s10166_s4 + $0x34c] ss:$16 sps:$4 sm:$0xff]  }
  0x38   :  { %631 = vmatpush1.bf16.msra.mxu0 %v8312_v2  ;;  %724 = vmatpush1.bf16.msra.mxu1 %v8317_v3  ;;  %v7312_v2 = vld [vmem:[%s10166_s4 + $0x224] ss:$16 sps:$4 sm:$0xff]   ;;  %v7315_v3 = vld [vmem:[%s10166_s4 + $0x22c] ss:$16 sps:$4 sm:$0xff]  }
  0x39   :  { %632 = vmatprep.subr.bf16.mxu0 %v8323_v4  ;;  %725 = vmatprep.subr.bf16.mxu1 %v8330_v5  ;;  %v7310_v4 = vld [vmem:[%s10166_s4 + $0x220] ss:$16 sps:$4 sm:$0xff]   ;;  %v7313_v5 = vld [vmem:[%s10166_s4 + $0x228] ss:$16 sps:$4 sm:$0xff]  }
  0x3a   :  { %6136 = vmatprep.mubr.msk.bf16.mxu0 %vm328_vm0, %v7271_v40  ;;  %6143 = vmatprep.mubr.msk.bf16.mxu1 %vm328_vm0, %v7271_v40  ;;  %v7364_v40 = vld [vmem:[%s10166_s4 + $0x340] ss:$16 sps:$4 sm:$0xff]  }
  0x3c   :  { %633 = vmatpush1.bf16.msra.mxu0 %v8335_v6  ;;  %726 = vmatpush1.bf16.msra.mxu1 %v8341_v7  ;;  %v7318_v6 = vld [vmem:[%s10166_s4 + $0x244] ss:$16 sps:$4 sm:$0xff]   ;;  %v7321_v7 = vld [vmem:[%s10166_s4 + $0x24c] ss:$16 sps:$4 sm:$0xff]  }
  0x3d   :  { %634 = vmatprep.subr.bf16.mxu0 %v8347_v8  ;;  %727 = vmatprep.subr.bf16.mxu1 %v8352_v9  ;;  %v7316_v8 = vld [vmem:[%s10166_s4 + $0x240] ss:$16 sps:$4 sm:$0xff]   ;;  %v7319_v9 = vld [vmem:[%s10166_s4 + $0x248] ss:$16 sps:$4 sm:$0xff]  }
  0x3f   :  { %403 = vmatmul.mubr.bf16.gmra.mrb[4].mxu0 %v7273_v41  ;;  %496 = vmatmul.mubr.bf16.gmra.mrb[4].mxu1 %v7273_v41  ;;  %v7367_v41 = vld [vmem:[%s10166_s4 + $0x348] ss:$16 sps:$4 sm:$0xff]  }
  0x40   :  { %635 = vmatpush1.bf16.msra.mxu0 %v8357_v10  ;;  %728 = vmatpush1.bf16.msra.mxu1 %v8362_v11  ;;  %v7324_v10 = vld [vmem:[%s10166_s4 + $0x264] ss:$16 sps:$4 sm:$0xff]   ;;  %v7327_v11 = vld [vmem:[%s10166_s4 + $0x26c] ss:$16 sps:$4 sm:$0xff]  }
  0x41   :  { %6137 = vmatprep.mubr.msk.bf16.mxu0 %vm328_vm0, %v7274_v42  ;;  %6144 = vmatprep.mubr.msk.bf16.mxu1 %vm328_vm0, %v7274_v42  ;;  %v7372_v42 = vld [vmem:[%s10166_s4 + $0x364] ss:$16 sps:$4 sm:$0xff]  }
  0x42   :  { %636 = vmatprep.subr.bf16.mxu0 %v8369_v12  ;;  %729 = vmatprep.subr.bf16.mxu1 %v8376_v13  ;;  %v7322_v12 = vld [vmem:[%s10166_s4 + $0x260] ss:$16 sps:$4 sm:$0xff]   ;;  %v7325_v13 = vld [vmem:[%s10166_s4 + $0x268] ss:$16 sps:$4 sm:$0xff]  }
  0x44   :  { %637 = vmatpush1.bf16.msra.mxu0 %v8381_v14  ;;  %730 = vmatpush1.bf16.msra.mxu1 %v8388_v15  ;;  %v7330_v14 = vld [vmem:[%s10166_s4 + $0x284] ss:$16 sps:$4 sm:$0xff]   ;;  %v7333_v15 = vld [vmem:[%s10166_s4 + $0x28c] ss:$16 sps:$4 sm:$0xff]  }
  0x45   :  { %638 = vmatprep.subr.bf16.mxu0 %v8393_v16  ;;  %731 = vmatprep.subr.bf16.mxu1 %v8400_v17  ;;  %v7328_v16 = vld [vmem:[%s10166_s4 + $0x280] ss:$16 sps:$4 sm:$0xff]   ;;  %v7331_v17 = vld [vmem:[%s10166_s4 + $0x288] ss:$16 sps:$4 sm:$0xff]  }
  0x47   :  { %413 = vmatmul.mubr.bf16.gmra.mrb[8].mxu0 %v7276_v43  ;;  %506 = vmatmul.mubr.bf16.gmra.mrb[8].mxu1 %v7276_v43  ;;  %v7375_v43 = vld [vmem:[%s10166_s4 + $0x36c] ss:$16 sps:$4 sm:$0xff]  }
  0x48   :  { %6138 = vmatprep.mubr.msk.bf16.mxu0 %vm328_vm0, %v7277_v44  ;;  %6145 = vmatprep.mubr.msk.bf16.mxu1 %vm328_vm0, %v7277_v44  ;;  %v7370_v44 = vld [vmem:[%s10166_s4 + $0x360] ss:$16 sps:$4 sm:$0xff]  }
  0x49   :  { %639 = vmatpush1.bf16.msra.mxu0 %v8405_v18  ;;  %732 = vmatpush1.bf16.msra.mxu1 %v8410_v19  ;;  %v7336_v18 = vld [vmem:[%s10166_s4 + $0x2a4] ss:$16 sps:$4 sm:$0xff]   ;;  %v7339_v19 = vld [vmem:[%s10166_s4 + $0x2ac] ss:$16 sps:$4 sm:$0xff]  }
  0x4a   :  { %640 = vmatprep.subr.bf16.mxu0 %v8417_v20  ;;  %733 = vmatprep.subr.bf16.mxu1 %v8424_v21  ;;  %v7334_v20 = vld [vmem:[%s10166_s4 + $0x2a0] ss:$16 sps:$4 sm:$0xff]   ;;  %v7337_v21 = vld [vmem:[%s10166_s4 + $0x2a8] ss:$16 sps:$4 sm:$0xff]  }
  0x4d   :  { %641 = vmatpush1.bf16.msra.mxu0 %v8429_v22  ;;  %734 = vmatpush1.bf16.msra.mxu1 %v8436_v23  ;;  %v7342_v22 = vld [vmem:[%s10166_s4 + $0x2c4] ss:$16 sps:$4 sm:$0xff]   ;;  %v7345_v23 = vld [vmem:[%s10166_s4 + $0x2cc] ss:$16 sps:$4 sm:$0xff]  }
  0x4e   :  { %642 = vmatprep.subr.bf16.mxu0 %v8441_v24  ;;  %735 = vmatprep.subr.bf16.mxu1 %v8448_v25  ;;  %v7340_v24 = vld [vmem:[%s10166_s4 + $0x2c0] ss:$16 sps:$4 sm:$0xff]   ;;  %v7343_v25 = vld [vmem:[%s10166_s4 + $0x2c8] ss:$16 sps:$4 sm:$0xff]  }
  0x4f   :  { %423 = vmatmul.mubr.bf16.gmra.mrb[12].mxu0 %v7279_v45  ;;  %516 = vmatmul.mubr.bf16.gmra.mrb[12].mxu1 %v7279_v45  ;;  %v7373_v45 = vld [vmem:[%s10166_s4 + $0x368] ss:$16 sps:$4 sm:$0xff]  }
  0x50   :  { %6139 = vmatprep.mubr.msk.bf16.mxu0 %vm328_vm0, %v7280_v46  ;;  %6146 = vmatprep.mubr.msk.bf16.mxu1 %vm328_vm0, %v7280_v46  ;;  %v7378_v46 = vld [vmem:[%s10166_s4 + $0x384] ss:$16 sps:$4 sm:$0xff]  }
  0x51   :  { %643 = vmatpush1.bf16.msra.mxu0 %v8453_v26  ;;  %736 = vmatpush1.bf16.msra.mxu1 %v8458_v27  ;;  %v7348_v26 = vld [vmem:[%s10166_s4 + $0x2e4] ss:$16 sps:$4 sm:$0xff]   ;;  %v7351_v27 = vld [vmem:[%s10166_s4 + $0x2ec] ss:$16 sps:$4 sm:$0xff]  }
  0x52   :  { %644 = vmatprep.subr.bf16.mxu0 %v8465_v28  ;;  %737 = vmatprep.subr.bf16.mxu1 %v8472_v29  ;;  %v7346_v28 = vld [vmem:[%s10166_s4 + $0x2e0] ss:$16 sps:$4 sm:$0xff]   ;;  %v7349_v29 = vld [vmem:[%s10166_s4 + $0x2e8] ss:$16 sps:$4 sm:$0xff]  }
  0x55   :  { %645 = vmatpush1.bf16.msra.mxu0 %v8480_v31  ;;  %738 = vmatpush1.bf16.msra.mxu1 %v8485_v32  ;;  %v7357_v31 = vld [vmem:[%s10166_s4 + $0x30c] ss:$16 sps:$4 sm:$0xff]   ;;  %v7352_v32 = vld [vmem:[%s10166_s4 + $0x300] ss:$16 sps:$4 sm:$0xff]  }
  0x56   :  { %6160 = vmatprep.subr.msk.bf16.mxu0 %vm347_vm1, %v8490_v33  ;;  %6167 = vmatprep.subr.msk.bf16.mxu1 %vm347_vm1, %v8495_v34  ;;  %v7355_v33 = vld [vmem:[%s10166_s4 + $0x308] ss:$16 sps:$4 sm:$0xff]   ;;  %v7360_v34 = vld [vmem:[%s10166_s4 + $0x324] ss:$16 sps:$4 sm:$0xff]  }
  0x57   :  { %433 = vmatmul.mubr.bf16.gmra.mrb[16].mxu0 %v7282_v47  ;;  %526 = vmatmul.mubr.bf16.gmra.mrb[16].mxu1 %v7282_v47  ;;  %v7381_v47 = vld [vmem:[%s10166_s4 + $0x38c] ss:$16 sps:$4 sm:$0xff]  }
  0x58   :  { %6140 = vmatprep.mubr.msk.bf16.mxu0 %vm328_vm0, %v7283_v48  ;;  %6147 = vmatprep.mubr.msk.bf16.mxu1 %vm328_vm0, %v7283_v48  ;;  %v7376_v48 = vld [vmem:[%s10166_s4 + $0x380] ss:$16 sps:$4 sm:$0xff]  }
  0x59   :  { %647 = vmatpush1.bf16.msra.mxu0 %v8516_v37  ;;  %740 = vmatpush1.bf16.msra.mxu1 %v8519_v38  ;;  %v7361_v37 = vld [vmem:[%s10166_s4 + $0x328] ss:$16 sps:$4 sm:$0xff]   ;;  %v7366_v38 = vld [vmem:[%s10166_s4 + $0x344] ss:$16 sps:$4 sm:$0xff]  }
  0x5a   :  { %1446 = vmatprep.subr.bf16.mxu0 %v7306_v62  ;;  %1519 = vmatprep.subr.bf16.mxu1 %v7309_v63  ;;  %v7402_v62 = vld [vmem:[%s10166_s4 + $0x4] ss:$16 sps:$4 sm:$0xff]   ;;  %v7405_v63 = vld [vmem:[%s10166_s4 + $0xc] ss:$16 sps:$4 sm:$0xff]  }
  0x5f   :  { %443 = vmatmul.mubr.bf16.gmra.mrb[20].mxu0 %v7285_v49  ;;  %536 = vmatmul.mubr.bf16.gmra.mrb[20].mxu1 %v7285_v49  ;;  %v7379_v49 = vld [vmem:[%s10166_s4 + $0x388] ss:$16 sps:$4 sm:$0xff]  }
  0x60   :  { %6161 = vmatprep.mubr.msk.bf16.mxu0 %vm328_vm0, %v7288_v50  ;;  %6168 = vmatprep.mubr.msk.bf16.mxu1 %vm328_vm0, %v7288_v50  ;;  %v7384_v50 = vld [vmem:[%s10166_s4 + $0x3a4] ss:$16 sps:$4 sm:$0xff]  }
  0x67   :  { %663 = vmatmul.mubr.bf16.vlgmr.msra.gmra.mrb[24].mxu0 %v7286_v51  ;;  %756 = vmatmul.mubr.bf16.vlgmr.msra.gmra.mrb[24].mxu1 %v7286_v51  ;;  %v7387_v51 = vld [vmem:[%s10166_s4 + $0x3ac] ss:$16 sps:$4 sm:$0xff]  }
  0x68   :  { %6162 = vmatprep.mubr.msk.bf16.mxu0 %vm328_vm0, %v7289_v52  ;;  %6169 = vmatprep.mubr.msk.bf16.mxu1 %vm328_vm0, %v7289_v52  ;;  %v7382_v52 = vld [vmem:[%s10166_s4 + $0x3a0] ss:$16 sps:$4 sm:$0xff]  }
  0x69   :  { %1447 = vmatpush1.bf16.msra.mxu0 %v7304_v0  ;;  %1520 = vmatpush1.bf16.msra.mxu1 %v7307_v1 }
  0x6a   :  { %1448 = vmatprep.subr.bf16.mxu0 %v7312_v2  ;;  %1521 = vmatprep.subr.bf16.mxu1 %v7315_v3 }
  0x6d   :  { %1449 = vmatpush1.bf16.msra.mxu0 %v7310_v4  ;;  %1522 = vmatpush1.bf16.msra.mxu1 %v7313_v5 }
  0x6e   :  { %1450 = vmatprep.subr.bf16.mxu0 %v7318_v6  ;;  %1523 = vmatprep.subr.bf16.mxu1 %v7321_v7 }
  0x6f   :  { %673 = vmatmul.mubr.bf16.gmra.mrb[28].mxu0 %v7291_v53  ;;  %766 = vmatmul.mubr.bf16.gmra.mrb[28].mxu1 %v7291_v53  ;;  %v7385_v53 = vld [vmem:[%s10166_s4 + $0x3a8] ss:$16 sps:$4 sm:$0xff]  }
  0x70   :  { %6163 = vmatprep.mubr.msk.bf16.mxu0 %vm328_vm0, %v7292_v54  ;;  %6170 = vmatprep.mubr.msk.bf16.mxu1 %vm328_vm0, %v7292_v54  ;;  %v7390_v54 = vld [vmem:[%s10166_s4 + $0x3c4] ss:$16 sps:$4 sm:$0xff]  }
  0x71   :  { %1451 = vmatpush1.bf16.msra.mxu0 %v7316_v8  ;;  %1524 = vmatpush1.bf16.msra.mxu1 %v7319_v9 }
  0x72   :  { %1452 = vmatprep.subr.bf16.mxu0 %v7324_v10  ;;  %1525 = vmatprep.subr.bf16.mxu1 %v7327_v11 }
  0x75   :  { %1453 = vmatpush1.bf16.msra.mxu0 %v7322_v12  ;;  %1526 = vmatpush1.bf16.msra.mxu1 %v7325_v13 }
  0x76   :  { %1454 = vmatprep.subr.bf16.mxu0 %v7330_v14  ;;  %1527 = vmatprep.subr.bf16.mxu1 %v7333_v15 }
  0x77   :  { %683 = vmatmul.mubr.bf16.gmra.mrb[32].mxu0 %v7294_v55  ;;  %776 = vmatmul.mubr.bf16.gmra.mrb[32].mxu1 %v7294_v55  ;;  %v7393_v55 = vld [vmem:[%s10166_s4 + $0x3cc] ss:$16 sps:$4 sm:$0xff]  }
  0x78   :  { %6164 = vmatprep.mubr.msk.bf16.mxu0 %vm328_vm0, %v7295_v56  ;;  %6171 = vmatprep.mubr.msk.bf16.mxu1 %vm328_vm0, %v7295_v56  ;;  %v7388_v56 = vld [vmem:[%s10166_s4 + $0x3c0] ss:$16 sps:$4 sm:$0xff]  }
  0x79   :  { %1455 = vmatpush1.bf16.msra.mxu0 %v7328_v16  ;;  %1528 = vmatpush1.bf16.msra.mxu1 %v7331_v17 }
  0x7a   :  { %1456 = vmatprep.subr.bf16.mxu0 %v7336_v18  ;;  %1529 = vmatprep.subr.bf16.mxu1 %v7339_v19 }
  0x7d   :  { %1457 = vmatpush1.bf16.msra.mxu0 %v7334_v20  ;;  %1530 = vmatpush1.bf16.msra.mxu1 %v7337_v21 }
  0x7e   :  { %1458 = vmatprep.subr.bf16.mxu0 %v7342_v22  ;;  %1531 = vmatprep.subr.bf16.mxu1 %v7345_v23 }
  0x7f   :  { %693 = vmatmul.mubr.bf16.gmra.mrb[36].mxu0 %v7297_v57  ;;  %786 = vmatmul.mubr.bf16.gmra.mrb[36].mxu1 %v7297_v57  ;;  %v7391_v57 = vld [vmem:[%s10166_s4 + $0x3c8] ss:$16 sps:$4 sm:$0xff]  }
  0x80   :  { %6165 = vmatprep.mubr.msk.bf16.mxu0 %vm328_vm0, %v7298_v58  ;;  %6172 = vmatprep.mubr.msk.bf16.mxu1 %vm328_vm0, %v7298_v58  ;;  %v7396_v58 = vld [vmem:[%s10166_s4 + $0x3e4] ss:$16 sps:$4 sm:$0xff]  }
  0x81   :  { %1459 = vmatpush1.bf16.msra.mxu0 %v7340_v24  ;;  %1532 = vmatpush1.bf16.msra.mxu1 %v7343_v25 }
  0x82   :  { %1460 = vmatprep.subr.bf16.mxu0 %v7348_v26  ;;  %1533 = vmatprep.subr.bf16.mxu1 %v7351_v27 }
  0x85   :  { %1461 = vmatpush1.bf16.msra.mxu0 %v7346_v28  ;;  %1534 = vmatpush1.bf16.msra.mxu1 %v7349_v29 }
  0x86   :  { %1462 = vmatprep.subr.bf16.mxu0 %v7354_v30  ;;  %1535 = vmatprep.subr.bf16.mxu1 %v7357_v31 }
  0x87   :  { %703 = vmatmul.mubr.bf16.gmra.mrb[40].mxu0 %v7300_v59  ;;  %796 = vmatmul.mubr.bf16.gmra.mrb[40].mxu1 %v7300_v59  ;;  %v7399_v59 = vld [vmem:[%s10166_s4 + $0x3ec] ss:$16 sps:$4 sm:$0xff]  }
  0x88   :  { %6166 = vmatprep.mubr.msk.bf16.mxu0 %vm328_vm0, %v7301_v60  ;;  %6173 = vmatprep.mubr.msk.bf16.mxu1 %vm328_vm0, %v7301_v60  ;;  %v7394_v60 = vld [vmem:[%s10166_s4 + $0x3e0] ss:$16 sps:$4 sm:$0xff]  }
  0x89   :  { %1463 = vmatpush1.bf16.msra.mxu0 %v7352_v32  ;;  %1536 = vmatpush1.bf16.msra.mxu1 %v7355_v33 }
  0x8a   :  { %1464 = vmatprep.subr.bf16.mxu0 %v7360_v34  ;;  %1537 = vmatprep.subr.bf16.mxu1 %v7363_v35 }
  0x8d   :  { %1465 = vmatpush1.bf16.msra.mxu0 %v7358_v36  ;;  %1538 = vmatpush1.bf16.msra.mxu1 %v7361_v37 }
  0x8e   :  { %1466 = vmatprep.subr.bf16.mxu0 %v7366_v38  ;;  %1539 = vmatprep.subr.bf16.mxu1 %v7369_v39 }
  0x8f   :  { %713 = vmatmul.mubr.bf16.gmra.mrb[44].mxu0 %v7303_v61  ;;  %806 = vmatmul.mubr.bf16.gmra.mrb[44].mxu1 %v7303_v61  ;;  %v7397_v61 = vld [vmem:[%s10166_s4 + $0x3e8] ss:$16 sps:$4 sm:$0xff]  }
  0x91   :  { %1467 = vmatpush1.bf16.msra.mxu0 %v7364_v40  ;;  %1540 = vmatpush1.bf16.msra.mxu1 %v7367_v41 }
  0x92   :  { %1468 = vmatprep.subr.bf16.mxu0 %v7372_v42  ;;  %1541 = vmatprep.subr.bf16.mxu1 %v7375_v43 }
  0x95   :  { %1469 = vmatpush1.bf16.msra.mxu0 %v7370_v44  ;;  %1542 = vmatpush1.bf16.msra.mxu1 %v7373_v45 }
  0x96   :  { %1470 = vmatprep.subr.bf16.mxu0 %v7378_v46  ;;  %1543 = vmatprep.subr.bf16.mxu1 %v7381_v47 }
  0x99   :  { %1471 = vmatpush1.bf16.msra.mxu0 %v7376_v48  ;;  %1544 = vmatpush1.bf16.msra.mxu1 %v7379_v49 }
  0x9a   :  { %1472 = vmatprep.subr.bf16.mxu0 %v7384_v50  ;;  %1545 = vmatprep.subr.bf16.mxu1 %v7387_v51 }
  0x9d   :  { %1473 = vmatpush1.bf16.msra.mxu0 %v7382_v52  ;;  %1546 = vmatpush1.bf16.msra.mxu1 %v7385_v53 }
  0x9e   :  { %1474 = vmatprep.subr.bf16.mxu0 %v7390_v54  ;;  %1547 = vmatprep.subr.bf16.mxu1 %v7393_v55 }
  0xa1   :  { %1475 = vmatpush1.bf16.msra.mxu0 %v7388_v56  ;;  %1548 = vmatpush1.bf16.msra.mxu1 %v7391_v57 }
  0xa2   :  { %1476 = vmatprep.subr.bf16.mxu0 %v7396_v58  ;;  %1549 = vmatprep.subr.bf16.mxu1 %v7399_v59 }
  0xa5   :  { %1477 = vmatpush1.bf16.msra.mxu0 %v7394_v60  ;;  %1550 = vmatpush1.bf16.msra.mxu1 %v7397_v61  ;;  %v10173_v60 = vlaneseq }
  0xa6   :  { %1912 = vmatprep.subr.bf16.mxu0 %v7402_v62  ;;  %1985 = vmatprep.subr.bf16.mxu1 %v7405_v63 }
  0xa7   :  { %v8981_v56 = vshrl.u32 %v10173_v60, 7  ;;  %v888_v60 = vld [vmem:[%s10165_s3] sm:$0x3] }
  0xa9   :  { %10181 = vst [vmem:[#allocation5_spill] sm:$0xff] %v8981_v56  ;;  %v9001_v47 = vsub.s32 0, %v8981_v56  ;;  %v9004_v32 = vsub.s32 1, %v8981_v56 }
  0xab   :  { %10185 = vst [vmem:[#allocation9_spill] sm:$0xff] %v9001_v47  ;;  %v9007_v23 = vrot.slane %v888_v60, %v9001_v47  ;;  %v9010_v35 = vrot.slane %v888_v60, %v9004_v32 }
 0x10a   :  { %v8850_v0 = vpop.f32.mrb[0].mxu0  ;;  %v8852_v1 = vpop.f32.mrb[0].mxu1 }
 0x10b   :  { %v816_v2 = vmax.f32 %v8850_v0, %v8852_v1  ;;  %v8856_v3 = vpop.f32.mrb[1].mxu0  ;;  %v8858_v4 = vpop.f32.mrb[1].mxu1 }
 0x10c   :  { %v8862_v6 = vpop.f32.mrb[2].mxu0  ;;  %v8864_v7 = vpop.f32.mrb[2].mxu1 }
 0x10d   :  { %v8868_v9 = vpop.f32.mrb[3].mxu0  ;;  %v8870_v10 = vpop.f32.mrb[3].mxu1 }
 0x10e   :  { %v10188_v0 = vmax.f32 %v8868_v9, %v8870_v10 }
 0x112   :  { %v8874_v12 = vpop.f32.mrb[4].mxu0  ;;  %v8876_v13 = vpop.f32.mrb[4].mxu1 }
 0x113   :  { %v8880_v15 = vpop.f32.mrb[5].mxu0  ;;  %v8882_v16 = vpop.f32.mrb[5].mxu1  ;;  %v10189_v9 = vmax.f32 %v8874_v12, %v8876_v13 }
 0x114   :  { %v8886_v18 = vpop.f32.mrb[6].mxu0  ;;  %v8888_v19 = vpop.f32.mrb[6].mxu1 }
 0x115   :  { %v8892_v21 = vpop.f32.mrb[7].mxu0  ;;  %v8894_v22 = vpop.f32.mrb[7].mxu1 }
 0x116   :  { %v10192_v12 = vmax.f32 %v8892_v21, %v8894_v22 }
 0x11a   :  { %v8898_v24 = vpop.f32.mrb[8].mxu0  ;;  %v8900_v25 = vpop.f32.mrb[8].mxu1 }
 0x11b   :  { %v8904_v27 = vpop.f32.mrb[9].mxu0  ;;  %v8906_v28 = vpop.f32.mrb[9].mxu1  ;;  %v10193_v21 = vmax.f32 %v8898_v24, %v8900_v25  ;;  %v7400_v24 = vld [vmem:[%s10166_s4] ss:$16 sps:$4 sm:$0xff]   ;;  %v7403_v25 = vld [vmem:[%s10166_s4 + $0x8] ss:$16 sps:$4 sm:$0xff]  }
 0x11c   :  { %v8910_v30 = vpop.f32.mrb[10].mxu0  ;;  %v8912_v31 = vpop.f32.mrb[10].mxu1 }
 0x11d   :  { %v8916_v33 = vpop.f32.mrb[11].mxu0  ;;  %v8918_v34 = vpop.f32.mrb[11].mxu1 }
 0x122   :  { %v8922_v36 = vpop.f32.mrb[12].mxu0  ;;  %v8924_v37 = vpop.f32.mrb[12].mxu1 }
 0x123   :  { %v8928_v39 = vpop.f32.mrb[13].mxu0  ;;  %v8930_v40 = vpop.f32.mrb[13].mxu1 }
 0x124   :  { %v8934_v42 = vpop.f32.mrb[14].mxu0  ;;  %v8936_v43 = vpop.f32.mrb[14].mxu1 }
 0x125   :  { %v8940_v45 = vpop.f32.mrb[15].mxu0  ;;  %v8942_v46 = vpop.f32.mrb[15].mxu1 }
 0x12a   :  { %v8946_v48 = vpop.f32.mrb[16].mxu0  ;;  %v8948_v49 = vpop.f32.mrb[16].mxu1 }
 0x12b   :  { %v8952_v51 = vpop.f32.mrb[17].mxu0  ;;  %v8954_v52 = vpop.f32.mrb[17].mxu1 }
 0x12c   :  { %v8958_v54 = vpop.f32.mrb[18].mxu0  ;;  %v8960_v55 = vpop.f32.mrb[18].mxu1 }
 0x12d   :  { %v8964_v57 = vpop.f32.mrb[19].mxu0  ;;  %v8966_v58 = vpop.f32.mrb[19].mxu1 }
 0x132   :  { %v8970_v61 = vpop.f32.mrb[20].mxu0  ;;  %v8972_v62 = vpop.f32.mrb[20].mxu1 }
 0x133   :  { %v8976_v53 = vpop.f32.mrb[21].mxu0  ;;  %v8978_v50 = vpop.f32.mrb[21].mxu1 }
 0x134   :  { %v8985_v44 = vpop.f32.mrb[22].mxu0  ;;  %v8987_v59 = vpop.f32.mrb[22].mxu1 }
 0x135   :  { %10182 = vst [vmem:[#allocation6_spill] sm:$0xff] %v8987_v59  ;;  %v8991_v38 = vpop.f32.mrb[23].mxu0  ;;  %v8993_v63 = vpop.f32.mrb[23].mxu1 }
 0x136   :  { %10183 = vst [vmem:[#allocation7_spill] sm:$0xff] %v8991_v38  ;;  %10184 = vst [vmem:[#allocation8_spill] sm:$0xff] %v8993_v63 }
 0x13a   :  { %v664_v29 = vpop.f32.mrb[24].mxu0  ;;  %v757_v26 = vpop.f32.mrb[24].mxu1 }
 0x13b   :  { %v840_v41 = vmax.f32 %v664_v29, %v757_v26  ;;  %v666_v20 = vpop.f32.mrb[25].mxu0  ;;  %v759_v17 = vpop.f32.mrb[25].mxu1  ;;  %v10186_v26 = vmax.f32 %v8856_v3, %v8858_v4 }
 0x13c   :  { %v841_v14 = vmax.f32 %v666_v20, %v759_v17  ;;  %v668_v11 = vpop.f32.mrb[26].mxu0  ;;  %v761_v8 = vpop.f32.mrb[26].mxu1  ;;  %v10187_v17 = vmax.f32 %v8862_v6, %v8864_v7 }
 0x13d   :  { %v864_v5 = vmax.f32 %v816_v2, %v840_v41  ;;  %v842_v56 = vmax.f32 %v668_v11, %v761_v8  ;;  %v670_v63 = vpop.f32.mrb[27].mxu0  ;;  %v763_v38 = vpop.f32.mrb[27].mxu1 }
 0x13e   :  { %v865_v29 = vmax.f32 %v10186_v26, %v841_v14  ;;  %v843_v47 = vmax.f32 %v670_v63, %v763_v38 }
 0x13f   :  { %v900_v59 = vadd.f32 %v9007_v23, %v864_v5  ;;  %v866_v20 = vmax.f32 %v10187_v17, %v842_v56 }
 0x140   :  { %v901_v60 = vadd.f32 %v9010_v35, %v865_v29  ;;  %v867_v1 = vmax.f32 %v10188_v0, %v843_v47 }
 0x141   :  { %v902_v2 = vadd.f32 %v9007_v23, %v866_v20  ;;  %v924_v4 = vmax.f32 %v900_v59, 0.0  ;;  %v10190_v59 = vmax.f32 %v8880_v15, %v8882_v16 }
 0x142   :  { %v903_v8 = vadd.f32 %v9010_v35, %v867_v1  ;;  %v674_v11 = vpop.f32.mrb[28].mxu0  ;;  %v767_v3 = vpop.f32.mrb[28].mxu1  ;;  %v925_v63 = vmax.f32 %v901_v60, 0.0 }
 0x143   :  { %v926_v14 = vmax.f32 %v902_v2, 0.0  ;;  %v844_v38 = vmax.f32 %v674_v11, %v767_v3  ;;  %v676_v5 = vpop.f32.mrb[29].mxu0  ;;  %v769_v41 = vpop.f32.mrb[29].mxu1 }
 0x144   :  { %v927_v6 = vmax.f32 %v903_v8, 0.0  ;;  %v845_v7 = vmax.f32 %v676_v5, %v769_v41  ;;  %v678_v56 = vpop.f32.mrb[30].mxu0  ;;  %v771_v26 = vpop.f32.mrb[30].mxu1  ;;  %v10191_v8 = vmax.f32 %v8886_v18, %v8888_v19 }
 0x145   :  { %v9028_v29 = vpack.c.bf16 %v926_v14, %v924_v4  ;;  %v868_v10 = vmax.f32 %v10189_v9, %v844_v38  ;;  %v846_v47 = vmax.f32 %v678_v56, %v771_v26  ;;  %v680_v17 = vpop.f32.mrb[31].mxu0  ;;  %v773_v20 = vpop.f32.mrb[31].mxu1 }
 0x146   :  { %v9033_v0 = vpack.c.bf16 %v927_v6, %v925_v63  ;;  %v869_v1 = vmax.f32 %v10190_v59, %v845_v7  ;;  %v847_v60 = vmax.f32 %v680_v17, %v773_v20  ;;  %v10194_v59 = vmax.f32 %v8904_v27, %v8906_v28 }
 0x147   :  { %v904_v2 = vadd.f32 %v9007_v23, %v868_v10  ;;  %v870_v11 = vmax.f32 %v10191_v8, %v846_v47  ;;  %v10195_v8 = vmax.f32 %v8910_v30, %v8912_v31  ;;  %v10196_v28 = vmax.f32 %v8916_v33, %v8918_v34  ;;  %v7411_v33 = vld [vmem:[%s10166_s4 + $0x2c] ss:$16 sps:$4 sm:$0xff]  }
 0x148   :  { %v905_v3 = vadd.f32 %v9010_v35, %v869_v1  ;;  %v871_v13 = vmax.f32 %v10192_v12, %v847_v60  ;;  %v1103_v30 = vrot.slane %v9033_v0, 4 }
 0x149   :  { %v906_v4 = vadd.f32 %v9007_v23, %v870_v11  ;;  %v928_v16 = vmax.f32 %v904_v2, 0.0 }
 0x14a   :  { %v907_v14 = vadd.f32 %v9010_v35, %v871_v13  ;;  %v684_v38 = vpop.f32.mrb[32].mxu0  ;;  %v777_v15 = vpop.f32.mrb[32].mxu1  ;;  %v929_v7 = vmax.f32 %v905_v3, 0.0  ;;  %v7408_v13 = vld [vmem:[%s10166_s4 + $0x24] ss:$16 sps:$4 sm:$0xff]  }
 0x14b   :  { %v930_v5 = vmax.f32 %v906_v4, 0.0  ;;  %v848_v41 = vmax.f32 %v684_v38, %v777_v15  ;;  %v686_v63 = vpop.f32.mrb[33].mxu0  ;;  %v779_v6 = vpop.f32.mrb[33].mxu1 }
 0x14c   :  { %v931_v18 = vmax.f32 %v907_v14, 0.0  ;;  %v849_v19 = vmax.f32 %v686_v63, %v779_v6  ;;  %v688_v56 = vpop.f32.mrb[34].mxu0  ;;  %v781_v26 = vpop.f32.mrb[34].mxu1  ;;  %v1100_v14 = vrot.slane %v9028_v29, 4 }
 0x14d   :  { %v9048_v9 = vpack.c.bf16 %v930_v5, %v928_v16  ;;  %v872_v22 = vmax.f32 %v10193_v21, %v848_v41  ;;  %v850_v10 = vmax.f32 %v688_v56, %v781_v26  ;;  %v690_v47 = vpop.f32.mrb[35].mxu0  ;;  %v783_v17 = vpop.f32.mrb[35].mxu1 }
 0x14e   :  { %v9053_v20 = vpack.c.bf16 %v931_v18, %v929_v7  ;;  %v873_v1 = vmax.f32 %v10194_v59, %v849_v19  ;;  %v851_v60 = vmax.f32 %v690_v47, %v783_v17  ;;  %v7406_v19 = vld [vmem:[%s10166_s4 + $0x20] ss:$16 sps:$4 sm:$0xff]   ;;  %v7409_v47 = vld [vmem:[%s10166_s4 + $0x28] ss:$16 sps:$4 sm:$0xff]   ;;  %v10197_v59 = vmax.f32 %v8922_v36, %v8924_v37 }
 0x14f   :  { %v908_v2 = vadd.f32 %v9007_v23, %v872_v22  ;;  %v874_v11 = vmax.f32 %v10195_v8, %v850_v10  ;;  %v1101_v3 = vrot.slane %v9048_v9, 4 }
 0x150   :  { %v909_v27 = vadd.f32 %v9010_v35, %v873_v1  ;;  %v875_v12 = vmax.f32 %v10196_v28, %v851_v60  ;;  %v1104_v31 = vrot.slane %v9053_v20, 4 }
 0x151   :  { %v910_v4 = vadd.f32 %v9007_v23, %v874_v11  ;;  %v932_v34 = vmax.f32 %v908_v2, 0.0  ;;  %v1102_v18 = vsel %vm1099_vm2, %v1100_v14, %v1101_v3  ;;  %v7414_v11 = vld [vmem:[%s10166_s4 + $0x44] ss:$16 sps:$4 sm:$0xff]  }
 0x152   :  { %v911_v38 = vadd.f32 %v9010_v35, %v875_v12  ;;  %v694_v15 = vpop.f32.mrb[36].mxu0  ;;  %v787_v16 = vpop.f32.mrb[36].mxu1  ;;  %v1105_v5 = vsel %vm1099_vm2, %v1103_v30, %v1104_v31  ;;  %v933_v56 = vmax.f32 %v909_v27, 0.0  ;;  %v7417_v27 = vld [vmem:[%s10166_s4 + $0x4c] ss:$16 sps:$4 sm:$0xff]   ;;  %v10198_v12 = vmax.f32 %v8928_v39, %v8930_v40 }
 0x153   :  { %v934_v41 = vmax.f32 %v910_v4, 0.0  ;;  %v852_v63 = vmax.f32 %v694_v15, %v787_v16  ;;  %v696_v6 = vpop.f32.mrb[37].mxu0  ;;  %v789_v7 = vpop.f32.mrb[37].mxu1  ;;  %1478 = vmatprep.mubr.bf16.mxu0 %v1105_v5  ;;  %1551 = vmatprep.mubr.bf16.mxu1 %v1105_v5  ;;  %v7412_v40 = vld [vmem:[%s10166_s4 + $0x40] ss:$16 sps:$4 sm:$0xff]  }
 0x154   :  { %v935_v26 = vmax.f32 %v911_v38, 0.0  ;;  %v853_v21 = vmax.f32 %v696_v6, %v789_v7  ;;  %v698_v22 = vpop.f32.mrb[38].mxu0  ;;  %v791_v10 = vpop.f32.mrb[38].mxu1  ;;  %1479 = vmatmul.mubr.bf16.vlgmr.msra.gmra.mrb[48].mxu0 %v1102_v18  ;;  %1552 = vmatmul.mubr.bf16.vlgmr.msra.gmra.mrb[48].mxu1 %v1102_v18  ;;  %v10200_v38 = vmax.f32 %v8940_v45, %v8942_v46 }
 0x155   :  { %v9094_v17 = vpack.c.bf16 %v934_v41, %v932_v34  ;;  %v876_v1 = vmax.f32 %v10197_v59, %v852_v63  ;;  %v854_v60 = vmax.f32 %v698_v22, %v791_v10  ;;  %1913 = vmatpush1.bf16.msra.mxu0 %v7400_v24  ;;  %1986 = vmatpush1.bf16.msra.mxu1 %v7403_v25  ;;  %v700_v2 = vpop.f32.mrb[39].mxu0  ;;  %v793_v8 = vpop.f32.mrb[39].mxu1  ;;  %v7418_v22 = vld [vmem:[%s10166_s4 + $0x60] ss:$16 sps:$4 sm:$0xff]  }
 0x156   :  { %v9105_v28 = vpack.c.bf16 %v935_v26, %v933_v56  ;;  %v877_v36 = vmax.f32 %v10198_v12, %v853_v21  ;;  %v855_v37 = vmax.f32 %v700_v2, %v793_v8  ;;  %1914 = vmatprep.subr.bf16.mxu0 %v7408_v13  ;;  %1987 = vmatprep.subr.bf16.mxu1 %v7411_v33  ;;  %v7415_v13 = vld [vmem:[%s10166_s4 + $0x48] ss:$16 sps:$4 sm:$0xff]   ;;  %v7423_v33 = vld [vmem:[%s10166_s4 + $0x6c] ss:$16 sps:$4 sm:$0xff]   ;;  %v7426_v8 = vld [vmem:[%s10166_s4 + $0x84] ss:$16 sps:$4 sm:$0xff]  }
 0x157   :  { %v912_v24 = vadd.f32 %v9007_v23, %v876_v1  ;;  %v10199_v25 = vmax.f32 %v8934_v42, %v8936_v43  ;;  %v1106_v4 = vrot.slane %v9094_v17, 4  ;;  %v7420_v43 = vld [vmem:[%s10166_s4 + $0x64] ss:$16 sps:$4 sm:$0xff]   ;;  %v7421_v2 = vld [vmem:[%s10166_s4 + $0x68] ss:$16 sps:$4 sm:$0xff]  }
 0x158   :  { %v913_v14 = vadd.f32 %v9010_v35, %v877_v36  ;;  %v879_v15 = vmax.f32 %v10200_v38, %v855_v37  ;;  %v1108_v39 = vrot.slane %v9105_v28, 4  ;;  %v7429_v12 = vld [vmem:[%s10166_s4 + $0x8c] ss:$16 sps:$4 sm:$0xff]   ;;  %v10203_v37 = vmax.f32 %v8958_v54, %v8960_v55  ;;  %v7424_v38 = vld [vmem:[%s10166_s4 + $0x80] ss:$16 sps:$4 sm:$0xff]  }
 0x159   :  { %v878_v30 = vmax.f32 %v10199_v25, %v854_v60  ;;  %1915 = vmatpush1.bf16.msra.mxu0 %v7406_v19  ;;  %1988 = vmatpush1.bf16.msra.mxu1 %v7409_v47  ;;  %v936_v34 = vmax.f32 %v912_v24, 0.0  ;;  %v10201_v47 = vmax.f32 %v8946_v48, %v8948_v49  ;;  %v7432_v55 = vld [vmem:[%s10166_s4 + $0xa4] ss:$16 sps:$4 sm:$0xff]  }
 0x15a   :  { %v915_v45 = vadd.f32 %v9010_v35, %v879_v15  ;;  %v704_v46 = vpop.f32.mrb[40].mxu0  ;;  %v797_v16 = vpop.f32.mrb[40].mxu1  ;;  %v9132_v5 = vsel %vm1099_vm2, %v1104_v31, %v1108_v39  ;;  %1916 = vmatprep.subr.bf16.mxu0 %v7414_v11  ;;  %1989 = vmatprep.subr.bf16.mxu1 %v7417_v27  ;;  %v9144_v31 = vsel %vm1099_vm2, %v1101_v3, %v1106_v4  ;;  %v937_v18 = vmax.f32 %v913_v14, 0.0  ;;  %v7427_v15 = vld [vmem:[%s10166_s4 + $0x88] ss:$16 sps:$4 sm:$0xff]  }
 0x15b   :  { %v914_v42 = vadd.f32 %v9007_v23, %v878_v30  ;;  %v856_v63 = vmax.f32 %v704_v46, %v797_v16  ;;  %v706_v6 = vpop.f32.mrb[41].mxu0  ;;  %v799_v7 = vpop.f32.mrb[41].mxu1  ;;  %1488 = vmatprep.mubr.bf16.mxu0 %v9132_v5  ;;  %1561 = vmatprep.mubr.bf16.mxu1 %v9132_v5  ;;  %v10202_v27 = vmax.f32 %v8952_v51, %v8954_v52 }
 0x15c   :  { %v939_v19 = vmax.f32 %v915_v45, 0.0  ;;  %v857_v56 = vmax.f32 %v706_v6, %v799_v7  ;;  %v708_v26 = vpop.f32.mrb[42].mxu0  ;;  %v801_v21 = vpop.f32.mrb[42].mxu1  ;;  %1489 = vmatmul.mubr.bf16.gmra.mrb[52].mxu0 %v9144_v31  ;;  %1562 = vmatmul.mubr.bf16.gmra.mrb[52].mxu1 %v9144_v31  ;;  %v10204_v51 = vmax.f32 %v8964_v57, %v8966_v58 }
 0x15d   :  { %v938_v41 = vmax.f32 %v914_v42, 0.0  ;;  %v880_v3 = vmax.f32 %v10201_v47, %v856_v63  ;;  %v858_v59 = vmax.f32 %v708_v26, %v801_v21  ;;  %1917 = vmatpush1.bf16.msra.mxu0 %v7412_v40  ;;  %1990 = vmatpush1.bf16.msra.mxu1 %v7415_v13  ;;  %v710_v1 = vpop.f32.mrb[43].mxu0  ;;  %v803_v60 = vpop.f32.mrb[43].mxu1  ;;  %v7435_v42 = vld [vmem:[%s10166_s4 + $0xac] ss:$16 sps:$4 sm:$0xff]  }
 0x15e   :  { %v9162_v11 = vpack.c.bf16 %v939_v19, %v937_v18  ;;  %v881_v48 = vmax.f32 %v10202_v27, %v857_v56  ;;  %v859_v49 = vmax.f32 %v710_v1, %v803_v60  ;;  %1918 = vmatprep.subr.bf16.mxu0 %v7420_v43  ;;  %1991 = vmatprep.subr.bf16.mxu1 %v7423_v33  ;;  %v7430_v18 = vld [vmem:[%s10166_s4 + $0xa0] ss:$16 sps:$4 sm:$0xff]   ;;  %v7433_v47 = vld [vmem:[%s10166_s4 + $0xa8] ss:$16 sps:$4 sm:$0xff]   ;;  %v7441_v60 = vld [vmem:[%s10166_s4 + $0xcc] ss:$16 sps:$4 sm:$0xff]  }
 0x15f   :  { %v9151_v10 = vpack.c.bf16 %v938_v41, %v936_v34  ;;  %v916_v36 = vadd.f32 %v9007_v23, %v880_v3  ;;  %v882_v24 = vmax.f32 %v10203_v37, %v858_v59  ;;  %v10205_v56 = vmax.f32 %v8970_v61, %v8972_v62  ;;  %v7438_v3 = vld [vmem:[%s10166_s4 + $0xc4] ss:$16 sps:$4 sm:$0xff]  }
 0x160   :  { %v917_v30 = vadd.f32 %v9010_v35, %v881_v48  ;;  %v883_v52 = vmax.f32 %v10204_v51, %v859_v49  ;;  %v1112_v14 = vrot.slane %v9162_v11, 4  ;;  %v10206_v1 = vmax.f32 %v8976_v53, %v8978_v50  ;;  %v10210_v50 = vld [vmem:[#allocation8_spill] sm:$0xff] }
 0x161   :  { %v1110_v25 = vrot.slane %v9151_v10, 4  ;;  %v918_v54 = vadd.f32 %v9007_v23, %v882_v24  ;;  %1919 = vmatpush1.bf16.msra.mxu0 %v7418_v22  ;;  %1992 = vmatpush1.bf16.msra.mxu1 %v7421_v2  ;;  %v940_v43 = vmax.f32 %v916_v36, 0.0  ;;  %v10209_v36 = vld [vmem:[#allocation7_spill] sm:$0xff]  ;;  %v7439_v51 = vld [vmem:[%s10166_s4 + $0xc8] ss:$16 sps:$4 sm:$0xff]  }
 0x162   :  { %v919_v57 = vadd.f32 %v9010_v35, %v883_v52  ;;  %v714_v58 = vpop.f32.mrb[44].mxu0  ;;  %v807_v40 = vpop.f32.mrb[44].mxu1  ;;  %v9192_v13 = vsel %vm1099_vm2, %v1108_v39, %v1112_v14  ;;  %1920 = vmatprep.subr.bf16.mxu0 %v7426_v8  ;;  %1993 = vmatprep.subr.bf16.mxu1 %v7429_v12  ;;  %v941_v34 = vmax.f32 %v917_v30, 0.0  ;;  %v10207_v8 = vld [vmem:[#allocation6_spill] sm:$0xff]  ;;  %v10211_v53 = vmax.f32 %v10209_v36, %v10210_v50  ;;  %v7436_v30 = vld [vmem:[%s10166_s4 + $0xc0] ss:$16 sps:$4 sm:$0xff]  }
 0x163   :  { %v942_v45 = vmax.f32 %v918_v54, 0.0  ;;  %v860_v46 = vmax.f32 %v714_v58, %v807_v40  ;;  %v716_v16 = vpop.f32.mrb[45].mxu0  ;;  %v809_v33 = vpop.f32.mrb[45].mxu1  ;;  %1498 = vmatprep.mubr.bf16.mxu0 %v9192_v13  ;;  %1571 = vmatprep.mubr.bf16.mxu1 %v9192_v13  ;;  %v9204_v39 = vsel %vm1099_vm2, %v1106_v4, %v1110_v25  ;;  %v10208_v27 = vmax.f32 %v8985_v44, %v10207_v8  ;;  %v7444_v52 = vld [vmem:[%s10166_s4 + $0xe4] ss:$16 sps:$4 sm:$0xff]  }
 0x164   :  { %v943_v41 = vmax.f32 %v919_v57, 0.0  ;;  %v861_v63 = vmax.f32 %v716_v16, %v809_v33  ;;  %v718_v6 = vpop.f32.mrb[46].mxu0  ;;  %v811_v7 = vpop.f32.mrb[46].mxu1  ;;  %1499 = vmatmul.mubr.bf16.gmra.mrb[56].mxu0 %v9204_v39  ;;  %1572 = vmatmul.mubr.bf16.gmra.mrb[56].mxu1 %v9204_v39  ;;  %v7447_v54 = vld [vmem:[%s10166_s4 + $0xec] ss:$16 sps:$4 sm:$0xff]  }
 0x165   :  { %v9211_v19 = vpack.c.bf16 %v942_v45, %v940_v43  ;;  %v884_v4 = vmax.f32 %v10205_v56, %v860_v46  ;;  %v862_v26 = vmax.f32 %v718_v6, %v811_v7  ;;  %1921 = vmatpush1.bf16.msra.mxu0 %v7424_v38  ;;  %1994 = vmatpush1.bf16.msra.mxu1 %v7427_v15  ;;  %v720_v21 = vpop.f32.mrb[47].mxu0  ;;  %v813_v22 = vpop.f32.mrb[47].mxu1  ;;  %v7442_v58 = vld [vmem:[%s10166_s4 + $0xe0] ss:$16 sps:$4 sm:$0xff]   ;;  %v7445_v40 = vld [vmem:[%s10166_s4 + $0xe8] ss:$16 sps:$4 sm:$0xff]  }
 0x166   :  { %v9222_v59 = vpack.c.bf16 %v943_v41, %v941_v34  ;;  %v885_v61 = vmax.f32 %v10206_v1, %v861_v63  ;;  %v863_v62 = vmax.f32 %v720_v21, %v813_v22  ;;  %1922 = vmatprep.subr.bf16.mxu0 %v7432_v55  ;;  %1995 = vmatprep.subr.bf16.mxu1 %v7435_v42  ;;  %v7453_v43 = vld [vmem:[%s10166_s4 + $0x10c] ss:$16 sps:$4 sm:$0xff]   ;;  %v7448_v33 = vld [vmem:[%s10166_s4 + $0x100] ss:$16 sps:$4 sm:$0xff]   ;;  %v7451_v34 = vld [vmem:[%s10166_s4 + $0x108] ss:$16 sps:$4 sm:$0xff]  }
 0x167   :  { %v920_v2 = vadd.f32 %v9007_v23, %v884_v4  ;;  %v886_v48 = vmax.f32 %v10208_v27, %v862_v26  ;;  %v1114_v49 = vrot.slane %v9211_v19, 4  ;;  %v7459_v63 = vld [vmem:[%s10166_s4 + $0x12c] ss:$16 sps:$4 sm:$0xff]   ;;  %v7454_v7 = vld [vmem:[%s10166_s4 + $0x120] ss:$16 sps:$4 sm:$0xff]  }
 0x168   :  { %v921_v12 = vadd.f32 %v9010_v35, %v885_v61  ;;  %v887_v37 = vmax.f32 %v10211_v53, %v863_v62  ;;  %v1116_v24 = vrot.slane %v9222_v59, 4  ;;  %v7462_v56 = vld [vmem:[%s10166_s4 + $0x144] ss:$16 sps:$4 sm:$0xff]   ;;  %v7465_v4 = vld [vmem:[%s10166_s4 + $0x14c] ss:$16 sps:$4 sm:$0xff]  }
 0x169   :  { %v922_v44 = vadd.f32 %v9007_v23, %v886_v48  ;;  %1923 = vmatpush1.bf16.msra.mxu0 %v7430_v18  ;;  %1996 = vmatpush1.bf16.msra.mxu1 %v7433_v47  ;;  %v944_v55 = vmax.f32 %v920_v2, 0.0  ;;  %v9262_v23 = vsel %vm1099_vm2, %v1110_v25, %v1114_v49  ;;  %v7450_v25 = vld [vmem:[%s10166_s4 + $0x104] ss:$16 sps:$4 sm:$0xff]   ;;  %v7457_v18 = vld [vmem:[%s10166_s4 + $0x128] ss:$16 sps:$4 sm:$0xff]  }
 0x16a   :  { %v923_v38 = vadd.f32 %v9010_v35, %v887_v37  ;;  %v9252_v15 = vsel %vm1099_vm2, %v1112_v14, %v1116_v24  ;;  %1924 = vmatprep.subr.bf16.mxu0 %v7438_v3  ;;  %1997 = vmatprep.subr.bf16.mxu1 %v7441_v60  ;;  %v945_v35 = vmax.f32 %v921_v12, 0.0  ;;  %v7460_v26 = vld [vmem:[%s10166_s4 + $0x140] ss:$16 sps:$4 sm:$0xff]   ;;  %v7463_v21 = vld [vmem:[%s10166_s4 + $0x148] ss:$16 sps:$4 sm:$0xff]  }
 0x16b   :  { %v946_v57 = vmax.f32 %v922_v44, 0.0  ;;  %1508 = vmatprep.mubr.bf16.mxu0 %v9252_v15  ;;  %1581 = vmatprep.mubr.bf16.mxu1 %v9252_v15  ;;  %v7468_v22 = vld [vmem:[%s10166_s4 + $0x164] ss:$16 sps:$4 sm:$0xff]   ;;  %v7471_v47 = vld [vmem:[%s10166_s4 + $0x16c] ss:$16 sps:$4 sm:$0xff]  }
 0x16c   :  { %v947_v14 = vmax.f32 %v923_v38, 0.0  ;;  %1509 = vmatmul.mubr.bf16.gmra.mrb[60].mxu0 %v9262_v23  ;;  %1582 = vmatmul.mubr.bf16.gmra.mrb[60].mxu1 %v9262_v23  ;;  %v7466_v3 = vld [vmem:[%s10166_s4 + $0x160] ss:$16 sps:$4 sm:$0xff]   ;;  %v7469_v1 = vld [vmem:[%s10166_s4 + $0x168] ss:$16 sps:$4 sm:$0xff]  }
 0x16d   :  { %v9272_v42 = vpack.c.bf16 %v946_v57, %v944_v55  ;;  %1925 = vmatpush1.bf16.msra.mxu0 %v7436_v30  ;;  %1998 = vmatpush1.bf16.msra.mxu1 %v7439_v51  ;;  %v7474_v61 = vld [vmem:[%s10166_s4 + $0x184] ss:$16 sps:$4 sm:$0xff]   ;;  %v7477_v62 = vld [vmem:[%s10166_s4 + $0x18c] ss:$16 sps:$4 sm:$0xff]   ;;  %v7472_v60 = vld [vmem:[%s10166_s4 + $0x180] ss:$16 sps:$4 sm:$0xff]  }
 0x16e   :  { %v9280_v45 = vpack.c.bf16 %v947_v14, %v945_v35  ;;  %1944 = vmatprep.mubr.bf16.mxu0 %v9033_v0  ;;  %2017 = vmatprep.mubr.bf16.mxu1 %v9033_v0  ;;  %v7456_v0 = vld [vmem:[%s10166_s4 + $0x124] ss:$16 sps:$4 sm:$0xff]   ;;  %v7475_v2 = vld [vmem:[%s10166_s4 + $0x188] ss:$16 sps:$4 sm:$0xff]   ;;  %v7483_v27 = vld [vmem:[%s10166_s4 + $0x1ac] ss:$16 sps:$4 sm:$0xff]  }
 0x16f   :  { %1926 = vmatprep.subr.bf16.mxu0 %v7444_v52  ;;  %1999 = vmatprep.subr.bf16.mxu1 %v7447_v54  ;;  %v2688_v46 = vrot.slane %v9272_v42, 4  ;;  %v7480_v8 = vld [vmem:[%s10166_s4 + $0x1a4] ss:$16 sps:$4 sm:$0xff]   ;;  %v7478_v48 = vld [vmem:[%s10166_s4 + $0x1a0] ss:$16 sps:$4 sm:$0xff]  }
 0x170   :  { %v2690_v16 = vrot.slane %v9280_v45, 4  ;;  %v7486_v12 = vld [vmem:[%s10166_s4 + $0x1c4] ss:$16 sps:$4 sm:$0xff]   ;;  %v7489_v36 = vld [vmem:[%s10166_s4 + $0x1cc] ss:$16 sps:$4 sm:$0xff]  }
 0x171   :  { %1927 = vmatpush1.bf16.msra.mxu0 %v7442_v58  ;;  %2000 = vmatpush1.bf16.msra.mxu1 %v7445_v40  ;;  %v9293_v41 = vsel %vm1099_vm2, %v1114_v49, %v2688_v46  ;;  %v7481_v49 = vld [vmem:[%s10166_s4 + $0x1a8] ss:$16 sps:$4 sm:$0xff]   ;;  %v7484_v50 = vld [vmem:[%s10166_s4 + $0x1c0] ss:$16 sps:$4 sm:$0xff]   ;;  %v7492_v37 = vld [vmem:[%s10166_s4 + $0x1e4] ss:$16 sps:$4 sm:$0xff]  }
 0x172   :  { %1928 = vmatprep.subr.bf16.mxu0 %v7450_v25  ;;  %2001 = vmatprep.subr.bf16.mxu1 %v7453_v43  ;;  %v9302_v6 = vsel %vm1099_vm2, %v1116_v24, %v2690_v16  ;;  %v7487_v53 = vld [vmem:[%s10166_s4 + $0x1c8] ss:$16 sps:$4 sm:$0xff]   ;;  %v7495_v24 = vld [vmem:[%s10166_s4 + $0x1ec] ss:$16 sps:$4 sm:$0xff]   ;;  %v7490_v30 = vld [vmem:[%s10166_s4 + $0x1e0] ss:$16 sps:$4 sm:$0xff]  }
 0x173   :  { %v7493_v51 = vld [vmem:[%s10166_s4 + $0x1e8] ss:$16 sps:$4 sm:$0xff]   ;;  %v7498_v44 = vld [vmem:[%s10166_s4 + $0x404] ss:$16 sps:$4 sm:$0xff]   ;;  %v7501_v52 = vld [vmem:[%s10166_s4 + $0x40c] ss:$16 sps:$4 sm:$0xff]  }
 0x174   :  { %v7496_v38 = vld [vmem:[%s10166_s4 + $0x400] ss:$16 sps:$4 sm:$0xff]   ;;  %v7499_v54 = vld [vmem:[%s10166_s4 + $0x408] ss:$16 sps:$4 sm:$0xff]   ;;  %v7504_v55 = vld [vmem:[%s10166_s4 + $0x424] ss:$16 sps:$4 sm:$0xff]  }
 0x175   :  { %1929 = vmatpush1.bf16.msra.mxu0 %v7448_v33  ;;  %2002 = vmatpush1.bf16.msra.mxu1 %v7451_v34  ;;  %v7507_v57 = vld [vmem:[%s10166_s4 + $0x42c] ss:$16 sps:$4 sm:$0xff]   ;;  %v7502_v35 = vld [vmem:[%s10166_s4 + $0x420] ss:$16 sps:$4 sm:$0xff]   ;;  %v7505_v14 = vld [vmem:[%s10166_s4 + $0x428] ss:$16 sps:$4 sm:$0xff]  }
 0x176   :  { %1930 = vmatprep.subr.bf16.mxu0 %v7456_v0  ;;  %2003 = vmatprep.subr.bf16.mxu1 %v7459_v63  ;;  %v7513_v58 = vld [vmem:[%s10166_s4 + $0x44c] ss:$16 sps:$4 sm:$0xff]   ;;  %v7508_v40 = vld [vmem:[%s10166_s4 + $0x440] ss:$16 sps:$4 sm:$0xff]   ;;  %v7511_v25 = vld [vmem:[%s10166_s4 + $0x448] ss:$16 sps:$4 sm:$0xff]  }
 0x177   :  { %v7516_v43 = vld [vmem:[%s10166_s4 + $0x464] ss:$16 sps:$4 sm:$0xff]   ;;  %v7519_v46 = vld [vmem:[%s10166_s4 + $0x46c] ss:$16 sps:$4 sm:$0xff]   ;;  %v7514_v16 = vld [vmem:[%s10166_s4 + $0x460] ss:$16 sps:$4 sm:$0xff]  }
 0x178   :  { %v7517_v33 = vld [vmem:[%s10166_s4 + $0x468] ss:$16 sps:$4 sm:$0xff]   ;;  %v7522_v34 = vld [vmem:[%s10166_s4 + $0x484] ss:$16 sps:$4 sm:$0xff]   ;;  %v7525_v0 = vld [vmem:[%s10166_s4 + $0x48c] ss:$16 sps:$4 sm:$0xff]  }
 0x179   :  { %1931 = vmatpush1.bf16.msra.mxu0 %v7454_v7  ;;  %2004 = vmatpush1.bf16.msra.mxu1 %v7457_v18  ;;  %v7520_v63 = vld [vmem:[%s10166_s4 + $0x480] ss:$16 sps:$4 sm:$0xff]   ;;  %v7523_v7 = vld [vmem:[%s10166_s4 + $0x488] ss:$16 sps:$4 sm:$0xff]   ;;  %v7528_v18 = vld [vmem:[%s10166_s4 + $0x4a4] ss:$16 sps:$4 sm:$0xff]  }
 0x17a   :  { %1932 = vmatprep.subr.bf16.mxu0 %v7462_v56  ;;  %2005 = vmatprep.subr.bf16.mxu1 %v7465_v4  ;;  %v7531_v56 = vld [vmem:[%s10166_s4 + $0x4ac] ss:$16 sps:$4 sm:$0xff]   ;;  %v7526_v4 = vld [vmem:[%s10166_s4 + $0x4a0] ss:$16 sps:$4 sm:$0xff]  }
 0x17d   :  { %1933 = vmatpush1.bf16.msra.mxu0 %v7460_v26  ;;  %2006 = vmatpush1.bf16.msra.mxu1 %v7463_v21  ;;  %v7529_v26 = vld [vmem:[%s10166_s4 + $0x4a8] ss:$16 sps:$4 sm:$0xff]   ;;  %v7534_v21 = vld [vmem:[%s10166_s4 + $0x4c4] ss:$16 sps:$4 sm:$0xff]  }
 0x17e   :  { %1934 = vmatprep.subr.bf16.mxu0 %v7468_v22  ;;  %2007 = vmatprep.subr.bf16.mxu1 %v7471_v47  ;;  %v7537_v22 = vld [vmem:[%s10166_s4 + $0x4cc] ss:$16 sps:$4 sm:$0xff]   ;;  %v7532_v47 = vld [vmem:[%s10166_s4 + $0x4c0] ss:$16 sps:$4 sm:$0xff]  }
 0x181   :  { %1935 = vmatpush1.bf16.msra.mxu0 %v7466_v3  ;;  %2008 = vmatpush1.bf16.msra.mxu1 %v7469_v1  ;;  %v7535_v3 = vld [vmem:[%s10166_s4 + $0x4c8] ss:$16 sps:$4 sm:$0xff]   ;;  %v7540_v1 = vld [vmem:[%s10166_s4 + $0x4e4] ss:$16 sps:$4 sm:$0xff]  }
 0x182   :  { %1936 = vmatprep.subr.bf16.mxu0 %v7474_v61  ;;  %2009 = vmatprep.subr.bf16.mxu1 %v7477_v62  ;;  %v7543_v61 = vld [vmem:[%s10166_s4 + $0x4ec] ss:$16 sps:$4 sm:$0xff]   ;;  %v7538_v62 = vld [vmem:[%s10166_s4 + $0x4e0] ss:$16 sps:$4 sm:$0xff]  }
 0x185   :  { %1937 = vmatpush1.bf16.msra.mxu0 %v7472_v60  ;;  %2010 = vmatpush1.bf16.msra.mxu1 %v7475_v2  ;;  %v7541_v60 = vld [vmem:[%s10166_s4 + $0x4e8] ss:$16 sps:$4 sm:$0xff]   ;;  %v7546_v2 = vld [vmem:[%s10166_s4 + $0x504] ss:$16 sps:$4 sm:$0xff]  }
 0x186   :  { %1938 = vmatprep.subr.bf16.mxu0 %v7480_v8  ;;  %2011 = vmatprep.subr.bf16.mxu1 %v7483_v27  ;;  %v7544_v8 = vld [vmem:[%s10166_s4 + $0x500] ss:$16 sps:$4 sm:$0xff]   ;;  %v7547_v27 = vld [vmem:[%s10166_s4 + $0x508] ss:$16 sps:$4 sm:$0xff]  }
 0x189   :  { %1939 = vmatpush1.bf16.msra.mxu0 %v7478_v48  ;;  %2012 = vmatpush1.bf16.msra.mxu1 %v7481_v49  ;;  %v7552_v48 = vld [vmem:[%s10166_s4 + $0x524] ss:$16 sps:$4 sm:$0xff]   ;;  %v7555_v49 = vld [vmem:[%s10166_s4 + $0x52c] ss:$16 sps:$4 sm:$0xff]  }
 0x18a   :  { %1940 = vmatprep.subr.bf16.mxu0 %v7486_v12  ;;  %2013 = vmatprep.subr.bf16.mxu1 %v7489_v36  ;;  %v7550_v12 = vld [vmem:[%s10166_s4 + $0x520] ss:$16 sps:$4 sm:$0xff]   ;;  %v7553_v36 = vld [vmem:[%s10166_s4 + $0x528] ss:$16 sps:$4 sm:$0xff]  }
 0x18d   :  { %1941 = vmatpush1.bf16.msra.mxu0 %v7484_v50  ;;  %2014 = vmatpush1.bf16.msra.mxu1 %v7487_v53  ;;  %v7558_v50 = vld [vmem:[%s10166_s4 + $0x544] ss:$16 sps:$4 sm:$0xff]   ;;  %v7561_v53 = vld [vmem:[%s10166_s4 + $0x54c] ss:$16 sps:$4 sm:$0xff]  }
 0x18e   :  { %1942 = vmatprep.subr.bf16.mxu0 %v7492_v37  ;;  %2015 = vmatprep.subr.bf16.mxu1 %v7495_v24  ;;  %v7556_v37 = vld [vmem:[%s10166_s4 + $0x540] ss:$16 sps:$4 sm:$0xff]   ;;  %v7559_v24 = vld [vmem:[%s10166_s4 + $0x548] ss:$16 sps:$4 sm:$0xff]  }
 0x191   :  { %1943 = vmatpush1.bf16.msra.mxu0 %v7490_v30  ;;  %2016 = vmatpush1.bf16.msra.mxu1 %v7493_v51  ;;  %v7564_v30 = vld [vmem:[%s10166_s4 + $0x564] ss:$16 sps:$4 sm:$0xff]   ;;  %v7567_v51 = vld [vmem:[%s10166_s4 + $0x56c] ss:$16 sps:$4 sm:$0xff]  }
 0x192   :  { %2443 = vmatprep.subr.bf16.mxu0 %v7498_v44  ;;  %2516 = vmatprep.subr.bf16.mxu1 %v7501_v52  ;;  %v7562_v44 = vld [vmem:[%s10166_s4 + $0x560] ss:$16 sps:$4 sm:$0xff]   ;;  %v7565_v52 = vld [vmem:[%s10166_s4 + $0x568] ss:$16 sps:$4 sm:$0xff]  }
 0x194   :  { %1945 = vmatmul.mubr.bf16.vlgmr.msra.gmra.mrb[48].mxu0 %v9028_v29  ;;  %2018 = vmatmul.mubr.bf16.vlgmr.msra.gmra.mrb[48].mxu1 %v9028_v29  ;;  %v7510_v29 = vld [vmem:[%s10166_s4 + $0x444] ss:$16 sps:$4 sm:$0xff]  }
 0x195   :  { %1954 = vmatprep.mubr.bf16.mxu0 %v9053_v20  ;;  %2027 = vmatprep.mubr.bf16.mxu1 %v9053_v20 }
 0x196   :  { %2444 = vmatpush1.bf16.msra.mxu0 %v7496_v38  ;;  %2517 = vmatpush1.bf16.msra.mxu1 %v7499_v54  ;;  %v7570_v38 = vld [vmem:[%s10166_s4 + $0x584] ss:$16 sps:$4 sm:$0xff]   ;;  %v7573_v54 = vld [vmem:[%s10166_s4 + $0x58c] ss:$16 sps:$4 sm:$0xff]  }
 0x197   :  { %2445 = vmatprep.subr.bf16.mxu0 %v7504_v55  ;;  %2518 = vmatprep.subr.bf16.mxu1 %v7507_v57  ;;  %v7568_v55 = vld [vmem:[%s10166_s4 + $0x580] ss:$16 sps:$4 sm:$0xff]   ;;  %v7571_v57 = vld [vmem:[%s10166_s4 + $0x588] ss:$16 sps:$4 sm:$0xff]  }
 0x19a   :  { %2446 = vmatpush1.bf16.msra.mxu0 %v7502_v35  ;;  %2519 = vmatpush1.bf16.msra.mxu1 %v7505_v14  ;;  %v7576_v35 = vld [vmem:[%s10166_s4 + $0x5a4] ss:$16 sps:$4 sm:$0xff]   ;;  %v7579_v14 = vld [vmem:[%s10166_s4 + $0x5ac] ss:$16 sps:$4 sm:$0xff]  }
 0x19b   :  { %2447 = vmatprep.subr.bf16.mxu0 %v7510_v29  ;;  %2520 = vmatprep.subr.bf16.mxu1 %v7513_v58  ;;  %v7574_v29 = vld [vmem:[%s10166_s4 + $0x5a0] ss:$16 sps:$4 sm:$0xff]   ;;  %v7577_v58 = vld [vmem:[%s10166_s4 + $0x5a8] ss:$16 sps:$4 sm:$0xff]  }
 0x19c   :  { %1955 = vmatmul.mubr.bf16.gmra.mrb[52].mxu0 %v9048_v9  ;;  %2028 = vmatmul.mubr.bf16.gmra.mrb[52].mxu1 %v9048_v9 }
 0x19d   :  { %1964 = vmatprep.mubr.bf16.mxu0 %v9105_v28  ;;  %2037 = vmatprep.mubr.bf16.mxu1 %v9105_v28 }
 0x19e   :  { %2448 = vmatpush1.bf16.msra.mxu0 %v7508_v40  ;;  %2521 = vmatpush1.bf16.msra.mxu1 %v7511_v25  ;;  %v7582_v40 = vld [vmem:[%s10166_s4 + $0x5c4] ss:$16 sps:$4 sm:$0xff]   ;;  %v7585_v25 = vld [vmem:[%s10166_s4 + $0x5cc] ss:$16 sps:$4 sm:$0xff]  }
 0x19f   :  { %2449 = vmatprep.subr.bf16.mxu0 %v7516_v43  ;;  %2522 = vmatprep.subr.bf16.mxu1 %v7519_v46  ;;  %v7580_v43 = vld [vmem:[%s10166_s4 + $0x5c0] ss:$16 sps:$4 sm:$0xff]   ;;  %v7583_v46 = vld [vmem:[%s10166_s4 + $0x5c8] ss:$16 sps:$4 sm:$0xff]  }
 0x1a2   :  { %2450 = vmatpush1.bf16.msra.mxu0 %v7514_v16  ;;  %2523 = vmatpush1.bf16.msra.mxu1 %v7517_v33  ;;  %v7588_v16 = vld [vmem:[%s10166_s4 + $0x5e4] ss:$16 sps:$4 sm:$0xff]   ;;  %v7591_v33 = vld [vmem:[%s10166_s4 + $0x5ec] ss:$16 sps:$4 sm:$0xff]  }
 0x1a3   :  { %2451 = vmatprep.subr.bf16.mxu0 %v7522_v34  ;;  %2524 = vmatprep.subr.bf16.mxu1 %v7525_v0  ;;  %v7586_v34 = vld [vmem:[%s10166_s4 + $0x5e0] ss:$16 sps:$4 sm:$0xff]   ;;  %v7589_v0 = vld [vmem:[%s10166_s4 + $0x5e8] ss:$16 sps:$4 sm:$0xff]  }
 0x1a4   :  { %1965 = vmatmul.mubr.bf16.gmra.mrb[56].mxu0 %v9094_v17  ;;  %2038 = vmatmul.mubr.bf16.gmra.mrb[56].mxu1 %v9094_v17 }
 0x1a5   :  { %1974 = vmatprep.mubr.bf16.mxu0 %v9162_v11  ;;  %2047 = vmatprep.mubr.bf16.mxu1 %v9162_v11 }
 0x1a6   :  { %2452 = vmatpush1.bf16.msra.mxu0 %v7520_v63  ;;  %2525 = vmatpush1.bf16.msra.mxu1 %v7523_v7  ;;  %v7594_v63 = vld [vmem:[%s10166_s4 + $0x604] ss:$16 sps:$4 sm:$0xff]   ;;  %v7597_v7 = vld [vmem:[%s10166_s4 + $0x60c] ss:$16 sps:$4 sm:$0xff]  }
 0x1a7   :  { %2453 = vmatprep.subr.bf16.mxu0 %v7528_v18  ;;  %2526 = vmatprep.subr.bf16.mxu1 %v7531_v56  ;;  %v7592_v18 = vld [vmem:[%s10166_s4 + $0x600] ss:$16 sps:$4 sm:$0xff]   ;;  %v7595_v56 = vld [vmem:[%s10166_s4 + $0x608] ss:$16 sps:$4 sm:$0xff]  }
 0x1aa   :  { %2454 = vmatpush1.bf16.msra.mxu0 %v7526_v4  ;;  %2527 = vmatpush1.bf16.msra.mxu1 %v7529_v26  ;;  %v7600_v4 = vld [vmem:[%s10166_s4 + $0x624] ss:$16 sps:$4 sm:$0xff]   ;;  %v7603_v26 = vld [vmem:[%s10166_s4 + $0x62c] ss:$16 sps:$4 sm:$0xff]  }
 0x1ab   :  { %2455 = vmatprep.subr.bf16.mxu0 %v7534_v21  ;;  %2528 = vmatprep.subr.bf16.mxu1 %v7537_v22  ;;  %v7598_v21 = vld [vmem:[%s10166_s4 + $0x620] ss:$16 sps:$4 sm:$0xff]   ;;  %v7601_v22 = vld [vmem:[%s10166_s4 + $0x628] ss:$16 sps:$4 sm:$0xff]  }
 0x1ac   :  { %1975 = vmatmul.mubr.bf16.gmra.mrb[60].mxu0 %v9151_v10  ;;  %2048 = vmatmul.mubr.bf16.gmra.mrb[60].mxu1 %v9151_v10 }
 0x1ad   :  { %2475 = vmatprep.mubr.bf16.mxu0 %v9053_v20  ;;  %2548 = vmatprep.mubr.bf16.mxu1 %v9053_v20  ;;  %v7549_v20 = vld [vmem:[%s10166_s4 + $0x50c] ss:$16 sps:$4 sm:$0xff]  }
 0x1ae   :  { %2456 = vmatpush1.bf16.msra.mxu0 %v7532_v47  ;;  %2529 = vmatpush1.bf16.msra.mxu1 %v7535_v3  ;;  %v7609_v47 = vld [vmem:[%s10166_s4 + $0x64c] ss:$16 sps:$4 sm:$0xff]   ;;  %v7604_v3 = vld [vmem:[%s10166_s4 + $0x640] ss:$16 sps:$4 sm:$0xff]  }
 0x1af   :  { %2457 = vmatprep.subr.bf16.mxu0 %v7540_v1  ;;  %2530 = vmatprep.subr.bf16.mxu1 %v7543_v61  ;;  %v7607_v1 = vld [vmem:[%s10166_s4 + $0x648] ss:$16 sps:$4 sm:$0xff]   ;;  %v7612_v61 = vld [vmem:[%s10166_s4 + $0x664] ss:$16 sps:$4 sm:$0xff]  }
 0x1b2   :  { %2458 = vmatpush1.bf16.msra.mxu0 %v7538_v62  ;;  %2531 = vmatpush1.bf16.msra.mxu1 %v7541_v60  ;;  %v7615_v62 = vld [vmem:[%s10166_s4 + $0x66c] ss:$16 sps:$4 sm:$0xff]   ;;  %v7610_v60 = vld [vmem:[%s10166_s4 + $0x660] ss:$16 sps:$4 sm:$0xff]  }
 0x1b3   :  { %2459 = vmatprep.subr.bf16.mxu0 %v7546_v2  ;;  %2532 = vmatprep.subr.bf16.mxu1 %v7549_v20  ;;  %v7613_v2 = vld [vmem:[%s10166_s4 + $0x668] ss:$16 sps:$4 sm:$0xff]   ;;  %v7618_v20 = vld [vmem:[%s10166_s4 + $0x684] ss:$16 sps:$4 sm:$0xff]  }
 0x1b6   :  { %2460 = vmatpush1.bf16.msra.mxu0 %v7544_v8  ;;  %2533 = vmatpush1.bf16.msra.mxu1 %v7547_v27  ;;  %v7621_v8 = vld [vmem:[%s10166_s4 + $0x68c] ss:$16 sps:$4 sm:$0xff]   ;;  %v7616_v27 = vld [vmem:[%s10166_s4 + $0x680] ss:$16 sps:$4 sm:$0xff]  }
 0x1b7   :  { %2461 = vmatprep.subr.bf16.mxu0 %v7552_v48  ;;  %2534 = vmatprep.subr.bf16.mxu1 %v7555_v49  ;;  %v7619_v48 = vld [vmem:[%s10166_s4 + $0x688] ss:$16 sps:$4 sm:$0xff]   ;;  %v7624_v49 = vld [vmem:[%s10166_s4 + $0x6a4] ss:$16 sps:$4 sm:$0xff]  }
 0x1ba   :  { %2462 = vmatpush1.bf16.msra.mxu0 %v7550_v12  ;;  %2535 = vmatpush1.bf16.msra.mxu1 %v7553_v36  ;;  %v7627_v12 = vld [vmem:[%s10166_s4 + $0x6ac] ss:$16 sps:$4 sm:$0xff]   ;;  %v7622_v36 = vld [vmem:[%s10166_s4 + $0x6a0] ss:$16 sps:$4 sm:$0xff]  }
 0x1bb   :  { %2463 = vmatprep.subr.bf16.mxu0 %v7558_v50  ;;  %2536 = vmatprep.subr.bf16.mxu1 %v7561_v53  ;;  %v7625_v50 = vld [vmem:[%s10166_s4 + $0x6a8] ss:$16 sps:$4 sm:$0xff]   ;;  %v7630_v53 = vld [vmem:[%s10166_s4 + $0x6c4] ss:$16 sps:$4 sm:$0xff]  }
 0x1be   :  { %2464 = vmatpush1.bf16.msra.mxu0 %v7556_v37  ;;  %2537 = vmatpush1.bf16.msra.mxu1 %v7559_v24  ;;  %v7633_v37 = vld [vmem:[%s10166_s4 + $0x6cc] ss:$16 sps:$4 sm:$0xff]   ;;  %v7628_v24 = vld [vmem:[%s10166_s4 + $0x6c0] ss:$16 sps:$4 sm:$0xff]  }
 0x1bf   :  { %2465 = vmatprep.subr.bf16.mxu0 %v7564_v30  ;;  %2538 = vmatprep.subr.bf16.mxu1 %v7567_v51  ;;  %v7631_v30 = vld [vmem:[%s10166_s4 + $0x6c8] ss:$16 sps:$4 sm:$0xff]   ;;  %v7636_v51 = vld [vmem:[%s10166_s4 + $0x6e4] ss:$16 sps:$4 sm:$0xff]  }
 0x1c2   :  { %2466 = vmatpush1.bf16.msra.mxu0 %v7562_v44  ;;  %2539 = vmatpush1.bf16.msra.mxu1 %v7565_v52  ;;  %v7639_v44 = vld [vmem:[%s10166_s4 + $0x6ec] ss:$16 sps:$4 sm:$0xff]   ;;  %v7634_v52 = vld [vmem:[%s10166_s4 + $0x6e0] ss:$16 sps:$4 sm:$0xff]  }
 0x1c3   :  { %2467 = vmatprep.subr.bf16.mxu0 %v7570_v38  ;;  %2540 = vmatprep.subr.bf16.mxu1 %v7573_v54  ;;  %v7637_v38 = vld [vmem:[%s10166_s4 + $0x6e8] ss:$16 sps:$4 sm:$0xff]   ;;  %v7642_v54 = vld [vmem:[%s10166_s4 + $0x704] ss:$16 sps:$4 sm:$0xff]  }
 0x1c6   :  { %2468 = vmatpush1.bf16.msra.mxu0 %v7568_v55  ;;  %2541 = vmatpush1.bf16.msra.mxu1 %v7571_v57  ;;  %v7640_v55 = vld [vmem:[%s10166_s4 + $0x700] ss:$16 sps:$4 sm:$0xff]   ;;  %v7643_v57 = vld [vmem:[%s10166_s4 + $0x708] ss:$16 sps:$4 sm:$0xff]  }
 0x1c7   :  { %2469 = vmatprep.subr.bf16.mxu0 %v7576_v35  ;;  %2542 = vmatprep.subr.bf16.mxu1 %v7579_v14  ;;  %v7648_v35 = vld [vmem:[%s10166_s4 + $0x724] ss:$16 sps:$4 sm:$0xff]   ;;  %v7651_v14 = vld [vmem:[%s10166_s4 + $0x72c] ss:$16 sps:$4 sm:$0xff]  }
 0x1ca   :  { %2470 = vmatpush1.bf16.msra.mxu0 %v7574_v29  ;;  %2543 = vmatpush1.bf16.msra.mxu1 %v7577_v58  ;;  %v7646_v29 = vld [vmem:[%s10166_s4 + $0x720] ss:$16 sps:$4 sm:$0xff]   ;;  %v7649_v58 = vld [vmem:[%s10166_s4 + $0x728] ss:$16 sps:$4 sm:$0xff]  }
 0x1cb   :  { %2471 = vmatprep.subr.bf16.mxu0 %v7582_v40  ;;  %2544 = vmatprep.subr.bf16.mxu1 %v7585_v25  ;;  %v7654_v40 = vld [vmem:[%s10166_s4 + $0x744] ss:$16 sps:$4 sm:$0xff]   ;;  %v7657_v25 = vld [vmem:[%s10166_s4 + $0x74c] ss:$16 sps:$4 sm:$0xff]  }
 0x1ce   :  { %2472 = vmatpush1.bf16.msra.mxu0 %v7580_v43  ;;  %2545 = vmatpush1.bf16.msra.mxu1 %v7583_v46  ;;  %v7652_v43 = vld [vmem:[%s10166_s4 + $0x740] ss:$16 sps:$4 sm:$0xff]   ;;  %v7655_v46 = vld [vmem:[%s10166_s4 + $0x748] ss:$16 sps:$4 sm:$0xff]  }
 0x1cf   :  { %2473 = vmatprep.subr.bf16.mxu0 %v7588_v16  ;;  %2546 = vmatprep.subr.bf16.mxu1 %v7591_v33  ;;  %v7660_v16 = vld [vmem:[%s10166_s4 + $0x764] ss:$16 sps:$4 sm:$0xff]   ;;  %v7663_v33 = vld [vmem:[%s10166_s4 + $0x76c] ss:$16 sps:$4 sm:$0xff]  }
 0x1d2   :  { %2474 = vmatpush1.bf16.msra.mxu0 %v7586_v34  ;;  %2547 = vmatpush1.bf16.msra.mxu1 %v7589_v0  ;;  %v7658_v34 = vld [vmem:[%s10166_s4 + $0x760] ss:$16 sps:$4 sm:$0xff]   ;;  %v7661_v0 = vld [vmem:[%s10166_s4 + $0x768] ss:$16 sps:$4 sm:$0xff]  }
 0x1d3   :  { %3014 = vmatprep.subr.bf16.mxu0 %v7594_v63  ;;  %3087 = vmatprep.subr.bf16.mxu1 %v7597_v7  ;;  %v7666_v63 = vld [vmem:[%s10166_s4 + $0x784] ss:$16 sps:$4 sm:$0xff]   ;;  %v7669_v7 = vld [vmem:[%s10166_s4 + $0x78c] ss:$16 sps:$4 sm:$0xff]  }
 0x1d5   :  { %2476 = vmatmul.mubr.bf16.vlgmr.msra.gmra.mrb[48].mxu0 %v9048_v9  ;;  %2549 = vmatmul.mubr.bf16.vlgmr.msra.gmra.mrb[48].mxu1 %v9048_v9  ;;  %v7606_v9 = vld [vmem:[%s10166_s4 + $0x644] ss:$16 sps:$4 sm:$0xff]  }
 0x1d6   :  { %2485 = vmatprep.mubr.bf16.mxu0 %v9105_v28  ;;  %2558 = vmatprep.mubr.bf16.mxu1 %v9105_v28 }
 0x1d7   :  { %3015 = vmatpush1.bf16.msra.mxu0 %v7592_v18  ;;  %3088 = vmatpush1.bf16.msra.mxu1 %v7595_v56  ;;  %v7664_v18 = vld [vmem:[%s10166_s4 + $0x780] ss:$16 sps:$4 sm:$0xff]   ;;  %v7667_v56 = vld [vmem:[%s10166_s4 + $0x788] ss:$16 sps:$4 sm:$0xff]  }
 0x1d8   :  { %3016 = vmatprep.subr.bf16.mxu0 %v7600_v4  ;;  %3089 = vmatprep.subr.bf16.mxu1 %v7603_v26  ;;  %v7672_v4 = vld [vmem:[%s10166_s4 + $0x7a4] ss:$16 sps:$4 sm:$0xff]   ;;  %v7675_v26 = vld [vmem:[%s10166_s4 + $0x7ac] ss:$16 sps:$4 sm:$0xff]  }
 0x1db   :  { %3017 = vmatpush1.bf16.msra.mxu0 %v7598_v21  ;;  %3090 = vmatpush1.bf16.msra.mxu1 %v7601_v22  ;;  %v7670_v21 = vld [vmem:[%s10166_s4 + $0x7a0] ss:$16 sps:$4 sm:$0xff]   ;;  %v7673_v22 = vld [vmem:[%s10166_s4 + $0x7a8] ss:$16 sps:$4 sm:$0xff]  }
 0x1dc   :  { %3018 = vmatprep.subr.bf16.mxu0 %v7606_v9  ;;  %3091 = vmatprep.subr.bf16.mxu1 %v7609_v47  ;;  %v7678_v9 = vld [vmem:[%s10166_s4 + $0x7c4] ss:$16 sps:$4 sm:$0xff]   ;;  %v7681_v47 = vld [vmem:[%s10166_s4 + $0x7cc] ss:$16 sps:$4 sm:$0xff]  }
 0x1dd   :  { %2486 = vmatmul.mubr.bf16.gmra.mrb[52].mxu0 %v9094_v17  ;;  %2559 = vmatmul.mubr.bf16.gmra.mrb[52].mxu1 %v9094_v17 }
 0x1de   :  { %2495 = vmatprep.mubr.bf16.mxu0 %v9162_v11  ;;  %2568 = vmatprep.mubr.bf16.mxu1 %v9162_v11 }
 0x1df   :  { %3019 = vmatpush1.bf16.msra.mxu0 %v7604_v3  ;;  %3092 = vmatpush1.bf16.msra.mxu1 %v7607_v1  ;;  %v7676_v3 = vld [vmem:[%s10166_s4 + $0x7c0] ss:$16 sps:$4 sm:$0xff]   ;;  %v7679_v1 = vld [vmem:[%s10166_s4 + $0x7c8] ss:$16 sps:$4 sm:$0xff]  }
 0x1e0   :  { %3020 = vmatprep.subr.bf16.mxu0 %v7612_v61  ;;  %3093 = vmatprep.subr.bf16.mxu1 %v7615_v62  ;;  %v7684_v61 = vld [vmem:[%s10166_s4 + $0x7e4] ss:$16 sps:$4 sm:$0xff]   ;;  %v7687_v62 = vld [vmem:[%s10166_s4 + $0x7ec] ss:$16 sps:$4 sm:$0xff]  }
 0x1e3   :  { %3021 = vmatpush1.bf16.msra.mxu0 %v7610_v60  ;;  %3094 = vmatpush1.bf16.msra.mxu1 %v7613_v2  ;;  %v7682_v60 = vld [vmem:[%s10166_s4 + $0x7e0] ss:$16 sps:$4 sm:$0xff]   ;;  %v7685_v2 = vld [vmem:[%s10166_s4 + $0x7e8] ss:$16 sps:$4 sm:$0xff]  }
 0x1e4   :  { %3022 = vmatprep.subr.bf16.mxu0 %v7618_v20  ;;  %3095 = vmatprep.subr.bf16.mxu1 %v7621_v8  ;;  %v7690_v20 = vld [vmem:[%s10166_s4 + $0x804] ss:$16 sps:$4 sm:$0xff]   ;;  %v7693_v8 = vld [vmem:[%s10166_s4 + $0x80c] ss:$16 sps:$4 sm:$0xff]  }
 0x1e5   :  { %2496 = vmatmul.mubr.bf16.gmra.mrb[56].mxu0 %v9151_v10  ;;  %2569 = vmatmul.mubr.bf16.gmra.mrb[56].mxu1 %v9151_v10 }
 0x1e6   :  { %2505 = vmatprep.mubr.bf16.mxu0 %v9222_v59  ;;  %2578 = vmatprep.mubr.bf16.mxu1 %v9222_v59 }
 0x1e7   :  { %3023 = vmatpush1.bf16.msra.mxu0 %v7616_v27  ;;  %3096 = vmatpush1.bf16.msra.mxu1 %v7619_v48  ;;  %v7688_v27 = vld [vmem:[%s10166_s4 + $0x800] ss:$16 sps:$4 sm:$0xff]   ;;  %v7691_v48 = vld [vmem:[%s10166_s4 + $0x808] ss:$16 sps:$4 sm:$0xff]  }
 0x1e8   :  { %3024 = vmatprep.subr.bf16.mxu0 %v7624_v49  ;;  %3097 = vmatprep.subr.bf16.mxu1 %v7627_v12  ;;  %v7696_v49 = vld [vmem:[%s10166_s4 + $0x824] ss:$16 sps:$4 sm:$0xff]   ;;  %v7699_v12 = vld [vmem:[%s10166_s4 + $0x82c] ss:$16 sps:$4 sm:$0xff]  }
 0x1eb   :  { %3025 = vmatpush1.bf16.msra.mxu0 %v7622_v36  ;;  %3098 = vmatpush1.bf16.msra.mxu1 %v7625_v50  ;;  %v7694_v36 = vld [vmem:[%s10166_s4 + $0x820] ss:$16 sps:$4 sm:$0xff]   ;;  %v7697_v50 = vld [vmem:[%s10166_s4 + $0x828] ss:$16 sps:$4 sm:$0xff]  }
 0x1ec   :  { %3026 = vmatprep.subr.bf16.mxu0 %v7630_v53  ;;  %3099 = vmatprep.subr.bf16.mxu1 %v7633_v37  ;;  %v7700_v53 = vld [vmem:[%s10166_s4 + $0x840] ss:$16 sps:$4 sm:$0xff]   ;;  %v7703_v37 = vld [vmem:[%s10166_s4 + $0x848] ss:$16 sps:$4 sm:$0xff]  }
 0x1ed   :  { %2506 = vmatmul.mubr.bf16.gmra.mrb[60].mxu0 %v9211_v19  ;;  %2579 = vmatmul.mubr.bf16.gmra.mrb[60].mxu1 %v9211_v19 }
 0x1ee   :  { %3046 = vmatprep.mubr.bf16.mxu0 %v9132_v5  ;;  %3119 = vmatprep.mubr.bf16.mxu1 %v9132_v5  ;;  %v7645_v5 = vld [vmem:[%s10166_s4 + $0x70c] ss:$16 sps:$4 sm:$0xff]  }
 0x1ef   :  { %3027 = vmatpush1.bf16.msra.mxu0 %v7628_v24  ;;  %3100 = vmatpush1.bf16.msra.mxu1 %v7631_v30  ;;  %v7708_v24 = vld [vmem:[%s10166_s4 + $0x864] ss:$16 sps:$4 sm:$0xff]   ;;  %v7711_v30 = vld [vmem:[%s10166_s4 + $0x86c] ss:$16 sps:$4 sm:$0xff]  }
 0x1f0   :  { %3028 = vmatprep.subr.bf16.mxu0 %v7636_v51  ;;  %3101 = vmatprep.subr.bf16.mxu1 %v7639_v44  ;;  %v7706_v51 = vld [vmem:[%s10166_s4 + $0x860] ss:$16 sps:$4 sm:$0xff]   ;;  %v7709_v44 = vld [vmem:[%s10166_s4 + $0x868] ss:$16 sps:$4 sm:$0xff]  }
 0x1f3   :  { %3029 = vmatpush1.bf16.msra.mxu0 %v7634_v52  ;;  %3102 = vmatpush1.bf16.msra.mxu1 %v7637_v38  ;;  %v7712_v52 = vld [vmem:[%s10166_s4 + $0x880] ss:$16 sps:$4 sm:$0xff]   ;;  %v7715_v38 = vld [vmem:[%s10166_s4 + $0x888] ss:$16 sps:$4 sm:$0xff]  }
 0x1f4   :  { %3030 = vmatprep.subr.bf16.mxu0 %v7642_v54  ;;  %3103 = vmatprep.subr.bf16.mxu1 %v7645_v5  ;;  %v7720_v54 = vld [vmem:[%s10166_s4 + $0x8a4] ss:$16 sps:$4 sm:$0xff]   ;;  %v7723_v5 = vld [vmem:[%s10166_s4 + $0x8ac] ss:$16 sps:$4 sm:$0xff]  }
 0x1f7   :  { %3031 = vmatpush1.bf16.msra.mxu0 %v7640_v55  ;;  %3104 = vmatpush1.bf16.msra.mxu1 %v7643_v57  ;;  %v7718_v55 = vld [vmem:[%s10166_s4 + $0x8a0] ss:$16 sps:$4 sm:$0xff]   ;;  %v7721_v57 = vld [vmem:[%s10166_s4 + $0x8a8] ss:$16 sps:$4 sm:$0xff]  }
 0x1f8   :  { %3032 = vmatprep.subr.bf16.mxu0 %v7648_v35  ;;  %3105 = vmatprep.subr.bf16.mxu1 %v7651_v14  ;;  %v7724_v35 = vld [vmem:[%s10166_s4 + $0x8c0] ss:$16 sps:$4 sm:$0xff]   ;;  %v7727_v14 = vld [vmem:[%s10166_s4 + $0x8c8] ss:$16 sps:$4 sm:$0xff]  }
 0x1fb   :  { %3033 = vmatpush1.bf16.msra.mxu0 %v7646_v29  ;;  %3106 = vmatpush1.bf16.msra.mxu1 %v7649_v58  ;;  %v7732_v29 = vld [vmem:[%s10166_s4 + $0x8e4] ss:$16 sps:$4 sm:$0xff]   ;;  %v7735_v58 = vld [vmem:[%s10166_s4 + $0x8ec] ss:$16 sps:$4 sm:$0xff]  }
 0x1fc   :  { %3034 = vmatprep.subr.bf16.mxu0 %v7654_v40  ;;  %3107 = vmatprep.subr.bf16.mxu1 %v7657_v25  ;;  %v7730_v40 = vld [vmem:[%s10166_s4 + $0x8e0] ss:$16 sps:$4 sm:$0xff]   ;;  %v7733_v25 = vld [vmem:[%s10166_s4 + $0x8e8] ss:$16 sps:$4 sm:$0xff]  }
 0x1ff   :  { %3035 = vmatpush1.bf16.msra.mxu0 %v7652_v43  ;;  %3108 = vmatpush1.bf16.msra.mxu1 %v7655_v46  ;;  %v7736_v43 = vld [vmem:[%s10166_s4 + $0x900] ss:$16 sps:$4 sm:$0xff]   ;;  %v7739_v46 = vld [vmem:[%s10166_s4 + $0x908] ss:$16 sps:$4 sm:$0xff]  }
 0x200   :  { %3036 = vmatprep.subr.bf16.mxu0 %v7660_v16  ;;  %3109 = vmatprep.subr.bf16.mxu1 %v7663_v33  ;;  %v7744_v16 = vld [vmem:[%s10166_s4 + $0x924] ss:$16 sps:$4 sm:$0xff]   ;;  %v7747_v33 = vld [vmem:[%s10166_s4 + $0x92c] ss:$16 sps:$4 sm:$0xff]  }
 0x203   :  { %3037 = vmatpush1.bf16.msra.mxu0 %v7658_v34  ;;  %3110 = vmatpush1.bf16.msra.mxu1 %v7661_v0  ;;  %v7742_v34 = vld [vmem:[%s10166_s4 + $0x920] ss:$16 sps:$4 sm:$0xff]   ;;  %v7745_v0 = vld [vmem:[%s10166_s4 + $0x928] ss:$16 sps:$4 sm:$0xff]  }
 0x204   :  { %3038 = vmatprep.subr.bf16.mxu0 %v7666_v63  ;;  %3111 = vmatprep.subr.bf16.mxu1 %v7669_v7  ;;  %v7750_v63 = vld [vmem:[%s10166_s4 + $0x944] ss:$16 sps:$4 sm:$0xff]   ;;  %v7753_v7 = vld [vmem:[%s10166_s4 + $0x94c] ss:$16 sps:$4 sm:$0xff]  }
 0x207   :  { %3039 = vmatpush1.bf16.msra.mxu0 %v7664_v18  ;;  %3112 = vmatpush1.bf16.msra.mxu1 %v7667_v56  ;;  %v7748_v18 = vld [vmem:[%s10166_s4 + $0x940] ss:$16 sps:$4 sm:$0xff]   ;;  %v7751_v56 = vld [vmem:[%s10166_s4 + $0x948] ss:$16 sps:$4 sm:$0xff]  }
 0x208   :  { %3040 = vmatprep.subr.bf16.mxu0 %v7672_v4  ;;  %3113 = vmatprep.subr.bf16.mxu1 %v7675_v26  ;;  %v7756_v4 = vld [vmem:[%s10166_s4 + $0x964] ss:$16 sps:$4 sm:$0xff]   ;;  %v7759_v26 = vld [vmem:[%s10166_s4 + $0x96c] ss:$16 sps:$4 sm:$0xff]  }
 0x20b   :  { %3041 = vmatpush1.bf16.msra.mxu0 %v7670_v21  ;;  %3114 = vmatpush1.bf16.msra.mxu1 %v7673_v22  ;;  %v7754_v21 = vld [vmem:[%s10166_s4 + $0x960] ss:$16 sps:$4 sm:$0xff]   ;;  %v7757_v22 = vld [vmem:[%s10166_s4 + $0x968] ss:$16 sps:$4 sm:$0xff]  }
 0x20c   :  { %3042 = vmatprep.subr.bf16.mxu0 %v7678_v9  ;;  %3115 = vmatprep.subr.bf16.mxu1 %v7681_v47  ;;  %v7762_v9 = vld [vmem:[%s10166_s4 + $0x984] ss:$16 sps:$4 sm:$0xff]   ;;  %v7765_v47 = vld [vmem:[%s10166_s4 + $0x98c] ss:$16 sps:$4 sm:$0xff]  }
 0x20f   :  { %3043 = vmatpush1.bf16.msra.mxu0 %v7676_v3  ;;  %3116 = vmatpush1.bf16.msra.mxu1 %v7679_v1  ;;  %v7760_v3 = vld [vmem:[%s10166_s4 + $0x980] ss:$16 sps:$4 sm:$0xff]   ;;  %v7763_v1 = vld [vmem:[%s10166_s4 + $0x988] ss:$16 sps:$4 sm:$0xff]  }
 0x210   :  { %3044 = vmatprep.subr.bf16.mxu0 %v7684_v61  ;;  %3117 = vmatprep.subr.bf16.mxu1 %v7687_v62  ;;  %v7768_v61 = vld [vmem:[%s10166_s4 + $0x9a4] ss:$16 sps:$4 sm:$0xff]   ;;  %v7771_v62 = vld [vmem:[%s10166_s4 + $0x9ac] ss:$16 sps:$4 sm:$0xff]  }
 0x213   :  { %3045 = vmatpush1.bf16.msra.mxu0 %v7682_v60  ;;  %3118 = vmatpush1.bf16.msra.mxu1 %v7685_v2  ;;  %v7766_v60 = vld [vmem:[%s10166_s4 + $0x9a0] ss:$16 sps:$4 sm:$0xff]   ;;  %v7769_v2 = vld [vmem:[%s10166_s4 + $0x9a8] ss:$16 sps:$4 sm:$0xff]  }
 0x214   :  { %3577 = vmatprep.subr.bf16.mxu0 %v7690_v20  ;;  %3650 = vmatprep.subr.bf16.mxu1 %v7693_v8  ;;  %v7774_v20 = vld [vmem:[%s10166_s4 + $0x9c4] ss:$16 sps:$4 sm:$0xff]   ;;  %v7777_v8 = vld [vmem:[%s10166_s4 + $0x9cc] ss:$16 sps:$4 sm:$0xff]  }
 0x216   :  { %3047 = vmatmul.mubr.bf16.vlgmr.msra.gmra.mrb[48].mxu0 %v9144_v31  ;;  %3120 = vmatmul.mubr.bf16.vlgmr.msra.gmra.mrb[48].mxu1 %v9144_v31  ;;  %v7702_v31 = vld [vmem:[%s10166_s4 + $0x844] ss:$16 sps:$4 sm:$0xff]  }
 0x217   :  { %3056 = vmatprep.mubr.bf16.mxu0 %v9192_v13  ;;  %3129 = vmatprep.mubr.bf16.mxu1 %v9192_v13  ;;  %v7705_v13 = vld [vmem:[%s10166_s4 + $0x84c] ss:$16 sps:$4 sm:$0xff]  }
 0x218   :  { %3578 = vmatpush1.bf16.msra.mxu0 %v7688_v27  ;;  %3651 = vmatpush1.bf16.msra.mxu1 %v7691_v48  ;;  %v7772_v27 = vld [vmem:[%s10166_s4 + $0x9c0] ss:$16 sps:$4 sm:$0xff]   ;;  %v7775_v48 = vld [vmem:[%s10166_s4 + $0x9c8] ss:$16 sps:$4 sm:$0xff]  }
 0x219   :  { %3579 = vmatprep.subr.bf16.mxu0 %v7696_v49  ;;  %3652 = vmatprep.subr.bf16.mxu1 %v7699_v12  ;;  %v7780_v49 = vld [vmem:[%s10166_s4 + $0x9e4] ss:$16 sps:$4 sm:$0xff]   ;;  %v7783_v12 = vld [vmem:[%s10166_s4 + $0x9ec] ss:$16 sps:$4 sm:$0xff]  }
 0x21c   :  { %3580 = vmatpush1.bf16.msra.mxu0 %v7694_v36  ;;  %3653 = vmatpush1.bf16.msra.mxu1 %v7697_v50  ;;  %v7778_v36 = vld [vmem:[%s10166_s4 + $0x9e0] ss:$16 sps:$4 sm:$0xff]   ;;  %v7781_v50 = vld [vmem:[%s10166_s4 + $0x9e8] ss:$16 sps:$4 sm:$0xff]  }
 0x21d   :  { %3581 = vmatprep.subr.bf16.mxu0 %v7702_v31  ;;  %3654 = vmatprep.subr.bf16.mxu1 %v7705_v13  ;;  %v7786_v31 = vld [vmem:[#allocation2 + $0x204] ss:$16 sps:$4 sm:$0xff]   ;;  %v7789_v13 = vld [vmem:[#allocation2 + $0x20c] ss:$16 sps:$4 sm:$0xff]  }
 0x21e   :  { %3057 = vmatmul.mubr.bf16.gmra.mrb[52].mxu0 %v9204_v39  ;;  %3130 = vmatmul.mubr.bf16.gmra.mrb[52].mxu1 %v9204_v39  ;;  %v7714_v39 = vld [vmem:[%s10166_s4 + $0x884] ss:$16 sps:$4 sm:$0xff]  }
 0x21f   :  { %3066 = vmatprep.mubr.bf16.mxu0 %v9252_v15  ;;  %3139 = vmatprep.mubr.bf16.mxu1 %v9252_v15  ;;  %v7717_v15 = vld [vmem:[%s10166_s4 + $0x88c] ss:$16 sps:$4 sm:$0xff]  }
 0x220   :  { %3582 = vmatpush1.bf16.msra.mxu0 %v7700_v53  ;;  %3655 = vmatpush1.bf16.msra.mxu1 %v7703_v37  ;;  %v7784_v53 = vld [vmem:[#allocation2 + $0x200] ss:$16 sps:$4 sm:$0xff]   ;;  %v7787_v37 = vld [vmem:[#allocation2 + $0x208] ss:$16 sps:$4 sm:$0xff]  }
 0x221   :  { %3583 = vmatprep.subr.bf16.mxu0 %v7708_v24  ;;  %3656 = vmatprep.subr.bf16.mxu1 %v7711_v30  ;;  %v7792_v24 = vld [vmem:[#allocation2 + $0x224] ss:$16 sps:$4 sm:$0xff]   ;;  %v7795_v30 = vld [vmem:[#allocation2 + $0x22c] ss:$16 sps:$4 sm:$0xff]  }
 0x224   :  { %3584 = vmatpush1.bf16.msra.mxu0 %v7706_v51  ;;  %3657 = vmatpush1.bf16.msra.mxu1 %v7709_v44  ;;  %v7790_v51 = vld [vmem:[#allocation2 + $0x220] ss:$16 sps:$4 sm:$0xff]   ;;  %v7793_v44 = vld [vmem:[#allocation2 + $0x228] ss:$16 sps:$4 sm:$0xff]  }
 0x225   :  { %3585 = vmatprep.subr.bf16.mxu0 %v7714_v39  ;;  %3658 = vmatprep.subr.bf16.mxu1 %v7717_v15  ;;  %v7798_v39 = vld [vmem:[#allocation2 + $0x244] ss:$16 sps:$4 sm:$0xff]   ;;  %v7801_v15 = vld [vmem:[#allocation2 + $0x24c] ss:$16 sps:$4 sm:$0xff]  }
 0x226   :  { %3067 = vmatmul.mubr.bf16.gmra.mrb[56].mxu0 %v9262_v23  ;;  %3140 = vmatmul.mubr.bf16.gmra.mrb[56].mxu1 %v9262_v23  ;;  %v7726_v23 = vld [vmem:[%s10166_s4 + $0x8c4] ss:$16 sps:$4 sm:$0xff]  }
 0x227   :  { %3076 = vmatprep.mubr.bf16.mxu0 %v9302_v6  ;;  %3149 = vmatprep.mubr.bf16.mxu1 %v9302_v6  ;;  %v7729_v6 = vld [vmem:[%s10166_s4 + $0x8cc] ss:$16 sps:$4 sm:$0xff]  }
 0x228   :  { %3586 = vmatpush1.bf16.msra.mxu0 %v7712_v52  ;;  %3659 = vmatpush1.bf16.msra.mxu1 %v7715_v38  ;;  %v7796_v52 = vld [vmem:[#allocation2 + $0x240] ss:$16 sps:$4 sm:$0xff]   ;;  %v7799_v38 = vld [vmem:[#allocation2 + $0x248] ss:$16 sps:$4 sm:$0xff]  }
 0x229   :  { %3587 = vmatprep.subr.bf16.mxu0 %v7720_v54  ;;  %3660 = vmatprep.subr.bf16.mxu1 %v7723_v5  ;;  %v7804_v54 = vld [vmem:[#allocation2 + $0x264] ss:$16 sps:$4 sm:$0xff]   ;;  %v7805_v5 = vld [vmem:[#allocation2 + $0x268] ss:$16 sps:$4 sm:$0xff]  }
 0x22c   :  { %3588 = vmatpush1.bf16.msra.mxu0 %v7718_v55  ;;  %3661 = vmatpush1.bf16.msra.mxu1 %v7721_v57  ;;  %v7810_v55 = vld [vmem:[#allocation2 + $0x284] ss:$16 sps:$4 sm:$0xff]   ;;  %v7813_v57 = vld [vmem:[#allocation2 + $0x28c] ss:$16 sps:$4 sm:$0xff]  }
 0x22d   :  { %3589 = vmatprep.subr.bf16.mxu0 %v7726_v23  ;;  %3662 = vmatprep.subr.bf16.mxu1 %v7729_v6  ;;  %v7808_v23 = vld [vmem:[#allocation2 + $0x280] ss:$16 sps:$4 sm:$0xff]   ;;  %v7811_v6 = vld [vmem:[#allocation2 + $0x288] ss:$16 sps:$4 sm:$0xff]  }
 0x22e   :  { %3077 = vmatmul.mubr.bf16.gmra.mrb[60].mxu0 %v9293_v41  ;;  %3150 = vmatmul.mubr.bf16.gmra.mrb[60].mxu1 %v9293_v41  ;;  %v7738_v41 = vld [vmem:[%s10166_s4 + $0x904] ss:$16 sps:$4 sm:$0xff]  }
 0x22f   :  { %3609 = vmatprep.mubr.bf16.mxu0 %v9105_v28  ;;  %3682 = vmatprep.mubr.bf16.mxu1 %v9105_v28  ;;  %v7741_v28 = vld [vmem:[%s10166_s4 + $0x90c] ss:$16 sps:$4 sm:$0xff]  }
 0x230   :  { %3590 = vmatpush1.bf16.msra.mxu0 %v7724_v35  ;;  %3663 = vmatpush1.bf16.msra.mxu1 %v7727_v14  ;;  %v7816_v35 = vld [vmem:[#allocation2 + $0x2a4] ss:$16 sps:$4 sm:$0xff]   ;;  %v7817_v14 = vld [vmem:[#allocation2 + $0x2a8] ss:$16 sps:$4 sm:$0xff]  }
 0x231   :  { %3591 = vmatprep.subr.bf16.mxu0 %v7732_v29  ;;  %3664 = vmatprep.subr.bf16.mxu1 %v7735_v58  ;;  %v7822_v29 = vld [vmem:[#allocation2 + $0x2c4] ss:$16 sps:$4 sm:$0xff]   ;;  %v7825_v58 = vld [vmem:[#allocation2 + $0x2cc] ss:$16 sps:$4 sm:$0xff]  }
 0x234   :  { %3592 = vmatpush1.bf16.msra.mxu0 %v7730_v40  ;;  %3665 = vmatpush1.bf16.msra.mxu1 %v7733_v25  ;;  %v7820_v40 = vld [vmem:[#allocation2 + $0x2c0] ss:$16 sps:$4 sm:$0xff]   ;;  %v7823_v25 = vld [vmem:[#allocation2 + $0x2c8] ss:$16 sps:$4 sm:$0xff]  }
 0x235   :  { %3593 = vmatprep.subr.bf16.mxu0 %v7738_v41  ;;  %3666 = vmatprep.subr.bf16.mxu1 %v7741_v28  ;;  %v7828_v41 = vld [vmem:[#allocation2 + $0x2e4] ss:$16 sps:$4 sm:$0xff]   ;;  %v7829_v28 = vld [vmem:[#allocation2 + $0x2e8] ss:$16 sps:$4 sm:$0xff]  }
 0x238   :  { %3594 = vmatpush1.bf16.msra.mxu0 %v7736_v43  ;;  %3667 = vmatpush1.bf16.msra.mxu1 %v7739_v46  ;;  %v7834_v43 = vld [vmem:[#allocation2 + $0x304] ss:$16 sps:$4 sm:$0xff]   ;;  %v7837_v46 = vld [vmem:[#allocation2 + $0x30c] ss:$16 sps:$4 sm:$0xff]  }
 0x239   :  { %3595 = vmatprep.subr.bf16.mxu0 %v7744_v16  ;;  %3668 = vmatprep.subr.bf16.mxu1 %v7747_v33  ;;  %v7832_v16 = vld [vmem:[#allocation2 + $0x300] ss:$16 sps:$4 sm:$0xff]   ;;  %v7835_v33 = vld [vmem:[#allocation2 + $0x308] ss:$16 sps:$4 sm:$0xff]  }
 0x23c   :  { %3596 = vmatpush1.bf16.msra.mxu0 %v7742_v34  ;;  %3669 = vmatpush1.bf16.msra.mxu1 %v7745_v0  ;;  %v7840_v34 = vld [vmem:[#allocation2 + $0x324] ss:$16 sps:$4 sm:$0xff]   ;;  %v7843_v0 = vld [vmem:[#allocation2 + $0x32c] ss:$16 sps:$4 sm:$0xff]  }
 0x23d   :  { %3597 = vmatprep.subr.bf16.mxu0 %v7750_v63  ;;  %3670 = vmatprep.subr.bf16.mxu1 %v7753_v7  ;;  %v7838_v63 = vld [vmem:[#allocation2 + $0x320] ss:$16 sps:$4 sm:$0xff]   ;;  %v7846_v7 = vld [vmem:[#allocation2 + $0x344] ss:$16 sps:$4 sm:$0xff]  }
 0x240   :  { %3598 = vmatpush1.bf16.msra.mxu0 %v7748_v18  ;;  %3671 = vmatpush1.bf16.msra.mxu1 %v7751_v56  ;;  %v7849_v18 = vld [vmem:[#allocation2 + $0x34c] ss:$16 sps:$4 sm:$0xff]   ;;  %v7844_v56 = vld [vmem:[#allocation2 + $0x340] ss:$16 sps:$4 sm:$0xff]  }
 0x241   :  { %3599 = vmatprep.subr.bf16.mxu0 %v7756_v4  ;;  %3672 = vmatprep.subr.bf16.mxu1 %v7759_v26  ;;  %v7847_v4 = vld [vmem:[#allocation2 + $0x348] ss:$16 sps:$4 sm:$0xff]   ;;  %v7852_v26 = vld [vmem:[#allocation2 + $0x364] ss:$16 sps:$4 sm:$0xff]  }
 0x244   :  { %3600 = vmatpush1.bf16.msra.mxu0 %v7754_v21  ;;  %3673 = vmatpush1.bf16.msra.mxu1 %v7757_v22  ;;  %v7855_v21 = vld [vmem:[#allocation2 + $0x36c] ss:$16 sps:$4 sm:$0xff]   ;;  %v7850_v22 = vld [vmem:[#allocation2 + $0x360] ss:$16 sps:$4 sm:$0xff]  }
 0x245   :  { %3601 = vmatprep.subr.bf16.mxu0 %v7762_v9  ;;  %3674 = vmatprep.subr.bf16.mxu1 %v7765_v47  ;;  %v7853_v9 = vld [vmem:[#allocation2 + $0x368] ss:$16 sps:$4 sm:$0xff]   ;;  %v7858_v47 = vld [vmem:[#allocation2 + $0x384] ss:$16 sps:$4 sm:$0xff]  }
 0x248   :  { %3602 = vmatpush1.bf16.msra.mxu0 %v7760_v3  ;;  %3675 = vmatpush1.bf16.msra.mxu1 %v7763_v1  ;;  %v7861_v3 = vld [vmem:[#allocation2 + $0x38c] ss:$16 sps:$4 sm:$0xff]   ;;  %v7856_v1 = vld [vmem:[#allocation2 + $0x380] ss:$16 sps:$4 sm:$0xff]  }
 0x249   :  { %3603 = vmatprep.subr.bf16.mxu0 %v7768_v61  ;;  %3676 = vmatprep.subr.bf16.mxu1 %v7771_v62  ;;  %v7859_v61 = vld [vmem:[#allocation2 + $0x388] ss:$16 sps:$4 sm:$0xff]   ;;  %v7864_v62 = vld [vmem:[#allocation2 + $0x3a4] ss:$16 sps:$4 sm:$0xff]  }
 0x24c   :  { %3604 = vmatpush1.bf16.msra.mxu0 %v7766_v60  ;;  %3677 = vmatpush1.bf16.msra.mxu1 %v7769_v2  ;;  %v7867_v60 = vld [vmem:[#allocation2 + $0x3ac] ss:$16 sps:$4 sm:$0xff]   ;;  %v7862_v2 = vld [vmem:[#allocation2 + $0x3a0] ss:$16 sps:$4 sm:$0xff]  }
 0x24d   :  { %3605 = vmatprep.subr.bf16.mxu0 %v7774_v20  ;;  %3678 = vmatprep.subr.bf16.mxu1 %v7777_v8  ;;  %v7865_v20 = vld [vmem:[#allocation2 + $0x3a8] ss:$16 sps:$4 sm:$0xff]   ;;  %v7870_v8 = vld [vmem:[#allocation2 + $0x3c4] ss:$16 sps:$4 sm:$0xff]  }
 0x250   :  { %3606 = vmatpush1.bf16.msra.mxu0 %v7772_v27  ;;  %3679 = vmatpush1.bf16.msra.mxu1 %v7775_v48  ;;  %v7873_v27 = vld [vmem:[#allocation2 + $0x3cc] ss:$16 sps:$4 sm:$0xff]   ;;  %v7868_v48 = vld [vmem:[#allocation2 + $0x3c0] ss:$16 sps:$4 sm:$0xff]  }
 0x251   :  { %3607 = vmatprep.subr.bf16.mxu0 %v7780_v49  ;;  %3680 = vmatprep.subr.bf16.mxu1 %v7783_v12  ;;  %v7871_v49 = vld [vmem:[#allocation2 + $0x3c8] ss:$16 sps:$4 sm:$0xff]   ;;  %v7876_v12 = vld [vmem:[#allocation2 + $0x3e4] ss:$16 sps:$4 sm:$0xff]  }
 0x254   :  { %3608 = vmatpush1.bf16.msra.mxu0 %v7778_v36  ;;  %3681 = vmatpush1.bf16.msra.mxu1 %v7781_v50  ;;  %v7879_v36 = vld [vmem:[#allocation2 + $0x3ec] ss:$16 sps:$4 sm:$0xff]   ;;  %v7874_v50 = vld [vmem:[#allocation2 + $0x3e0] ss:$16 sps:$4 sm:$0xff]  }
 0x255   :  { %4248 = vmatprep.subr.bf16.mxu0 %v7786_v31  ;;  %4289 = vmatprep.subr.bf16.mxu1 %v7789_v13  ;;  %v7877_v31 = vld [vmem:[#allocation2 + $0x3e8] ss:$16 sps:$4 sm:$0xff]   ;;  %v7882_v13 = vld [vmem:[#allocation2 + $0x4] ss:$16 sps:$4 sm:$0xff]  }
 0x257   :  { %3610 = vmatmul.mubr.bf16.vlgmr.msra.gmra.mrb[48].mxu0 %v9094_v17  ;;  %3683 = vmatmul.mubr.bf16.vlgmr.msra.gmra.mrb[48].mxu1 %v9094_v17  ;;  %v7807_v17 = vld [vmem:[#allocation2 + $0x26c] ss:$16 sps:$4 sm:$0xff]  }
 0x258   :  { %3619 = vmatprep.mubr.bf16.mxu0 %v9162_v11  ;;  %3692 = vmatprep.mubr.bf16.mxu1 %v9162_v11  ;;  %v7802_v11 = vld [vmem:[#allocation2 + $0x260] ss:$16 sps:$4 sm:$0xff]  }
 0x259   :  { %4249 = vmatpush1.bf16.msra.mxu0 %v7784_v53  ;;  %4290 = vmatpush1.bf16.msra.mxu1 %v7787_v37  ;;  %v7885_v53 = vld [vmem:[#allocation2 + $0xc] ss:$16 sps:$4 sm:$0xff]  }
 0x25a   :  { %4250 = vmatprep.subr.bf16.mxu0 %v7792_v24  ;;  %4291 = vmatprep.subr.bf16.mxu1 %v7795_v30  ;;  %v3771_v30 = vld [vmem:[%s10167_s5] sm:$0x3] }
 0x25d   :  { %4251 = vmatpush1.bf16.msra.mxu0 %v7790_v51  ;;  %4292 = vmatpush1.bf16.msra.mxu1 %v7793_v44 }
 0x25e   :  { %4252 = vmatprep.subr.bf16.mxu0 %v7798_v39  ;;  %4293 = vmatprep.subr.bf16.mxu1 %v7801_v15 }
 0x25f   :  { %3620 = vmatmul.mubr.bf16.gmra.mrb[52].mxu0 %v9151_v10  ;;  %3693 = vmatmul.mubr.bf16.gmra.mrb[52].mxu1 %v9151_v10  ;;  %v7819_v10 = vld [vmem:[#allocation2 + $0x2ac] ss:$16 sps:$4 sm:$0xff]  }
 0x260   :  { %3629 = vmatprep.mubr.bf16.mxu0 %v9222_v59  ;;  %3702 = vmatprep.mubr.bf16.mxu1 %v9222_v59  ;;  %v7814_v59 = vld [vmem:[#allocation2 + $0x2a0] ss:$16 sps:$4 sm:$0xff]  }
 0x261   :  { %4253 = vmatpush1.bf16.msra.mxu0 %v7796_v52  ;;  %4294 = vmatpush1.bf16.msra.mxu1 %v7799_v38 }
 0x262   :  { %4254 = vmatprep.subr.bf16.mxu0 %v7804_v54  ;;  %4295 = vmatprep.subr.bf16.mxu1 %v7807_v17  ;;  %v10212_v17 = vld [vmem:[#allocation9_spill] sm:$0xff] }
 0x265   :  { %4255 = vmatpush1.bf16.msra.mxu0 %v7802_v11  ;;  %4296 = vmatpush1.bf16.msra.mxu1 %v7805_v5  ;;  %v10024_v11 = vrot.slane %v3771_v30, %v10212_v17 }
 0x266   :  { %4256 = vmatprep.subr.bf16.mxu0 %v7810_v55  ;;  %4297 = vmatprep.subr.bf16.mxu1 %v7813_v57 }
 0x267   :  { %3630 = vmatmul.mubr.bf16.gmra.mrb[56].mxu0 %v9211_v19  ;;  %3703 = vmatmul.mubr.bf16.gmra.mrb[56].mxu1 %v9211_v19  ;;  %v7831_v19 = vld [vmem:[#allocation2 + $0x2ec] ss:$16 sps:$4 sm:$0xff]  }
 0x268   :  { %3639 = vmatprep.mubr.bf16.mxu0 %v9280_v45  ;;  %3712 = vmatprep.mubr.bf16.mxu1 %v9280_v45  ;;  %v7826_v45 = vld [vmem:[#allocation2 + $0x2e0] ss:$16 sps:$4 sm:$0xff]  }
 0x269   :  { %4257 = vmatpush1.bf16.msra.mxu0 %v7808_v23  ;;  %4298 = vmatpush1.bf16.msra.mxu1 %v7811_v6 }
 0x26a   :  { %4258 = vmatprep.subr.bf16.mxu0 %v7816_v35  ;;  %4299 = vmatprep.subr.bf16.mxu1 %v7819_v10 }
 0x26d   :  { %4259 = vmatpush1.bf16.msra.mxu0 %v7814_v59  ;;  %4300 = vmatpush1.bf16.msra.mxu1 %v7817_v14 }
 0x26e   :  { %4260 = vmatprep.subr.bf16.mxu0 %v7822_v29  ;;  %4301 = vmatprep.subr.bf16.mxu1 %v7825_v58 }
 0x26f   :  { %3640 = vmatmul.mubr.bf16.gmra.mrb[60].mxu0 %v9272_v42  ;;  %3713 = vmatmul.mubr.bf16.gmra.mrb[60].mxu1 %v9272_v42  ;;  %v7841_v42 = vld [vmem:[#allocation2 + $0x328] ss:$16 sps:$4 sm:$0xff]  }
 0x271   :  { %4261 = vmatpush1.bf16.msra.mxu0 %v7820_v40  ;;  %4302 = vmatpush1.bf16.msra.mxu1 %v7823_v25 }
 0x272   :  { %4262 = vmatprep.subr.bf16.mxu0 %v7828_v41  ;;  %4303 = vmatprep.subr.bf16.mxu1 %v7831_v19  ;;  %v10030_v19 = vrot.slane %v3771_v30, %v9004_v32  ;;  %v7889_v30 = vld [vmem:[#allocation2 + $0x28] ss:$16 sps:$4 sm:$0xff]  }
 0x275   :  { %4263 = vmatpush1.bf16.msra.mxu0 %v7826_v45  ;;  %4304 = vmatpush1.bf16.msra.mxu1 %v7829_v28 }
 0x276   :  { %4264 = vmatprep.subr.bf16.mxu0 %v7834_v43  ;;  %4305 = vmatprep.subr.bf16.mxu1 %v7837_v46 }
 0x279   :  { %4265 = vmatpush1.bf16.msra.mxu0 %v7832_v16  ;;  %4306 = vmatpush1.bf16.msra.mxu1 %v7835_v33 }
 0x27a   :  { %4266 = vmatprep.subr.bf16.mxu0 %v7840_v34  ;;  %4307 = vmatprep.subr.bf16.mxu1 %v7843_v0 }
 0x27d   :  { %4267 = vmatpush1.bf16.msra.mxu0 %v7838_v63  ;;  %4308 = vmatpush1.bf16.msra.mxu1 %v7841_v42 }
 0x27e   :  { %4268 = vmatprep.subr.bf16.mxu0 %v7846_v7  ;;  %4309 = vmatprep.subr.bf16.mxu1 %v7849_v18 }
 0x281   :  { %4269 = vmatpush1.bf16.msra.mxu0 %v7844_v56  ;;  %4310 = vmatpush1.bf16.msra.mxu1 %v7847_v4 }
 0x282   :  { %4270 = vmatprep.subr.bf16.mxu0 %v7852_v26  ;;  %4311 = vmatprep.subr.bf16.mxu1 %v7855_v21 }
 0x285   :  { %4271 = vmatpush1.bf16.msra.mxu0 %v7850_v22  ;;  %4312 = vmatpush1.bf16.msra.mxu1 %v7853_v9 }
 0x286   :  { %4272 = vmatprep.subr.bf16.mxu0 %v7858_v47  ;;  %4313 = vmatprep.subr.bf16.mxu1 %v7861_v3 }
 0x289   :  { %4273 = vmatpush1.bf16.msra.mxu0 %v7856_v1  ;;  %4314 = vmatpush1.bf16.msra.mxu1 %v7859_v61 }
 0x28a   :  { %4274 = vmatprep.subr.bf16.mxu0 %v7864_v62  ;;  %4315 = vmatprep.subr.bf16.mxu1 %v7867_v60 }
 0x28d   :  { %4275 = vmatpush1.bf16.msra.mxu0 %v7862_v2  ;;  %4316 = vmatpush1.bf16.msra.mxu1 %v7865_v20  ;;  %v7880_v20 = vld [vmem:[#allocation2] ss:$16 sps:$4 sm:$0xff]  }
 0x28e   :  { %4276 = vmatprep.subr.bf16.mxu0 %v7870_v8  ;;  %4317 = vmatprep.subr.bf16.mxu1 %v7873_v27  ;;  %v7883_v8 = vld [vmem:[#allocation2 + $0x8] ss:$16 sps:$4 sm:$0xff]  }
 0x291   :  { %4277 = vmatpush1.bf16.msra.mxu0 %v7868_v48  ;;  %4318 = vmatpush1.bf16.msra.mxu1 %v7871_v49 }
 0x292   :  { %4278 = vmatprep.subr.bf16.mxu0 %v7876_v12  ;;  %4319 = vmatprep.subr.bf16.mxu1 %v7879_v36  ;;  %v7888_v12 = vld [vmem:[#allocation2 + $0x24] ss:$16 sps:$4 sm:$0xff]   ;;  %v7891_v36 = vld [vmem:[#allocation2 + $0x2c] ss:$16 sps:$4 sm:$0xff]  }
 0x295   :  { %4279 = vmatpush1.bf16.msra.mxu0 %v7874_v50  ;;  %4320 = vmatpush1.bf16.msra.mxu1 %v7877_v31 }
 0x296   :  { %4650 = vmatprep.subr.bf16.mxu0 %v7882_v13  ;;  %4691 = vmatprep.subr.bf16.mxu1 %v7885_v53 }
 0x32a   :  { %v3611_v37 = vpop.f32.mrb[48].mxu0  ;;  %v3684_v24 = vpop.f32.mrb[48].mxu1 }
 0x32b   :  { %v3755_v51 = vmax.f32 %v3611_v37, %v3684_v24  ;;  %v3613_v44 = vpop.f32.mrb[49].mxu0  ;;  %v3686_v39 = vpop.f32.mrb[49].mxu1  ;;  %v7886_v24 = vld [vmem:[#allocation2 + $0x20] ss:$16 sps:$4 sm:$0xff]  }
 0x32c   :  { %v3756_v15 = vmax.f32 %v3613_v44, %v3686_v39  ;;  %v3615_v52 = vpop.f32.mrb[50].mxu0  ;;  %v3688_v38 = vpop.f32.mrb[50].mxu1 }
 0x32d   :  { %v3757_v54 = vmax.f32 %v3615_v52, %v3688_v38  ;;  %v3617_v5 = vpop.f32.mrb[51].mxu0  ;;  %v3690_v55 = vpop.f32.mrb[51].mxu1  ;;  %v7897_v52 = vld [vmem:[#allocation2 + $0x4c] ss:$16 sps:$4 sm:$0xff]  }
 0x32e   :  { %v3758_v57 = vmax.f32 %v3617_v5, %v3690_v55 }
 0x32f   :  { %v3772_v23 = vmax.f32 %v3755_v51, %v3757_v54 }
 0x330   :  { %v3773_v6 = vmax.f32 %v3756_v15, %v3758_v57  ;;  %v7894_v15 = vld [vmem:[#allocation2 + $0x44] ss:$16 sps:$4 sm:$0xff]  }
 0x331   :  { %v10027_v35 = vadd.f32 %v10024_v11, %v3772_v23 }
 0x332   :  { %v3621_v10 = vpop.f32.mrb[52].mxu0  ;;  %v3694_v59 = vpop.f32.mrb[52].mxu1  ;;  %v3786_v34 = vadd.f32 %v10030_v19, %v3773_v6 }
 0x333   :  { %v3759_v14 = vmax.f32 %v3621_v10, %v3694_v59  ;;  %v3623_v29 = vpop.f32.mrb[53].mxu0  ;;  %v3696_v58 = vpop.f32.mrb[53].mxu1  ;;  %v7892_v10 = vld [vmem:[#allocation2 + $0x40] ss:$16 sps:$4 sm:$0xff]   ;;  %v7895_v59 = vld [vmem:[#allocation2 + $0x48] ss:$16 sps:$4 sm:$0xff]  }
 0x334   :  { %v3760_v40 = vmax.f32 %v3623_v29, %v3696_v58  ;;  %v3625_v25 = vpop.f32.mrb[54].mxu0  ;;  %v3698_v41 = vpop.f32.mrb[54].mxu1  ;;  %v3788_v62 = vmax.f32 %v3786_v34, 0.0  ;;  %v7900_v29 = vld [vmem:[#allocation2 + $0x64] ss:$16 sps:$4 sm:$0xff]  }
 0x335   :  { %v3761_v45 = vmax.f32 %v3625_v25, %v3698_v41  ;;  %v3627_v28 = vpop.f32.mrb[55].mxu0  ;;  %v3700_v43 = vpop.f32.mrb[55].mxu1  ;;  %v7903_v58 = vld [vmem:[#allocation2 + $0x6c] ss:$16 sps:$4 sm:$0xff]   ;;  %v7912_v34 = vld [vmem:[#allocation2 + $0xa4] ss:$16 sps:$4 sm:$0xff]  }
 0x336   :  { %v3762_v46 = vmax.f32 %v3627_v28, %v3700_v43  ;;  %v3790_v31 = vpack.c.bf16 %v3788_v62, %v3788_v62  ;;  %v7901_v28 = vld [vmem:[#allocation2 + $0x68] ss:$16 sps:$4 sm:$0xff]   ;;  %v7906_v43 = vld [vmem:[#allocation2 + $0x84] ss:$16 sps:$4 sm:$0xff]   ;;  %v7934_v62 = vld [vmem:[#allocation2 + $0x120] ss:$16 sps:$4 sm:$0xff]  }
 0x337   :  { %v3855_v16 = vmax.f32 %v3759_v14, %v3761_v45  ;;  %v7898_v45 = vld [vmem:[#allocation2 + $0x60] ss:$16 sps:$4 sm:$0xff]  }
 0x338   :  { %v3856_v33 = vmax.f32 %v3760_v40, %v3762_v46  ;;  %v7909_v46 = vld [vmem:[#allocation2 + $0x8c] ss:$16 sps:$4 sm:$0xff]  }
 0x339   :  { %v3857_v0 = vadd.f32 %v3855_v16, %v10024_v11  ;;  %v7904_v16 = vld [vmem:[#allocation2 + $0x80] ss:$16 sps:$4 sm:$0xff]  }
 0x33a   :  { %v3858_v63 = vadd.f32 %v3856_v33, %v10030_v19  ;;  %v3631_v42 = vpop.f32.mrb[56].mxu0  ;;  %v3704_v7 = vpop.f32.mrb[56].mxu1  ;;  %v7907_v33 = vld [vmem:[#allocation2 + $0x88] ss:$16 sps:$4 sm:$0xff]  }
 0x33b   :  { %v3859_v18 = vmax.f32 %v3857_v0, 0.0  ;;  %v3763_v56 = vmax.f32 %v3631_v42, %v3704_v7  ;;  %v3633_v4 = vpop.f32.mrb[57].mxu0  ;;  %v3706_v26 = vpop.f32.mrb[57].mxu1  ;;  %v7913_v0 = vld [vmem:[#allocation2 + $0xa8] ss:$16 sps:$4 sm:$0xff]  }
 0x33c   :  { %v3764_v21 = vmax.f32 %v3633_v4, %v3706_v26  ;;  %v3635_v22 = vpop.f32.mrb[58].mxu0  ;;  %v3708_v9 = vpop.f32.mrb[58].mxu1  ;;  %v3860_v47 = vmax.f32 %v3858_v63, 0.0  ;;  %v7918_v63 = vld [vmem:[#allocation2 + $0xc4] ss:$16 sps:$4 sm:$0xff]  }
 0x33d   :  { %v3765_v3 = vmax.f32 %v3635_v22, %v3708_v9  ;;  %v3637_v1 = vpop.f32.mrb[59].mxu0  ;;  %v3710_v61 = vpop.f32.mrb[59].mxu1  ;;  %v3861_v27 = vpack.c.bf16 %v3859_v18, %v3859_v18  ;;  %v7921_v42 = vld [vmem:[#allocation2 + $0xcc] ss:$16 sps:$4 sm:$0xff]   ;;  %v7916_v7 = vld [vmem:[#allocation2 + $0xc0] ss:$16 sps:$4 sm:$0xff]  }
 0x33e   :  { %v3766_v60 = vmax.f32 %v3637_v1, %v3710_v61  ;;  %v3862_v2 = vpack.c.bf16 %v3860_v47, %v3860_v47  ;;  %v7919_v18 = vld [vmem:[#allocation2 + $0xc8] ss:$16 sps:$4 sm:$0xff]   ;;  %v7927_v4 = vld [vmem:[#allocation2 + $0xec] ss:$16 sps:$4 sm:$0xff]   ;;  %v7922_v26 = vld [vmem:[#allocation2 + $0xe0] ss:$16 sps:$4 sm:$0xff]  }
 0x33f   :  { %v4732_v48 = vmax.f32 %v3763_v56, %v3765_v3  ;;  %v7924_v56 = vld [vmem:[#allocation2 + $0xe4] ss:$16 sps:$4 sm:$0xff]   ;;  %v7933_v9 = vld [vmem:[#allocation2 + $0x10c] ss:$16 sps:$4 sm:$0xff]   ;;  %v7928_v47 = vld [vmem:[#allocation2 + $0x100] ss:$16 sps:$4 sm:$0xff]  }
 0x340   :  { %v4733_v49 = vmax.f32 %v3764_v21, %v3766_v60  ;;  %4280 = vmatprep.mubr.bf16.mxu0 %v3862_v2  ;;  %4321 = vmatprep.mubr.bf16.mxu1 %v3862_v2  ;;  %v7925_v21 = vld [vmem:[#allocation2 + $0xe8] ss:$16 sps:$4 sm:$0xff]   ;;  %v7930_v22 = vld [vmem:[#allocation2 + $0x104] ss:$16 sps:$4 sm:$0xff]   ;;  %v7939_v61 = vld [vmem:[#allocation2 + $0x12c] ss:$16 sps:$4 sm:$0xff]  }
 0x341   :  { %v10036_v50 = vadd.f32 %v4732_v48, %v10024_v11  ;;  %4281 = vmatmul.mubr.bf16.vlgmr.msra.gmra.mrb[64].mxu0 %v3861_v27  ;;  %4322 = vmatmul.mubr.bf16.vlgmr.msra.gmra.mrb[64].mxu1 %v3861_v27  ;;  %v7931_v3 = vld [vmem:[#allocation2 + $0x108] ss:$16 sps:$4 sm:$0xff]   ;;  %v7936_v1 = vld [vmem:[#allocation2 + $0x124] ss:$16 sps:$4 sm:$0xff]  }
 0x342   :  { %v10039_v13 = vadd.f32 %v4733_v49, %v10030_v19  ;;  %4651 = vmatpush1.bf16.msra.mxu0 %v7880_v20  ;;  %4692 = vmatpush1.bf16.msra.mxu1 %v7883_v8  ;;  %v3641_v53 = vpop.f32.mrb[60].mxu0  ;;  %v3714_v37 = vpop.f32.mrb[60].mxu1  ;;  %v7937_v60 = vld [vmem:[#allocation2 + $0x128] ss:$16 sps:$4 sm:$0xff]   ;;  %v7942_v2 = vld [vmem:[#allocation2 + $0x144] ss:$16 sps:$4 sm:$0xff]  }
 0x343   :  { %v3767_v51 = vmax.f32 %v3641_v53, %v3714_v37  ;;  %4682 = vmatprep.mubr.bf16.mxu0 %v3790_v31  ;;  %4723 = vmatprep.mubr.bf16.mxu1 %v3790_v31  ;;  %v3643_v44 = vpop.f32.mrb[61].mxu0  ;;  %v3716_v39 = vpop.f32.mrb[61].mxu1  ;;  %v7945_v20 = vld [vmem:[#allocation2 + $0x14c] ss:$16 sps:$4 sm:$0xff]   ;;  %v7940_v8 = vld [vmem:[#allocation2 + $0x140] ss:$16 sps:$4 sm:$0xff]  }
 0x344   :  { %v3768_v38 = vmax.f32 %v3643_v44, %v3716_v39  ;;  %v3645_v54 = vpop.f32.mrb[62].mxu0  ;;  %v3718_v5 = vpop.f32.mrb[62].mxu1  ;;  %4652 = vmatprep.subr.bf16.mxu0 %v7888_v12  ;;  %4693 = vmatprep.subr.bf16.mxu1 %v7891_v36  ;;  %v7943_v27 = vld [vmem:[#allocation2 + $0x148] ss:$16 sps:$4 sm:$0xff]   ;;  %v7948_v48 = vld [vmem:[#allocation2 + $0x164] ss:$16 sps:$4 sm:$0xff]  }
 0x345   :  { %v3769_v55 = vmax.f32 %v3645_v54, %v3718_v5  ;;  %v3647_v57 = vpop.f32.mrb[63].mxu0  ;;  %v3720_v23 = vpop.f32.mrb[63].mxu1  ;;  %v7951_v49 = vld [vmem:[#allocation2 + $0x16c] ss:$16 sps:$4 sm:$0xff]   ;;  %v7946_v12 = vld [vmem:[#allocation2 + $0x160] ss:$16 sps:$4 sm:$0xff]  }
 0x346   :  { %v3770_v6 = vmax.f32 %v3647_v57, %v3720_v23  ;;  %4653 = vmatpush1.bf16.msra.mxu0 %v7886_v24  ;;  %4694 = vmatpush1.bf16.msra.mxu1 %v7889_v30  ;;  %v7949_v36 = vld [vmem:[#allocation2 + $0x168] ss:$16 sps:$4 sm:$0xff]   ;;  %v7954_v31 = vld [vmem:[#allocation2 + $0x184] ss:$16 sps:$4 sm:$0xff]   ;;  %v7957_v53 = vld [vmem:[#allocation2 + $0x18c] ss:$16 sps:$4 sm:$0xff]  }
 0x347   :  { %v5211_v14 = vmax.f32 %v3767_v51, %v3769_v55  ;;  %4654 = vmatprep.subr.bf16.mxu0 %v7894_v15  ;;  %4695 = vmatprep.subr.bf16.mxu1 %v7897_v52  ;;  %v7952_v37 = vld [vmem:[#allocation2 + $0x180] ss:$16 sps:$4 sm:$0xff]   ;;  %v7955_v24 = vld [vmem:[#allocation2 + $0x188] ss:$16 sps:$4 sm:$0xff]   ;;  %v7960_v30 = vld [vmem:[#allocation2 + $0x1a4] ss:$16 sps:$4 sm:$0xff]  }
 0x348   :  { %v5212_v40 = vmax.f32 %v3768_v38, %v3770_v6  ;;  %v7963_v51 = vld [vmem:[#allocation2 + $0x1ac] ss:$16 sps:$4 sm:$0xff]   ;;  %v7958_v44 = vld [vmem:[#allocation2 + $0x1a0] ss:$16 sps:$4 sm:$0xff]   ;;  %v7961_v39 = vld [vmem:[#allocation2 + $0x1a8] ss:$16 sps:$4 sm:$0xff]  }
 0x349   :  { %v10042_v25 = vadd.f32 %v5211_v14, %v10024_v11  ;;  %v7915_v11 = vld [vmem:[#allocation2 + $0xac] ss:$16 sps:$4 sm:$0xff]   ;;  %v7966_v15 = vld [vmem:[#allocation2 + $0x1c4] ss:$16 sps:$4 sm:$0xff]   ;;  %v7964_v38 = vld [vmem:[#allocation2 + $0x1c0] ss:$16 sps:$4 sm:$0xff]  }
 0x34a   :  { %v10045_v41 = vadd.f32 %v5212_v40, %v10030_v19  ;;  %4655 = vmatpush1.bf16.msra.mxu0 %v7892_v10  ;;  %4696 = vmatpush1.bf16.msra.mxu1 %v7895_v59  ;;  %v7910_v19 = vld [vmem:[#allocation2 + $0xa0] ss:$16 sps:$4 sm:$0xff]   ;;  %v7969_v52 = vld [vmem:[#allocation2 + $0x1cc] ss:$16 sps:$4 sm:$0xff]   ;;  %v7967_v54 = vld [vmem:[#allocation2 + $0x1c8] ss:$16 sps:$4 sm:$0xff]  }
 0x34b   :  { %4656 = vmatprep.subr.bf16.mxu0 %v7900_v29  ;;  %4697 = vmatprep.subr.bf16.mxu1 %v7903_v58  ;;  %v7972_v5 = vld [vmem:[#allocation2 + $0x1e4] ss:$16 sps:$4 sm:$0xff]   ;;  %v7975_v55 = vld [vmem:[#allocation2 + $0x1ec] ss:$16 sps:$4 sm:$0xff]   ;;  %v7970_v57 = vld [vmem:[#allocation2 + $0x1e0] ss:$16 sps:$4 sm:$0xff]  }
 0x34c   :  { %v7973_v23 = vld [vmem:[#allocation2 + $0x1e8] ss:$16 sps:$4 sm:$0xff]   ;;  %v3787_v6 = vmax.f32 %v10027_v35, 0.0  ;;  %v7978_v10 = vld [vmem:[#allocation2 + $0x404] ss:$16 sps:$4 sm:$0xff]   ;;  %v4737_v14 = vmax.f32 %v10039_v13, 0.0 }
 0x34d   :  { %v7981_v59 = vld [vmem:[#allocation2 + $0x40c] ss:$16 sps:$4 sm:$0xff]   ;;  %v7976_v29 = vld [vmem:[#allocation2 + $0x400] ss:$16 sps:$4 sm:$0xff]   ;;  %v7979_v40 = vld [vmem:[#allocation2 + $0x408] ss:$16 sps:$4 sm:$0xff]  }
 0x34e   :  { %4657 = vmatpush1.bf16.msra.mxu0 %v7898_v45  ;;  %4698 = vmatpush1.bf16.msra.mxu1 %v7901_v28  ;;  %v3789_v58 = vpack.c.bf16 %v3787_v6, %v3787_v6  ;;  %v4739_v45 = vpack.c.bf16 %v4737_v14, %v4737_v14  ;;  %v7984_v28 = vld [vmem:[#allocation2 + $0x424] ss:$16 sps:$4 sm:$0xff]   ;;  %v7982_v35 = vld [vmem:[#allocation2 + $0x420] ss:$16 sps:$4 sm:$0xff]   ;;  %v7993_v13 = vld [vmem:[#allocation2 + $0x44c] ss:$16 sps:$4 sm:$0xff]  }
 0x34f   :  { %4658 = vmatprep.subr.bf16.mxu0 %v7906_v43  ;;  %4699 = vmatprep.subr.bf16.mxu1 %v7909_v46  ;;  %v7987_v43 = vld [vmem:[#allocation2 + $0x42c] ss:$16 sps:$4 sm:$0xff]   ;;  %v7985_v46 = vld [vmem:[#allocation2 + $0x428] ss:$16 sps:$4 sm:$0xff]   ;;  %v8060_v14 = vld [vmem:[#allocation2 + $0x5c0] ss:$16 sps:$4 sm:$0xff]  }
 0x350   :  { %v8057_v6 = vld [vmem:[#allocation2 + $0x5a8] ss:$16 sps:$4 sm:$0xff]  }
 0x352   :  { %4659 = vmatpush1.bf16.msra.mxu0 %v7904_v16  ;;  %4700 = vmatpush1.bf16.msra.mxu1 %v7907_v33  ;;  %v7990_v16 = vld [vmem:[#allocation2 + $0x444] ss:$16 sps:$4 sm:$0xff]   ;;  %v7988_v33 = vld [vmem:[#allocation2 + $0x440] ss:$16 sps:$4 sm:$0xff]  }
 0x353   :  { %4660 = vmatprep.subr.bf16.mxu0 %v7912_v34  ;;  %4701 = vmatprep.subr.bf16.mxu1 %v7915_v11  ;;  %v7991_v34 = vld [vmem:[#allocation2 + $0x448] ss:$16 sps:$4 sm:$0xff]   ;;  %v7996_v11 = vld [vmem:[#allocation2 + $0x464] ss:$16 sps:$4 sm:$0xff]  }
 0x356   :  { %4661 = vmatpush1.bf16.msra.mxu0 %v7910_v19  ;;  %4702 = vmatpush1.bf16.msra.mxu1 %v7913_v0  ;;  %v7999_v19 = vld [vmem:[#allocation2 + $0x46c] ss:$16 sps:$4 sm:$0xff]   ;;  %v7994_v0 = vld [vmem:[#allocation2 + $0x460] ss:$16 sps:$4 sm:$0xff]  }
 0x357   :  { %4662 = vmatprep.subr.bf16.mxu0 %v7918_v63  ;;  %4703 = vmatprep.subr.bf16.mxu1 %v7921_v42  ;;  %v7997_v63 = vld [vmem:[#allocation2 + $0x468] ss:$16 sps:$4 sm:$0xff]   ;;  %v8002_v42 = vld [vmem:[#allocation2 + $0x484] ss:$16 sps:$4 sm:$0xff]  }
 0x35a   :  { %4663 = vmatpush1.bf16.msra.mxu0 %v7916_v7  ;;  %4704 = vmatpush1.bf16.msra.mxu1 %v7919_v18  ;;  %v8005_v7 = vld [vmem:[#allocation2 + $0x48c] ss:$16 sps:$4 sm:$0xff]   ;;  %v8000_v18 = vld [vmem:[#allocation2 + $0x480] ss:$16 sps:$4 sm:$0xff]  }
 0x35b   :  { %4664 = vmatprep.subr.bf16.mxu0 %v7924_v56  ;;  %4705 = vmatprep.subr.bf16.mxu1 %v7927_v4  ;;  %v8003_v56 = vld [vmem:[#allocation2 + $0x488] ss:$16 sps:$4 sm:$0xff]   ;;  %v8008_v4 = vld [vmem:[#allocation2 + $0x4a4] ss:$16 sps:$4 sm:$0xff]  }
 0x35e   :  { %4665 = vmatpush1.bf16.msra.mxu0 %v7922_v26  ;;  %4706 = vmatpush1.bf16.msra.mxu1 %v7925_v21  ;;  %v8011_v26 = vld [vmem:[#allocation2 + $0x4ac] ss:$16 sps:$4 sm:$0xff]   ;;  %v8006_v21 = vld [vmem:[#allocation2 + $0x4a0] ss:$16 sps:$4 sm:$0xff]  }
 0x35f   :  { %4666 = vmatprep.subr.bf16.mxu0 %v7930_v22  ;;  %4707 = vmatprep.subr.bf16.mxu1 %v7933_v9  ;;  %v8009_v22 = vld [vmem:[#allocation2 + $0x4a8] ss:$16 sps:$4 sm:$0xff]   ;;  %v8014_v9 = vld [vmem:[#allocation2 + $0x4c4] ss:$16 sps:$4 sm:$0xff]  }
 0x362   :  { %4667 = vmatpush1.bf16.msra.mxu0 %v7928_v47  ;;  %4708 = vmatpush1.bf16.msra.mxu1 %v7931_v3  ;;  %v8017_v47 = vld [vmem:[#allocation2 + $0x4cc] ss:$16 sps:$4 sm:$0xff]   ;;  %v8012_v3 = vld [vmem:[#allocation2 + $0x4c0] ss:$16 sps:$4 sm:$0xff]  }
 0x363   :  { %4668 = vmatprep.subr.bf16.mxu0 %v7936_v1  ;;  %4709 = vmatprep.subr.bf16.mxu1 %v7939_v61  ;;  %v8015_v1 = vld [vmem:[#allocation2 + $0x4c8] ss:$16 sps:$4 sm:$0xff]   ;;  %v8020_v61 = vld [vmem:[#allocation2 + $0x4e4] ss:$16 sps:$4 sm:$0xff]  }
 0x366   :  { %4669 = vmatpush1.bf16.msra.mxu0 %v7934_v62  ;;  %4710 = vmatpush1.bf16.msra.mxu1 %v7937_v60  ;;  %v8023_v62 = vld [vmem:[#allocation2 + $0x4ec] ss:$16 sps:$4 sm:$0xff]   ;;  %v8018_v60 = vld [vmem:[#allocation2 + $0x4e0] ss:$16 sps:$4 sm:$0xff]  }
 0x367   :  { %4670 = vmatprep.subr.bf16.mxu0 %v7942_v2  ;;  %4711 = vmatprep.subr.bf16.mxu1 %v7945_v20  ;;  %v8021_v2 = vld [vmem:[#allocation2 + $0x4e8] ss:$16 sps:$4 sm:$0xff]   ;;  %v8026_v20 = vld [vmem:[#allocation2 + $0x504] ss:$16 sps:$4 sm:$0xff]  }
 0x36a   :  { %4671 = vmatpush1.bf16.msra.mxu0 %v7940_v8  ;;  %4712 = vmatpush1.bf16.msra.mxu1 %v7943_v27  ;;  %v8029_v8 = vld [vmem:[#allocation2 + $0x50c] ss:$16 sps:$4 sm:$0xff]   ;;  %v8024_v27 = vld [vmem:[#allocation2 + $0x500] ss:$16 sps:$4 sm:$0xff]  }
 0x36b   :  { %4672 = vmatprep.subr.bf16.mxu0 %v7948_v48  ;;  %4713 = vmatprep.subr.bf16.mxu1 %v7951_v49  ;;  %v8027_v48 = vld [vmem:[#allocation2 + $0x508] ss:$16 sps:$4 sm:$0xff]   ;;  %v8032_v49 = vld [vmem:[#allocation2 + $0x524] ss:$16 sps:$4 sm:$0xff]  }
 0x36e   :  { %4673 = vmatpush1.bf16.msra.mxu0 %v7946_v12  ;;  %4714 = vmatpush1.bf16.msra.mxu1 %v7949_v36  ;;  %v8035_v12 = vld [vmem:[#allocation2 + $0x52c] ss:$16 sps:$4 sm:$0xff]   ;;  %v8030_v36 = vld [vmem:[#allocation2 + $0x520] ss:$16 sps:$4 sm:$0xff]  }
 0x36f   :  { %4674 = vmatprep.subr.bf16.mxu0 %v7954_v31  ;;  %4715 = vmatprep.subr.bf16.mxu1 %v7957_v53  ;;  %v8033_v31 = vld [vmem:[#allocation2 + $0x528] ss:$16 sps:$4 sm:$0xff]   ;;  %v8038_v53 = vld [vmem:[#allocation2 + $0x544] ss:$16 sps:$4 sm:$0xff]  }
 0x372   :  { %4675 = vmatpush1.bf16.msra.mxu0 %v7952_v37  ;;  %4716 = vmatpush1.bf16.msra.mxu1 %v7955_v24  ;;  %v8041_v37 = vld [vmem:[#allocation2 + $0x54c] ss:$16 sps:$4 sm:$0xff]   ;;  %v8036_v24 = vld [vmem:[#allocation2 + $0x540] ss:$16 sps:$4 sm:$0xff]  }
 0x373   :  { %4676 = vmatprep.subr.bf16.mxu0 %v7960_v30  ;;  %4717 = vmatprep.subr.bf16.mxu1 %v7963_v51  ;;  %v8039_v30 = vld [vmem:[#allocation2 + $0x548] ss:$16 sps:$4 sm:$0xff]   ;;  %v8044_v51 = vld [vmem:[#allocation2 + $0x564] ss:$16 sps:$4 sm:$0xff]  }
 0x376   :  { %4677 = vmatpush1.bf16.msra.mxu0 %v7958_v44  ;;  %4718 = vmatpush1.bf16.msra.mxu1 %v7961_v39  ;;  %v8047_v44 = vld [vmem:[#allocation2 + $0x56c] ss:$16 sps:$4 sm:$0xff]   ;;  %v8042_v39 = vld [vmem:[#allocation2 + $0x560] ss:$16 sps:$4 sm:$0xff]  }
 0x377   :  { %4678 = vmatprep.subr.bf16.mxu0 %v7966_v15  ;;  %4719 = vmatprep.subr.bf16.mxu1 %v7969_v52  ;;  %v8045_v15 = vld [vmem:[#allocation2 + $0x568] ss:$16 sps:$4 sm:$0xff]   ;;  %v8050_v52 = vld [vmem:[#allocation2 + $0x584] ss:$16 sps:$4 sm:$0xff]  }
 0x37a   :  { %4679 = vmatpush1.bf16.msra.mxu0 %v7964_v38  ;;  %4720 = vmatpush1.bf16.msra.mxu1 %v7967_v54  ;;  %v8053_v38 = vld [vmem:[#allocation2 + $0x58c] ss:$16 sps:$4 sm:$0xff]   ;;  %v8048_v54 = vld [vmem:[#allocation2 + $0x580] ss:$16 sps:$4 sm:$0xff]  }
 0x37b   :  { %4680 = vmatprep.subr.bf16.mxu0 %v7972_v5  ;;  %4721 = vmatprep.subr.bf16.mxu1 %v7975_v55  ;;  %v8051_v5 = vld [vmem:[#allocation2 + $0x588] ss:$16 sps:$4 sm:$0xff]   ;;  %v8056_v55 = vld [vmem:[#allocation2 + $0x5a4] ss:$16 sps:$4 sm:$0xff]  }
 0x37e   :  { %4681 = vmatpush1.bf16.msra.mxu0 %v7970_v57  ;;  %4722 = vmatpush1.bf16.msra.mxu1 %v7973_v23  ;;  %v8059_v57 = vld [vmem:[#allocation2 + $0x5ac] ss:$16 sps:$4 sm:$0xff]   ;;  %v8054_v23 = vld [vmem:[#allocation2 + $0x5a0] ss:$16 sps:$4 sm:$0xff]  }
 0x37f   :  { %5125 = vmatprep.subr.bf16.mxu0 %v7978_v10  ;;  %5166 = vmatprep.subr.bf16.mxu1 %v7981_v59  ;;  %v8062_v10 = vld [vmem:[#allocation2 + $0x5c4] ss:$16 sps:$4 sm:$0xff]   ;;  %v8065_v59 = vld [vmem:[#allocation2 + $0x5cc] ss:$16 sps:$4 sm:$0xff]  }
 0x381   :  { %4683 = vmatmul.mubr.bf16.vlgmr.msra.gmra.mrb[68].mxu0 %v3789_v58  ;;  %4724 = vmatmul.mubr.bf16.vlgmr.msra.gmra.mrb[68].mxu1 %v3789_v58  ;;  %v8068_v58 = vld [vmem:[#allocation2 + $0x5e4] ss:$16 sps:$4 sm:$0xff]  }
 0x382   :  { %5126 = vmatpush1.bf16.msra.mxu0 %v7976_v29  ;;  %5157 = vmatprep.mubr.bf16.mxu0 %v4739_v45  ;;  %v8063_v29 = vld [vmem:[#allocation2 + $0x5c8] ss:$16 sps:$4 sm:$0xff]  }
 0x383   :  { %5167 = vmatpush1.bf16.msra.mxu1 %v7979_v40  ;;  %5198 = vmatprep.mubr.bf16.mxu1 %v4739_v45  ;;  %v8071_v40 = vld [vmem:[#allocation2 + $0x5ec] ss:$16 sps:$4 sm:$0xff]   ;;  %v8066_v45 = vld [vmem:[#allocation2 + $0x5e0] ss:$16 sps:$4 sm:$0xff]  }
 0x384   :  { %5127 = vmatprep.subr.bf16.mxu0 %v7984_v28  ;;  %5168 = vmatprep.subr.bf16.mxu1 %v7987_v43  ;;  %v4736_v28 = vmax.f32 %v10036_v50, 0.0  ;;  %v8069_v43 = vld [vmem:[#allocation2 + $0x5e8] ss:$16 sps:$4 sm:$0xff]   ;;  %v8078_v50 = vld [vmem:[#allocation2 + $0x620] ss:$16 sps:$4 sm:$0xff]  }
 0x386   :  { %5128 = vmatpush1.bf16.msra.mxu0 %v7982_v35  ;;  %v8074_v35 = vld [vmem:[#allocation2 + $0x604] ss:$16 sps:$4 sm:$0xff]  }
 0x387   :  { %5169 = vmatpush1.bf16.msra.mxu1 %v7985_v46  ;;  %5129 = vmatprep.subr.bf16.mxu0 %v7990_v16  ;;  %v8077_v46 = vld [vmem:[#allocation2 + $0x60c] ss:$16 sps:$4 sm:$0xff]   ;;  %v5216_v16 = vmax.f32 %v10045_v41, 0.0 }
 0x388   :  { %5170 = vmatprep.subr.bf16.mxu1 %v7993_v13  ;;  %v8072_v13 = vld [vmem:[#allocation2 + $0x600] ss:$16 sps:$4 sm:$0xff]   ;;  %v8089_v41 = vld [vmem:[#allocation2 + $0x64c] ss:$16 sps:$4 sm:$0xff]  }
 0x38a   :  { %5130 = vmatpush1.bf16.msra.mxu0 %v7988_v33  ;;  %v4738_v33 = vpack.c.bf16 %v4736_v28, %v4736_v28  ;;  %v8158_v28 = vld [vmem:[#allocation2 + $0x7c4] ss:$16 sps:$4 sm:$0xff]  }
 0x38b   :  { %5171 = vmatpush1.bf16.msra.mxu1 %v7991_v34  ;;  %5131 = vmatprep.subr.bf16.mxu0 %v7996_v11  ;;  %v8075_v34 = vld [vmem:[#allocation2 + $0x608] ss:$16 sps:$4 sm:$0xff]   ;;  %v8080_v11 = vld [vmem:[#allocation2 + $0x624] ss:$16 sps:$4 sm:$0xff]  }
 0x38c   :  { %5172 = vmatprep.subr.bf16.mxu1 %v7999_v19  ;;  %v5218_v19 = vpack.c.bf16 %v5216_v16, %v5216_v16  ;;  %v8164_v16 = vld [vmem:[#allocation2 + $0x7e4] ss:$16 sps:$4 sm:$0xff]  }
 0x38e   :  { %5132 = vmatpush1.bf16.msra.mxu0 %v7994_v0  ;;  %v8083_v0 = vld [vmem:[#allocation2 + $0x62c] ss:$16 sps:$4 sm:$0xff]  }
 0x38f   :  { %5173 = vmatpush1.bf16.msra.mxu1 %v7997_v63  ;;  %5133 = vmatprep.subr.bf16.mxu0 %v8002_v42  ;;  %v8081_v63 = vld [vmem:[#allocation2 + $0x628] ss:$16 sps:$4 sm:$0xff]   ;;  %v8086_v42 = vld [vmem:[#allocation2 + $0x644] ss:$16 sps:$4 sm:$0xff]  }
 0x390   :  { %5174 = vmatprep.subr.bf16.mxu1 %v8005_v7  ;;  %v8084_v7 = vld [vmem:[#allocation2 + $0x640] ss:$16 sps:$4 sm:$0xff]  }
 0x392   :  { %5134 = vmatpush1.bf16.msra.mxu0 %v8000_v18  ;;  %v8087_v18 = vld [vmem:[#allocation2 + $0x648] ss:$16 sps:$4 sm:$0xff]  }
 0x393   :  { %5175 = vmatpush1.bf16.msra.mxu1 %v8003_v56  ;;  %5135 = vmatprep.subr.bf16.mxu0 %v8008_v4  ;;  %v8092_v56 = vld [vmem:[#allocation2 + $0x664] ss:$16 sps:$4 sm:$0xff]   ;;  %v8095_v4 = vld [vmem:[#allocation2 + $0x66c] ss:$16 sps:$4 sm:$0xff]  }
 0x394   :  { %5176 = vmatprep.subr.bf16.mxu1 %v8011_v26  ;;  %v8090_v26 = vld [vmem:[#allocation2 + $0x660] ss:$16 sps:$4 sm:$0xff]  }
 0x396   :  { %5136 = vmatpush1.bf16.msra.mxu0 %v8006_v21  ;;  %v8093_v21 = vld [vmem:[#allocation2 + $0x668] ss:$16 sps:$4 sm:$0xff]  }
 0x397   :  { %5177 = vmatpush1.bf16.msra.mxu1 %v8009_v22  ;;  %5137 = vmatprep.subr.bf16.mxu0 %v8014_v9  ;;  %v8098_v22 = vld [vmem:[#allocation2 + $0x684] ss:$16 sps:$4 sm:$0xff]   ;;  %v8101_v9 = vld [vmem:[#allocation2 + $0x68c] ss:$16 sps:$4 sm:$0xff]  }
 0x398   :  { %5178 = vmatprep.subr.bf16.mxu1 %v8017_v47  ;;  %v8096_v47 = vld [vmem:[#allocation2 + $0x680] ss:$16 sps:$4 sm:$0xff]  }
 0x39a   :  { %5138 = vmatpush1.bf16.msra.mxu0 %v8012_v3  ;;  %v8099_v3 = vld [vmem:[#allocation2 + $0x688] ss:$16 sps:$4 sm:$0xff]  }
 0x39b   :  { %5179 = vmatpush1.bf16.msra.mxu1 %v8015_v1  ;;  %5139 = vmatprep.subr.bf16.mxu0 %v8020_v61  ;;  %v8104_v1 = vld [vmem:[#allocation2 + $0x6a4] ss:$16 sps:$4 sm:$0xff]   ;;  %v8107_v61 = vld [vmem:[#allocation2 + $0x6ac] ss:$16 sps:$4 sm:$0xff]  }
 0x39c   :  { %5180 = vmatprep.subr.bf16.mxu1 %v8023_v62  ;;  %v8102_v62 = vld [vmem:[#allocation2 + $0x6a0] ss:$16 sps:$4 sm:$0xff]  }
 0x39e   :  { %5140 = vmatpush1.bf16.msra.mxu0 %v8018_v60  ;;  %v8105_v60 = vld [vmem:[#allocation2 + $0x6a8] ss:$16 sps:$4 sm:$0xff]  }
 0x39f   :  { %5181 = vmatpush1.bf16.msra.mxu1 %v8021_v2  ;;  %5141 = vmatprep.subr.bf16.mxu0 %v8026_v20  ;;  %v8110_v2 = vld [vmem:[#allocation2 + $0x6c4] ss:$16 sps:$4 sm:$0xff]   ;;  %v8113_v20 = vld [vmem:[#allocation2 + $0x6cc] ss:$16 sps:$4 sm:$0xff]  }
 0x3a0   :  { %5182 = vmatprep.subr.bf16.mxu1 %v8029_v8  ;;  %v8108_v8 = vld [vmem:[#allocation2 + $0x6c0] ss:$16 sps:$4 sm:$0xff]  }
 0x3a2   :  { %5142 = vmatpush1.bf16.msra.mxu0 %v8024_v27  ;;  %v8111_v27 = vld [vmem:[#allocation2 + $0x6c8] ss:$16 sps:$4 sm:$0xff]  }
 0x3a3   :  { %5183 = vmatpush1.bf16.msra.mxu1 %v8027_v48  ;;  %5143 = vmatprep.subr.bf16.mxu0 %v8032_v49  ;;  %v8116_v48 = vld [vmem:[#allocation2 + $0x6e4] ss:$16 sps:$4 sm:$0xff]   ;;  %v8119_v49 = vld [vmem:[#allocation2 + $0x6ec] ss:$16 sps:$4 sm:$0xff]  }
 0x3a4   :  { %5184 = vmatprep.subr.bf16.mxu1 %v8035_v12  ;;  %v8114_v12 = vld [vmem:[#allocation2 + $0x6e0] ss:$16 sps:$4 sm:$0xff]  }
 0x3a6   :  { %5144 = vmatpush1.bf16.msra.mxu0 %v8030_v36  ;;  %v8117_v36 = vld [vmem:[#allocation2 + $0x6e8] ss:$16 sps:$4 sm:$0xff]  }
 0x3a7   :  { %5185 = vmatpush1.bf16.msra.mxu1 %v8033_v31  ;;  %5145 = vmatprep.subr.bf16.mxu0 %v8038_v53  ;;  %v8122_v31 = vld [vmem:[#allocation2 + $0x704] ss:$16 sps:$4 sm:$0xff]   ;;  %v8125_v53 = vld [vmem:[#allocation2 + $0x70c] ss:$16 sps:$4 sm:$0xff]  }
 0x3a8   :  { %5186 = vmatprep.subr.bf16.mxu1 %v8041_v37  ;;  %v8120_v37 = vld [vmem:[#allocation2 + $0x700] ss:$16 sps:$4 sm:$0xff]  }
 0x3aa   :  { %5146 = vmatpush1.bf16.msra.mxu0 %v8036_v24  ;;  %v8123_v24 = vld [vmem:[#allocation2 + $0x708] ss:$16 sps:$4 sm:$0xff]  }
 0x3ab   :  { %5187 = vmatpush1.bf16.msra.mxu1 %v8039_v30  ;;  %5147 = vmatprep.subr.bf16.mxu0 %v8044_v51  ;;  %v8128_v30 = vld [vmem:[#allocation2 + $0x724] ss:$16 sps:$4 sm:$0xff]   ;;  %v8131_v51 = vld [vmem:[#allocation2 + $0x72c] ss:$16 sps:$4 sm:$0xff]  }
 0x3ac   :  { %5188 = vmatprep.subr.bf16.mxu1 %v8047_v44  ;;  %v8126_v44 = vld [vmem:[#allocation2 + $0x720] ss:$16 sps:$4 sm:$0xff]  }
 0x3ae   :  { %5148 = vmatpush1.bf16.msra.mxu0 %v8042_v39  ;;  %v8129_v39 = vld [vmem:[#allocation2 + $0x728] ss:$16 sps:$4 sm:$0xff]  }
 0x3af   :  { %5189 = vmatpush1.bf16.msra.mxu1 %v8045_v15  ;;  %5149 = vmatprep.subr.bf16.mxu0 %v8050_v52  ;;  %v8134_v15 = vld [vmem:[#allocation2 + $0x744] ss:$16 sps:$4 sm:$0xff]   ;;  %v8137_v52 = vld [vmem:[#allocation2 + $0x74c] ss:$16 sps:$4 sm:$0xff]  }
 0x3b0   :  { %5190 = vmatprep.subr.bf16.mxu1 %v8053_v38  ;;  %v8132_v38 = vld [vmem:[#allocation2 + $0x740] ss:$16 sps:$4 sm:$0xff]  }
 0x3b2   :  { %5150 = vmatpush1.bf16.msra.mxu0 %v8048_v54  ;;  %v8135_v54 = vld [vmem:[#allocation2 + $0x748] ss:$16 sps:$4 sm:$0xff]  }
 0x3b3   :  { %5191 = vmatpush1.bf16.msra.mxu1 %v8051_v5  ;;  %5151 = vmatprep.subr.bf16.mxu0 %v8056_v55  ;;  %v8140_v5 = vld [vmem:[#allocation2 + $0x764] ss:$16 sps:$4 sm:$0xff]   ;;  %v8143_v55 = vld [vmem:[#allocation2 + $0x76c] ss:$16 sps:$4 sm:$0xff]  }
 0x3b4   :  { %5192 = vmatprep.subr.bf16.mxu1 %v8059_v57  ;;  %v8138_v57 = vld [vmem:[#allocation2 + $0x760] ss:$16 sps:$4 sm:$0xff]  }
 0x3b6   :  { %5152 = vmatpush1.bf16.msra.mxu0 %v8054_v23  ;;  %v8141_v23 = vld [vmem:[#allocation2 + $0x768] ss:$16 sps:$4 sm:$0xff]  }
 0x3b7   :  { %5193 = vmatpush1.bf16.msra.mxu1 %v8057_v6  ;;  %5153 = vmatprep.subr.bf16.mxu0 %v8062_v10  ;;  %v8146_v6 = vld [vmem:[#allocation2 + $0x784] ss:$16 sps:$4 sm:$0xff]   ;;  %v8149_v10 = vld [vmem:[#allocation2 + $0x78c] ss:$16 sps:$4 sm:$0xff]  }
 0x3b8   :  { %5194 = vmatprep.subr.bf16.mxu1 %v8065_v59  ;;  %v8144_v59 = vld [vmem:[#allocation2 + $0x780] ss:$16 sps:$4 sm:$0xff]  }
 0x3ba   :  { %5154 = vmatpush1.bf16.msra.mxu0 %v8060_v14  ;;  %v8147_v14 = vld [vmem:[#allocation2 + $0x788] ss:$16 sps:$4 sm:$0xff]  }
 0x3bb   :  { %5195 = vmatpush1.bf16.msra.mxu1 %v8063_v29  ;;  %5155 = vmatprep.subr.bf16.mxu0 %v8068_v58  ;;  %v8152_v29 = vld [vmem:[#allocation2 + $0x7a4] ss:$16 sps:$4 sm:$0xff]   ;;  %v8155_v58 = vld [vmem:[#allocation2 + $0x7ac] ss:$16 sps:$4 sm:$0xff]  }
 0x3bc   :  { %5196 = vmatprep.subr.bf16.mxu1 %v8071_v40  ;;  %v8150_v40 = vld [vmem:[#allocation2 + $0x7a0] ss:$16 sps:$4 sm:$0xff]  }
 0x3be   :  { %5156 = vmatpush1.bf16.msra.mxu0 %v8066_v45  ;;  %v8153_v45 = vld [vmem:[#allocation2 + $0x7a8] ss:$16 sps:$4 sm:$0xff]  }
 0x3bf   :  { %5197 = vmatpush1.bf16.msra.mxu1 %v8069_v43  ;;  %5604 = vmatprep.subr.bf16.mxu0 %v8074_v35  ;;  %v8161_v43 = vld [vmem:[#allocation2 + $0x7cc] ss:$16 sps:$4 sm:$0xff]   ;;  %v8156_v35 = vld [vmem:[#allocation2 + $0x7c0] ss:$16 sps:$4 sm:$0xff]  }
 0x3c0   :  { %5645 = vmatprep.subr.bf16.mxu1 %v8077_v46  ;;  %v8159_v46 = vld [vmem:[#allocation2 + $0x7c8] ss:$16 sps:$4 sm:$0xff]  }
 0x3c1   :  { %5158 = vmatmul.mubr.bf16.vlgmr.msra.gmra.mrb[72].mxu0 %v4738_v33 }
 0x3c2   :  { %5199 = vmatmul.mubr.bf16.vlgmr.msra.gmra.mrb[72].mxu1 %v4738_v33  ;;  %5605 = vmatpush1.bf16.msra.mxu0 %v8072_v13  ;;  %v8167_v13 = vld [vmem:[#allocation2 + $0x7ec] ss:$16 sps:$4 sm:$0xff]   ;;  %v8162_v33 = vld [vmem:[#allocation2 + $0x7e0] ss:$16 sps:$4 sm:$0xff]  }
 0x3c3   :  { %5636 = vmatprep.mubr.bf16.mxu0 %v5218_v19  ;;  %5646 = vmatpush1.bf16.msra.mxu1 %v8075_v34  ;;  %v5215_v34 = vmax.f32 %v10042_v25, 0.0  ;;  %v8168_v25 = vld [vmem:[%s10170_s8 + $0x40] sm:$0xff]  }
 0x3c4   :  { %5677 = vmatprep.mubr.bf16.mxu1 %v5218_v19  ;;  %5606 = vmatprep.subr.bf16.mxu0 %v8080_v11  ;;  %v8165_v11 = vld [vmem:[#allocation2 + $0x7e8] ss:$16 sps:$4 sm:$0xff]  }
 0x3c5   :  { %5647 = vmatprep.subr.bf16.mxu1 %v8083_v0  ;;  %v5217_v19 = vpack.c.bf16 %v5215_v34, %v5215_v34 }
 0x3c6   :  { %5607 = vmatpush1.bf16.msra.mxu0 %v8078_v50 }
 0x3c7   :  { %5648 = vmatpush1.bf16.msra.mxu1 %v8081_v63  ;;  %5608 = vmatprep.subr.bf16.mxu0 %v8086_v42 }
 0x3c8   :  { %5649 = vmatprep.subr.bf16.mxu1 %v8089_v41 }
 0x3ca   :  { %5609 = vmatpush1.bf16.msra.mxu0 %v8084_v7 }
 0x3cb   :  { %5650 = vmatpush1.bf16.msra.mxu1 %v8087_v18  ;;  %5610 = vmatprep.subr.bf16.mxu0 %v8092_v56 }
 0x3cc   :  { %5651 = vmatprep.subr.bf16.mxu1 %v8095_v4  ;;  %v8169_v4 = vld [vmem:[%s10170_s8 + $0xc0] sm:$0xff]  }
 0x3ce   :  { %5611 = vmatpush1.bf16.msra.mxu0 %v8090_v26  ;;  %v8170_v26 = vld [vmem:[%s10170_s8] sm:$0xff]  }
 0x3cf   :  { %5652 = vmatpush1.bf16.msra.mxu1 %v8093_v21  ;;  %5612 = vmatprep.subr.bf16.mxu0 %v8098_v22  ;;  %v8171_v21 = vld [vmem:[%s10170_s8 + $0x80] sm:$0xff]   ;;  %v8172_v22 = vld [vmem:[%s10170_s8 + $0x48] sm:$0xff]  }
 0x3d0   :  { %5653 = vmatprep.subr.bf16.mxu1 %v8101_v9  ;;  %v8173_v9 = vld [vmem:[%s10170_s8 + $0xc8] sm:$0xff]  }
 0x3d2   :  { %5613 = vmatpush1.bf16.msra.mxu0 %v8096_v47  ;;  %v8174_v47 = vld [vmem:[%s10170_s8 + $0x8] sm:$0xff]  }
 0x3d3   :  { %5654 = vmatpush1.bf16.msra.mxu1 %v8099_v3  ;;  %5614 = vmatprep.subr.bf16.mxu0 %v8104_v1  ;;  %v8175_v3 = vld [vmem:[%s10170_s8 + $0x88] sm:$0xff]   ;;  %v8176_v1 = vld [vmem:[%s10170_s8 + $0x50] sm:$0xff]  }
 0x3d4   :  { %5655 = vmatprep.subr.bf16.mxu1 %v8107_v61  ;;  %v8177_v61 = vld [vmem:[%s10170_s8 + $0xd0] sm:$0xff]  }
 0x3d6   :  { %5615 = vmatpush1.bf16.msra.mxu0 %v8102_v62  ;;  %v8178_v62 = vld [vmem:[%s10170_s8 + $0x10] sm:$0xff]  }
 0x3d7   :  { %5656 = vmatpush1.bf16.msra.mxu1 %v8105_v60  ;;  %5616 = vmatprep.subr.bf16.mxu0 %v8110_v2  ;;  %v8179_v60 = vld [vmem:[%s10170_s8 + $0x90] sm:$0xff]   ;;  %v8180_v2 = vld [vmem:[%s10170_s8 + $0x58] sm:$0xff]  }
 0x3d8   :  { %5657 = vmatprep.subr.bf16.mxu1 %v8113_v20  ;;  %v8181_v20 = vld [vmem:[%s10170_s8 + $0xd8] sm:$0xff]  }
 0x3da   :  { %5617 = vmatpush1.bf16.msra.mxu0 %v8108_v8  ;;  %v8182_v8 = vld [vmem:[%s10170_s8 + $0x18] sm:$0xff]  }
 0x3db   :  { %5658 = vmatpush1.bf16.msra.mxu1 %v8111_v27  ;;  %5618 = vmatprep.subr.bf16.mxu0 %v8116_v48  ;;  %v8183_v27 = vld [vmem:[%s10170_s8 + $0x98] sm:$0xff]   ;;  %v8184_v48 = vld [vmem:[%s10170_s8 + $0x60] sm:$0xff]  }
 0x3dc   :  { %5659 = vmatprep.subr.bf16.mxu1 %v8119_v49  ;;  %v8185_v49 = vld [vmem:[%s10170_s8 + $0xe0] sm:$0xff]  }
 0x3de   :  { %5619 = vmatpush1.bf16.msra.mxu0 %v8114_v12  ;;  %v8186_v12 = vld [vmem:[%s10170_s8 + $0x20] sm:$0xff]  }
 0x3df   :  { %5660 = vmatpush1.bf16.msra.mxu1 %v8117_v36  ;;  %5620 = vmatprep.subr.bf16.mxu0 %v8122_v31  ;;  %v8187_v36 = vld [vmem:[%s10170_s8 + $0xa0] sm:$0xff]   ;;  %v8188_v31 = vld [vmem:[%s10170_s8 + $0x68] sm:$0xff]  }
 0x3e0   :  { %5661 = vmatprep.subr.bf16.mxu1 %v8125_v53  ;;  %v8189_v53 = vld [vmem:[%s10170_s8 + $0xe8] sm:$0xff]  }
 0x3e2   :  { %5621 = vmatpush1.bf16.msra.mxu0 %v8120_v37 }
 0x3e3   :  { %5662 = vmatpush1.bf16.msra.mxu1 %v8123_v24  ;;  %5622 = vmatprep.subr.bf16.mxu0 %v8128_v30  ;;  %v8190_v30 = vld [vmem:[%s10170_s8 + $0x28] sm:$0xff]  }
 0x3e4   :  { %5663 = vmatprep.subr.bf16.mxu1 %v8131_v51  ;;  %v8191_v51 = vld [vmem:[%s10170_s8 + $0xa8] sm:$0xff]  }
 0x3e6   :  { %5623 = vmatpush1.bf16.msra.mxu0 %v8126_v44 }
 0x3e7   :  { %5664 = vmatpush1.bf16.msra.mxu1 %v8129_v39  ;;  %5624 = vmatprep.subr.bf16.mxu0 %v8134_v15 }
 0x3e8   :  { %5665 = vmatprep.subr.bf16.mxu1 %v8137_v52 }
 0x3ea   :  { %5625 = vmatpush1.bf16.msra.mxu0 %v8132_v38 }
 0x3eb   :  { %5666 = vmatpush1.bf16.msra.mxu1 %v8135_v54  ;;  %5626 = vmatprep.subr.bf16.mxu0 %v8140_v5 }
 0x3ec   :  { %5667 = vmatprep.subr.bf16.mxu1 %v8143_v55 }
 0x3ee   :  { %5627 = vmatpush1.bf16.msra.mxu0 %v8138_v57 }
 0x3ef   :  { %5668 = vmatpush1.bf16.msra.mxu1 %v8141_v23  ;;  %5628 = vmatprep.subr.bf16.mxu0 %v8146_v6  ;;  %v8192_v6 = vld [vmem:[%s10170_s8 + $0x70] sm:$0xff]  }
 0x3f0   :  { %5669 = vmatprep.subr.bf16.mxu1 %v8149_v10  ;;  %v8193_v10 = vld [vmem:[%s10170_s8 + $0xf0] sm:$0xff]  }
 0x3f2   :  { %5629 = vmatpush1.bf16.msra.mxu0 %v8144_v59  ;;  %v8194_v59 = vld [vmem:[%s10170_s8 + $0x30] sm:$0xff]  }
 0x3f3   :  { %5670 = vmatpush1.bf16.msra.mxu1 %v8147_v14  ;;  %5630 = vmatprep.subr.bf16.mxu0 %v8152_v29  ;;  %v8195_v14 = vld [vmem:[%s10170_s8 + $0xb0] sm:$0xff]   ;;  %v8196_v29 = vld [vmem:[%s10170_s8 + $0x78] sm:$0xff]  }
 0x3f4   :  { %5671 = vmatprep.subr.bf16.mxu1 %v8155_v58  ;;  %v8197_v58 = vld [vmem:[%s10170_s8 + $0xf8] sm:$0xff]  }
 0x3f6   :  { %5631 = vmatpush1.bf16.msra.mxu0 %v8150_v40  ;;  %v8198_v40 = vld [vmem:[%s10170_s8 + $0x38] sm:$0xff]  }
 0x3f7   :  { %5672 = vmatpush1.bf16.msra.mxu1 %v8153_v45  ;;  %5632 = vmatprep.subr.bf16.mxu0 %v8158_v28  ;;  %v8199_v45 = vld [vmem:[%s10170_s8 + $0xb8] sm:$0xff]  }
 0x3f8   :  { %5673 = vmatprep.subr.bf16.mxu1 %v8161_v43 }
 0x3fa   :  { %5633 = vmatpush1.bf16.msra.mxu0 %v8156_v35 }
 0x3fb   :  { %5674 = vmatpush1.bf16.msra.mxu1 %v8159_v46  ;;  %5634 = vmatprep.subr.bf16.mxu0 %v8164_v16 }
 0x3fc   :  { %5675 = vmatprep.subr.bf16.mxu1 %v8167_v13 }
 0x3fe   :  { %5635 = vmatpush1.bf16.msra.mxu0 %v8162_v33 }
 0x3ff   :  { %5676 = vmatpush1.bf16.msra.mxu1 %v8165_v11  ;;  %7039 = vmatprep.subr.bf16.mxu0 %v8168_v25 }
 0x400   :  { %7061 = vmatprep.subr.bf16.mxu1 %v8169_v4 }
 0x401   :  { %5637 = vmatmul.mubr.bf16.vlgmr.msra.gmra.mrb[76].mxu0 %v5217_v19 }
 0x402   :  { %5678 = vmatmul.mubr.bf16.vlgmr.msra.gmra.mrb[76].mxu1 %v5217_v19  ;;  %7040 = vmatpush3.bf16.msra.mxu0 %v8170_v26 }
 0x403   :  { %7062 = vmatpush3.bf16.msra.mxu1 %v8171_v21  ;;  %7041 = vmatprep.subr.bf16.mxu0 %v8172_v22 }
 0x404   :  { %7063 = vmatprep.subr.bf16.mxu1 %v8173_v9 }
 0x406   :  { %7042 = vmatpush3.bf16.msra.mxu0 %v8174_v47 }
 0x407   :  { %7064 = vmatpush3.bf16.msra.mxu1 %v8175_v3  ;;  %7043 = vmatprep.subr.bf16.mxu0 %v8176_v1 }
 0x408   :  { %7065 = vmatprep.subr.bf16.mxu1 %v8177_v61 }
 0x40a   :  { %7044 = vmatpush3.bf16.msra.mxu0 %v8178_v62 }
 0x40b   :  { %7066 = vmatpush3.bf16.msra.mxu1 %v8179_v60  ;;  %7045 = vmatprep.subr.bf16.mxu0 %v8180_v2 }
 0x40c   :  { %7067 = vmatprep.subr.bf16.mxu1 %v8181_v20 }
 0x40e   :  { %7046 = vmatpush3.bf16.msra.mxu0 %v8182_v8 }
 0x40f   :  { %7068 = vmatpush3.bf16.msra.mxu1 %v8183_v27  ;;  %7047 = vmatprep.subr.bf16.mxu0 %v8184_v48 }
 0x410   :  { %7069 = vmatprep.subr.bf16.mxu1 %v8185_v49 }
 0x412   :  { %7048 = vmatpush3.bf16.msra.mxu0 %v8186_v12 }
 0x413   :  { %7070 = vmatpush3.bf16.msra.mxu1 %v8187_v36  ;;  %7049 = vmatprep.subr.bf16.mxu0 %v8188_v31 }
 0x414   :  { %v4282_v0 = vpop.f32.mrb[64].mxu0  ;;  %v4323_v50 = vpop.f32.mrb[64].mxu1  ;;  %7071 = vmatprep.subr.bf16.mxu1 %v8189_v53 }
 0x415   :  { %v4284_v63 = vpop.f32.mrb[65].mxu0  ;;  %v4325_v42 = vpop.f32.mrb[65].mxu1 }
 0x416   :  { %v4286_v41 = vpop.f32.mrb[66].mxu0  ;;  %v4327_v7 = vpop.f32.mrb[66].mxu1  ;;  %7050 = vmatpush3.bf16.msra.mxu0 %v8190_v30 }
 0x417   :  { %v4287_v18 = vpop.f32.mrb[67].mxu0  ;;  %v4328_v56 = vpop.f32.mrb[67].mxu1  ;;  %7072 = vmatpush3.bf16.msra.mxu1 %v8191_v51  ;;  %7051 = vmatprep.subr.bf16.mxu0 %v8192_v6 }
 0x418   :  { %7073 = vmatprep.subr.bf16.mxu1 %v8193_v10 }
 0x41a   :  { %7052 = vmatpush3.bf16.msra.mxu0 %v8194_v59 }
 0x41b   :  { %7074 = vmatpush3.bf16.msra.mxu1 %v8195_v14  ;;  %7053 = vmatprep.subr.bf16.mxu0 %v8196_v29 }
 0x41c   :  { %7075 = vmatprep.subr.bf16.mxu1 %v8197_v58 }
 0x41e   :  { %7054 = vmatpush3.bf16.msra.mxu0 %v8198_v40 }
 0x41f   :  { %7076 = vmatpush3.bf16.msra.mxu1 %v8199_v45 }
 0x454   :  { %v4684_v37 = vpop.f32.mrb[68].mxu0  ;;  %v4725_v24 = vpop.f32.mrb[68].mxu1 }
 0x455   :  { %v4685_v44 = vadd.f32 %v4684_v37, %v4282_v0  ;;  %v4726_v39 = vadd.f32 %v4725_v24, %v4323_v50  ;;  %v4686_v15 = vpop.f32.mrb[69].mxu0  ;;  %v4727_v52 = vpop.f32.mrb[69].mxu1 }
 0x456   :  { %v4687_v38 = vadd.f32 %v4686_v15, %v4284_v63  ;;  %v4728_v54 = vadd.f32 %v4727_v52, %v4325_v42  ;;  %v4688_v5 = vpop.f32.mrb[70].mxu0  ;;  %v4729_v55 = vpop.f32.mrb[70].mxu1  ;;  %v5690_v63 = vld [vmem:[%s10169_s7] sm:$0xf]  ;;  %v10213_v42 = vld [vmem:[#allocation5_spill] sm:$0xff]  ;;  %v10214_v15 = vlaneseq }
 0x457   :  { %v4689_v57 = vpop.f32.mrb[71].mxu0  ;;  %v4730_v23 = vpop.f32.mrb[71].mxu1  ;;  %v5702_v41 = vsub.s32 2, %v10213_v42  ;;  %v5706_v7 = vsub.s32 3, %v10213_v42  ;;  %v5695_v18 = vrot.slane %v5690_v63, %v10212_v17  ;;  %v5699_v4 = vrot.slane %v5690_v63, %v9004_v32 }
 0x458   :  { %v6068_v52 = vand.u32 127, %v10214_v15 }
 0x459   :  { %v5703_v25 = vrot.slane %v5690_v63, %v5702_v41  ;;  %v5707_v9 = vrot.slane %v5690_v63, %v5706_v7 }
 0x45a   :  { %vm6069_vm3 = vcmp.lt.s32.totalorder %v6068_v52, 11 }
 0x494   :  { %v5159_v28 = vpop.f32.mrb[72].mxu0 }
 0x495   :  { %v5207_v43 = vadd.f32 %v5159_v28, %v4685_v44  ;;  %v5200_v35 = vpop.f32.mrb[72].mxu1  ;;  %v5161_v46 = vpop.f32.mrb[73].mxu0  ;;  %v7006_v44 = vld [vmem:[%s10171_s9] ss:$0 sm:$0xff] }
 0x496   :  { %v5209_v16 = vadd.f32 %v5200_v35, %v4726_v39  ;;  %v5208_v13 = vadd.f32 %v5161_v46, %v4687_v38  ;;  %v5202_v33 = vpop.f32.mrb[73].mxu1  ;;  %v5163_v34 = vpop.f32.mrb[74].mxu0 }
 0x497   :  { %v5210_v11 = vadd.f32 %v5202_v33, %v4728_v54  ;;  %v5204_v19 = vpop.f32.mrb[74].mxu1  ;;  %v5164_v0 = vpop.f32.mrb[75].mxu0 }
 0x498   :  { %v5205_v50 = vpop.f32.mrb[75].mxu1 }
 0x4d4   :  { %v5638_v56 = vpop.f32.mrb[76].mxu0 }
 0x4d5   :  { %v5686_v26 = vadd.f32 %v5638_v56, %v5207_v43  ;;  %v5679_v21 = vpop.f32.mrb[76].mxu1  ;;  %v5640_v22 = vpop.f32.mrb[77].mxu0 }
 0x4d6   :  { %v5688_v47 = vadd.f32 %v5679_v21, %v5209_v16  ;;  %v5687_v3 = vadd.f32 %v5640_v22, %v5208_v13  ;;  %v5681_v1 = vpop.f32.mrb[77].mxu1  ;;  %v5642_v61 = vpop.f32.mrb[78].mxu0 }
 0x4d7   :  { %v5712_v62 = vadd.f32 %v5695_v18, %v5686_v26  ;;  %v5689_v60 = vadd.f32 %v5681_v1, %v5210_v11  ;;  %v5683_v2 = vpop.f32.mrb[78].mxu1  ;;  %v5643_v20 = vpop.f32.mrb[79].mxu0 }
 0x4d8   :  { %v5714_v8 = vadd.f32 %v5703_v25, %v5688_v47  ;;  %v5713_v27 = vadd.f32 %v5699_v4, %v5687_v3  ;;  %v5684_v48 = vpop.f32.mrb[79].mxu1 }
 0x4d9   :  { %v5716_v17 = vmax.f32 %v5712_v62, 0.0  ;;  %v5715_v49 = vadd.f32 %v5707_v9, %v5689_v60 }
 0x4da   :  { %v5718_v12 = vmax.f32 %v5714_v8, 0.0  ;;  %v5717_v36 = vmax.f32 %v5713_v27, 0.0 }
 0x4db   :  { %v5719_v32 = vmax.f32 %v5715_v49, 0.0  ;;  %v5720_v53 = vpack.c.bf16 %v5716_v17, %v5716_v17 }
 0x4dc   :  { %v5721_v31 = vpack.c.bf16 %v5717_v36, %v5717_v36  ;;  %v5722_v24 = vpack.c.bf16 %v5718_v12, %v5718_v12 }
 0x4dd   :  { %v5723_v37 = vpack.c.bf16 %v5719_v32, %v5719_v32 }
 0x4de   :  { %6019 = vmatprep.mubr.bf16.mxu0 %v5721_v31 }
 0x4df   :  { %6059 = vmatprep.mubr.bf16.mxu1 %v5723_v37  ;;  %6020 = vmatmul.mubr.bf16.vlgmr.msra.gmra.mrb[80].mxu0 %v5720_v53 }
 0x4e0   :  { %6060 = vmatmul.mubr.bf16.vlgmr.msra.gmra.mrb[80].mxu1 %v5722_v24 }
 0x5b2   :  { %v7055_v30 = vpop.f32.mrb[80].mxu0 }
 0x5b3   :  { %v7077_v51 = vpop.f32.mrb[80].mxu1  ;;  %v7056_v39 = vpop.f32.mrb[81].mxu0 }
 0x5b4   :  { %v7057_v38 = vadd.f32 %v7056_v39, %v7055_v30  ;;  %v7078_v54 = vpop.f32.mrb[81].mxu1  ;;  %v7058_v5 = vpop.f32.mrb[82].mxu0 }
 0x5b5   :  { %v7079_v55 = vadd.f32 %v7078_v54, %v7077_v51  ;;  %v7080_v57 = vpop.f32.mrb[82].mxu1  ;;  %v7059_v23 = vpop.f32.mrb[83].mxu0 }
 0x5b6   :  { %v6022_v6 = vadd.f32 %v7057_v38, %v7006_v44  ;;  %v7081_v10 = vpop.f32.mrb[83].mxu1 }
 0x5b8   :  { %v6062_v59 = vadd.f32 %v7079_v55, %v6022_v6 }
 0x5ba   :  { %v6070_v14 = vsel %vm6069_vm3, %v6062_v59, -1e+30 }
 0x5bb   :  { %6071 = vmax.xlane.f32.xlu0 %v6070_v14 }
 0x648   :  { %v6072_v29 = vpop.xlane.xlu0 %6071 }
 0x649   :  { %v6073_v58 = vsub.f32 %v6070_v14, %v6072_v29 }
 0x64b   :  { %v6074_v40 = vmul.f32 1.442695, %v6073_v58 }
 0x64d   :  { %8200 = vpow2.f32 %v6074_v40 }
 0x657   :  { %v8201_v45 = vpop.eup %8200 }
 0x658   :  { %6076 = vadd.xlane.f32.xlu0 %v8201_v45 }
 0x6e5   :  { %v6077_v28 = vpop.xlane.xlu0 %6076 }
 0x6e6   :  { %8202 = vrcp.f32 %v6077_v28 }
 0x6f0   :  { %v8203_v43 = vpop.eup %8202 }
 0x6f1   :  { %v6079_v35 = vmul.f32 %v8203_v43, %v8201_v45 }
 0x6f3   :  { %6080 = vst [vmem:[%s10172_s10] sm:$0xff] %v6079_v35 }
 0x6f4   :  { %6085 = vsyncpa [#allocation3], 1 }

</bundles_post_ra>
